<compile_context>
chip_gen: v7x
topology: tpu7x:2x2x1
jax: 0.10.0
libtpu: 0.0.40
codegen_flags: <defaults>
</compile_context>

<pallas_src>
import math
from functools import partial

import jax
import jax.numpy as jnp
from jax import lax
from jax.experimental import pallas as pl
from jax.experimental.pallas import tpu as pltpu


def mhsa_kernel(x_ref, wqkv_ref, bqkv_ref, wout_ref, bout_ref, o_ref,
                k_scratch, v_scratch, *, num_heads, head_dim, q_tile):
    # x_ref      : (S, D)  f32   full sequence for this batch element
    # wqkv_ref   : (D, 3D) bf16
    # bqkv_ref   : (1, 3D) f32
    # wout_ref   : (D, D)  bf16
    # bout_ref   : (1, D)  f32
    # o_ref      : (tq, D) f32   query tile `qi` of this batch element
    # k_scratch  : (S, D)  bf16  per-batch K projection (persists across qi)
    # v_scratch  : (S, D)  bf16  per-batch V projection (persists across qi)
    d_model = num_heads * head_dim
    qi = pl.program_id(1)
    scale = 1.0 / math.sqrt(head_dim)

    # ---- K/V projection once per batch element (inner qi axis is "arbitrary") ----
    @pl.when(qi == 0)
    def _():
        x_full = x_ref[...].astype(jnp.bfloat16)                         # (S, D)
        kv = jnp.dot(x_full, wqkv_ref[:, d_model:3 * d_model],
                     preferred_element_type=jnp.float32)                 # (S, 2D) f32
        kv = kv + bqkv_ref[:, d_model:3 * d_model]
        k_scratch[...] = kv[:, :d_model].astype(jnp.bfloat16)
        v_scratch[...] = kv[:, d_model:].astype(jnp.bfloat16)

    # ---- Q projection for this query tile (scale folded into q) ----
    row0 = pl.multiple_of(qi * q_tile, q_tile)
    x_tile = x_ref[pl.ds(row0, q_tile), :].astype(jnp.bfloat16)          # (tq, D)
    q = jnp.dot(x_tile, wqkv_ref[:, 0:d_model],
                preferred_element_type=jnp.float32) + bqkv_ref[:, 0:d_model]
    q = (q * scale).astype(jnp.bfloat16)                                 # (tq, D)

    # ---- Per-head attention, concat fused into the output projection ----
    acc = jnp.zeros((q_tile, d_model), jnp.float32)                      # (tq, D)
    for h in range(num_heads):
        lo = h * head_dim
        hi = lo + head_dim
        q_h = q[:, lo:hi]                                                # (tq, hd) bf16
        k_h = k_scratch[:, lo:hi]                                        # (S,  hd) bf16
        v_h = v_scratch[:, lo:hi]                                        # (S,  hd) bf16

        # scores: contract last dims directly (MXU transposed-operand path).
        s = lax.dot_general(q_h, k_h, (((1,), (1,)), ((), ())),
                            preferred_element_type=jnp.float32)          # (tq, S) f32
        s = s - jnp.max(s, axis=-1, keepdims=True)
        p = jnp.exp(s)
        p = p * pl.reciprocal(jnp.sum(p, axis=-1, keepdims=True), approx=True)

        head = jnp.dot(p.astype(jnp.bfloat16), v_h,
                       preferred_element_type=jnp.float32)               # (tq, hd) f32

        # Fused out-projection: head @ W_out[lo:hi, :] accumulated in f32.
        acc = acc + jnp.dot(head.astype(jnp.bfloat16), wout_ref[lo:hi, :],
                            preferred_element_type=jnp.float32)          # (tq, D)

    o_ref[...] = (acc + bout_ref[...]).astype(o_ref.dtype)


def multi_head_self_attention(x, w_qkv, b_qkv, w_out, b_out, *, num_heads,
                              q_tile=128):
    B, S, D = x.shape
    assert D % num_heads == 0, "d_model must be divisible by num_heads"
    head_dim = D // num_heads
    if S % q_tile != 0:
        q_tile = S                      # fall back to a single query tile
    n_q = S // q_tile

    # bf16 MXU operands; biases stay f32 (added to f32 accumulators).
    w_qkv_bf = w_qkv.astype(jnp.bfloat16)
    w_out_bf = w_out.astype(jnp.bfloat16)
    b_qkv2 = b_qkv.reshape(1, 3 * D).astype(jnp.float32)
    b_out2 = b_out.reshape(1, D).astype(jnp.float32)

    kernel = partial(mhsa_kernel, num_heads=num_heads, head_dim=head_dim,
                     q_tile=q_tile)

    return pl.pallas_call(
        kernel,
        out_shape=jax.ShapeDtypeStruct((B, S, D), x.dtype),
        grid_spec=pltpu.PrefetchScalarGridSpec(
            num_scalar_prefetch=0,
            grid=(B, n_q),
            in_specs=[
                # Full sequence per batch element (block index constant over qi
                # -> fetched once per b); leading batch dim squeezed.
                pl.BlockSpec((None, S, D), lambda b, qi: (b, 0, 0)),
                # Weights / biases: constant index_map -> DMA'd once.
                pl.BlockSpec((D, 3 * D), lambda b, qi: (0, 0)),
                pl.BlockSpec((1, 3 * D), lambda b, qi: (0, 0)),
                pl.BlockSpec((D, D), lambda b, qi: (0, 0)),
                pl.BlockSpec((1, D), lambda b, qi: (0, 0)),
            ],
            out_specs=pl.BlockSpec((None, q_tile, D), lambda b, qi: (b, qi, 0)),
            scratch_shapes=[
                pltpu.VMEM((S, D), jnp.bfloat16),   # K (per batch element)
                pltpu.VMEM((S, D), jnp.bfloat16),   # V (per batch element)
            ],
        ),
        compiler_params=pltpu.CompilerParams(
            # batch axis independent (megacore-shardable); query-tile axis must be
            # sequential because K/V scratch is filled at qi == 0.
            dimension_semantics=("parallel", "arbitrary"),
            vmem_limit_bytes=48 * 1024 * 1024,
        ),
    )(x, w_qkv_bf, b_qkv2, w_out_bf, b_out2)


def reference_mhsa(x, w_qkv, b_qkv, w_out, b_out, *, num_heads):
    """Pure-JAX f32 reference (standard multi-head self-attention)."""
    B, S, D = x.shape
    hd = D // num_heads
    qkv = x @ w_qkv + b_qkv                                   # (B, S, 3D)
    qkv = qkv.reshape(B, S, 3, num_heads, hd)
    q = jnp.transpose(qkv[:, :, 0], (0, 2, 1, 3))             # (B, H, S, hd)
    k = jnp.transpose(qkv[:, :, 1], (0, 2, 1, 3))
    v = jnp.transpose(qkv[:, :, 2], (0, 2, 1, 3))
    attn = jnp.einsum('bhqd,bhkd->bhqk', q, k) / math.sqrt(hd)
    attn = jax.nn.softmax(attn, axis=-1)
    out = jnp.einsum('bhqk,bhkd->bhqd', attn, v)
    out = jnp.transpose(out, (0, 2, 1, 3)).reshape(B, S, D)
    return out @ w_out + b_out


if __name__ == "__main__":
    # Small but TPU-friendly shapes: lane-dense D (multiple of 128), aligned S.
    B, S, D, H = 2, 256, 256, 4   # batch, seq_len, d_model, num_heads (head_dim=64)

    key = jax.random.PRNGKey(0)
    kx, k1, k2, k3, k4 = jax.random.split(key, 5)

    x = jax.random.normal(kx, (B, S, D), dtype=jnp.float32)
    # Parameters stored (in, out) for x @ W + b (== nn.Linear weight.T).
    w_qkv = jax.random.normal(k1, (D, 3 * D), dtype=jnp.float32) * (1.0 / math.sqrt(D))
    b_qkv = jax.random.normal(k2, (3 * D,), dtype=jnp.float32) * 0.01
    w_out = jax.random.normal(k3, (D, D), dtype=jnp.float32) * (1.0 / math.sqrt(D))
    b_out = jax.random.normal(k4, (D,), dtype=jnp.float32) * 0.01

    out = multi_head_self_attention(x, w_qkv, b_qkv, w_out, b_out, num_heads=H)
    out = jax.block_until_ready(out)

    ref = reference_mhsa(x, w_qkv, b_qkv, w_out, b_out, num_heads=H)
    assert out.shape == (B, S, D)
    # bf16 MXU operands with f32 accumulation -> bf16-level tolerance vs f32 ref.
    assert jnp.allclose(out, ref, atol=5e-2, rtol=5e-2), (
        f"mismatch vs reference: max abs diff = {jnp.max(jnp.abs(out - ref))}")

    print("KERNEL_OK")
</pallas_src>

<mosaic_0001>
module attributes {stable_mosaic.version = 11 : i64} {
  func.func @mhsa_kernel(%arg0: i32, %arg1: i32, %arg2: memref<1x256x256xf32, #tpu.memory_space<vmem>>, %arg3: memref<256x768xbf16, #tpu.memory_space<vmem>>, %arg4: memref<1x768xf32, #tpu.memory_space<vmem>>, %arg5: memref<256x256xbf16, #tpu.memory_space<vmem>>, %arg6: memref<1x256xf32, #tpu.memory_space<vmem>>, %arg7: memref<1x128x256xf32, #tpu.memory_space<vmem>>, %arg8: memref<256x256xbf16, #tpu.memory_space<vmem>>, %arg9: memref<256x256xbf16, #tpu.memory_space<vmem>>) attributes {dimension_semantics = [#tpu.dimension_semantics<parallel>, #tpu.dimension_semantics<arbitrary>], iteration_bounds = array<i64: 2, 2>, scalar_prefetch = 0 : i64, scratch_operands = 2 : i64, tpu.core_type = #tpu.core_type<tc>, window_params = [{transform_indices = @transform_0, window_bounds = array<i64: 1, 256, 256>}, {pipeline_mode = #tpu.pipeline_mode<synchronous>, transform_indices = @transform_1, window_bounds = array<i64: 256, 768>}, {pipeline_mode = #tpu.pipeline_mode<synchronous>, transform_indices = @transform_2, window_bounds = array<i64: 1, 768>}, {pipeline_mode = #tpu.pipeline_mode<synchronous>, transform_indices = @transform_3, window_bounds = array<i64: 256, 256>}, {pipeline_mode = #tpu.pipeline_mode<synchronous>, transform_indices = @transform_4, window_bounds = array<i64: 1, 256>}, {transform_indices = @transform_5, window_bounds = array<i64: 1, 128, 256>}]} {
    %c0_i32 = arith.constant 0 : i32
    %0 = arith.cmpi eq, %arg1, %c0_i32 : i32
    %1 = arith.extui %0 : i1 to i32
    %c0_i32_0 = arith.constant 0 : i32
    %2 = arith.cmpi ne, %1, %c0_i32_0 : i32
    scf.if %2 {
      %c0_54 = arith.constant 0 : index
      %c0_55 = arith.constant 0 : index
      %c0_56 = arith.constant 0 : index
      %104 = vector.load %arg2[%c0_54, %c0_55, %c0_56] : memref<1x256x256xf32, #tpu.memory_space<vmem>>, vector<1x256x256xf32>
      %105 = vector.shape_cast %104 : vector<1x256x256xf32> to vector<256x256xf32>
      %106 = arith.truncf %105 : vector<256x256xf32> to vector<256x256xbf16>
      %c0_57 = arith.constant 0 : index
      %c256 = arith.constant 256 : index
      %107 = vector.load %arg3[%c0_57, %c256] : memref<256x768xbf16, #tpu.memory_space<vmem>>, vector<256x512xbf16>
      %cst_58 = arith.constant dense<0.000000e+00> : vector<256x512xf32>
      %108 = tpu.matmul %106, %107, %cst_58 {dimension_numbers = #tpu.dot_dimension_numbers<[1], [0], [0], [1], [0, 0, 1, 1], [], []>} : vector<256x256xbf16>, vector<256x512xbf16>, vector<256x512xf32> -> vector<256x512xf32>
      %c0_59 = arith.constant 0 : index
      %c256_60 = arith.constant 256 : index
      %109 = vector.load %arg4[%c0_59, %c256_60] : memref<1x768xf32, #tpu.memory_space<vmem>>, vector<1x512xf32>
      %110 = vector.broadcast %109 : vector<1x512xf32> to vector<256x512xf32>
      %111 = arith.addf %108, %110 : vector<256x512xf32>
      %112 = vector.extract_strided_slice %111 {offsets = [0, 0], sizes = [256, 256], strides = [1, 1]} : vector<256x512xf32> to vector<256x256xf32>
      %113 = arith.truncf %112 : vector<256x256xf32> to vector<256x256xbf16>
      %c0_61 = arith.constant 0 : index
      %c0_62 = arith.constant 0 : index
      %114 = vector.load %arg8[%c0_61, %c0_62] : memref<256x256xbf16, #tpu.memory_space<vmem>>, vector<256x256xbf16>
      tpu.vector_store %arg8[%c0_61, %c0_62], %113 {strides = array<i32>} : memref<256x256xbf16, #tpu.memory_space<vmem>>, vector<256x256xbf16>,
      %115 = vector.extract_strided_slice %111 {offsets = [0, 256], sizes = [256, 256], strides = [1, 1]} : vector<256x512xf32> to vector<256x256xf32>
      %116 = arith.truncf %115 : vector<256x256xf32> to vector<256x256xbf16>
      %c0_63 = arith.constant 0 : index
      %c0_64 = arith.constant 0 : index
      %117 = vector.load %arg9[%c0_63, %c0_64] : memref<256x256xbf16, #tpu.memory_space<vmem>>, vector<256x256xbf16>
      tpu.vector_store %arg9[%c0_63, %c0_64], %116 {strides = array<i32>} : memref<256x256xbf16, #tpu.memory_space<vmem>>, vector<256x256xbf16>,
    } else {
    }
    %c128_i32 = arith.constant 128 : i32
    %3 = arith.muli %arg1, %c128_i32 : i32
    %4 = tpu.assume_multiple %3, 128 : i32
    %c0 = arith.constant 0 : index
    %5 = arith.index_cast %4 : i32 to index
    %c0_1 = arith.constant 0 : index
    %6 = vector.load %arg2[%c0, %5, %c0_1] : memref<1x256x256xf32, #tpu.memory_space<vmem>>, vector<1x128x256xf32>
    %7 = vector.shape_cast %6 : vector<1x128x256xf32> to vector<128x256xf32>
    %8 = arith.truncf %7 : vector<128x256xf32> to vector<128x256xbf16>
    %c0_2 = arith.constant 0 : index
    %c0_3 = arith.constant 0 : index
    %9 = vector.load %arg3[%c0_2, %c0_3] : memref<256x768xbf16, #tpu.memory_space<vmem>>, vector<256x256xbf16>
    %cst = arith.constant dense<0.000000e+00> : vector<128x256xf32>
    %10 = tpu.matmul %8, %9, %cst {dimension_numbers = #tpu.dot_dimension_numbers<[1], [0], [0], [1], [0, 0, 1, 1], [], []>} : vector<128x256xbf16>, vector<256x256xbf16>, vector<128x256xf32> -> vector<128x256xf32>
    %c0_4 = arith.constant 0 : index
    %c0_5 = arith.constant 0 : index
    %11 = vector.load %arg4[%c0_4, %c0_5] : memref<1x768xf32, #tpu.memory_space<vmem>>, vector<1x256xf32>
    %12 = vector.broadcast %11 : vector<1x256xf32> to vector<128x256xf32>
    %13 = arith.addf %10, %12 : vector<128x256xf32>
    %cst_6 = arith.constant 1.250000e-01 : f32
    %14 = vector.broadcast %cst_6 : f32 to vector<128x256xf32>
    %15 = arith.mulf %13, %14 : vector<128x256xf32>
    %16 = arith.truncf %15 : vector<128x256xf32> to vector<128x256xbf16>
    %cst_7 = arith.constant 0.000000e+00 : f32
    %17 = vector.broadcast %cst_7 : f32 to vector<128x256xf32>
    %18 = vector.extract_strided_slice %16 {offsets = [0, 0], sizes = [128, 64], strides = [1, 1]} : vector<128x256xbf16> to vector<128x64xbf16>
    %c0_8 = arith.constant 0 : index
    %c0_9 = arith.constant 0 : index
    %19 = vector.load %arg8[%c0_8, %c0_9] : memref<256x256xbf16, #tpu.memory_space<vmem>>, vector<256x64xbf16>
    %c0_10 = arith.constant 0 : index
    %c0_11 = arith.constant 0 : index
    %20 = vector.load %arg9[%c0_10, %c0_11] : memref<256x256xbf16, #tpu.memory_space<vmem>>, vector<256x64xbf16>
    %cst_12 = arith.constant dense<0.000000e+00> : vector<128x256xf32>
    %21 = tpu.matmul %18, %19, %cst_12 {dimension_numbers = #tpu.dot_dimension_numbers<[1], [1], [0], [0], [0, 0, 1, 0], [], []>} : vector<128x64xbf16>, vector<256x64xbf16>, vector<128x256xf32> -> vector<128x256xf32>
    %cst_13 = arith.constant dense<0xFF800000> : vector<128xf32>
    %22 = vector.multi_reduction <maximumf>, %21, %cst_13 [1] : vector<128x256xf32> to vector<128xf32>
    %23 = vector.shape_cast %22 : vector<128xf32> to vector<128x1xf32>
    %24 = vector.broadcast %23 : vector<128x1xf32> to vector<128x256xf32>
    %25 = arith.subf %21, %24 : vector<128x256xf32>
    %26 = math.exp %25 : vector<128x256xf32>
    %cst_14 = arith.constant dense<0.000000e+00> : vector<128xf32>
    %27 = vector.multi_reduction <add>, %26, %cst_14 [1] : vector<128x256xf32> to vector<128xf32>
    %28 = vector.shape_cast %27 : vector<128xf32> to vector<128x1xf32>
    %29 = tpu.reciprocal %28 {approx = true} : vector<128x1xf32> -> vector<128x1xf32>
    %30 = vector.broadcast %29 : vector<128x1xf32> to vector<128x256xf32>
    %31 = arith.mulf %26, %30 : vector<128x256xf32>
    %32 = arith.truncf %31 : vector<128x256xf32> to vector<128x256xbf16>
    %cst_15 = arith.constant dense<0.000000e+00> : vector<128x64xf32>
    %33 = tpu.matmul %32, %20, %cst_15 {dimension_numbers = #tpu.dot_dimension_numbers<[1], [0], [0], [1], [0, 0, 1, 1], [], []>} : vector<128x256xbf16>, vector<256x64xbf16>, vector<128x64xf32> -> vector<128x64xf32>
    %34 = arith.truncf %33 : vector<128x64xf32> to vector<128x64xbf16>
    %c0_16 = arith.constant 0 : index
    %c0_17 = arith.constant 0 : index
    %35 = vector.load %arg5[%c0_16, %c0_17] : memref<256x256xbf16, #tpu.memory_space<vmem>>, vector<64x256xbf16>
    %cst_18 = arith.constant dense<0.000000e+00> : vector<128x256xf32>
    %36 = tpu.matmul %34, %35, %cst_18 {dimension_numbers = #tpu.dot_dimension_numbers<[1], [0], [0], [1], [0, 0, 1, 1], [], []>} : vector<128x64xbf16>, vector<64x256xbf16>, vector<128x256xf32> -> vector<128x256xf32>
    %37 = arith.addf %17, %36 : vector<128x256xf32>
    %38 = vector.extract_strided_slice %16 {offsets = [0, 64], sizes = [128, 64], strides = [1, 1]} : vector<128x256xbf16> to vector<128x64xbf16>
    %c0_19 = arith.constant 0 : index
    %c64 = arith.constant 64 : index
    %39 = vector.load %arg8[%c0_19, %c64] : memref<256x256xbf16, #tpu.memory_space<vmem>>, vector<256x64xbf16>
    %c0_20 = arith.constant 0 : index
    %c64_21 = arith.constant 64 : index
    %40 = vector.load %arg9[%c0_20, %c64_21] : memref<256x256xbf16, #tpu.memory_space<vmem>>, vector<256x64xbf16>
    %cst_22 = arith.constant dense<0.000000e+00> : vector<128x256xf32>
    %41 = tpu.matmul %38, %39, %cst_22 {dimension_numbers = #tpu.dot_dimension_numbers<[1], [1], [0], [0], [0, 0, 1, 0], [], []>} : vector<128x64xbf16>, vector<256x64xbf16>, vector<128x256xf32> -> vector<128x256xf32>
    %cst_23 = arith.constant dense<0xFF800000> : vector<128xf32>
    %42 = vector.multi_reduction <maximumf>, %41, %cst_23 [1] : vector<128x256xf32> to vector<128xf32>
    %43 = vector.shape_cast %42 : vector<128xf32> to vector<128x1xf32>
    %44 = vector.broadcast %43 : vector<128x1xf32> to vector<128x256xf32>
    %45 = arith.subf %41, %44 : vector<128x256xf32>
    %46 = math.exp %45 : vector<128x256xf32>
    %cst_24 = arith.constant dense<0.000000e+00> : vector<128xf32>
    %47 = vector.multi_reduction <add>, %46, %cst_24 [1] : vector<128x256xf32> to vector<128xf32>
    %48 = vector.shape_cast %47 : vector<128xf32> to vector<128x1xf32>
    %49 = tpu.reciprocal %48 {approx = true} : vector<128x1xf32> -> vector<128x1xf32>
    %50 = vector.broadcast %49 : vector<128x1xf32> to vector<128x256xf32>
    %51 = arith.mulf %46, %50 : vector<128x256xf32>
    %52 = arith.truncf %51 : vector<128x256xf32> to vector<128x256xbf16>
    %cst_25 = arith.constant dense<0.000000e+00> : vector<128x64xf32>
    %53 = tpu.matmul %52, %40, %cst_25 {dimension_numbers = #tpu.dot_dimension_numbers<[1], [0], [0], [1], [0, 0, 1, 1], [], []>} : vector<128x256xbf16>, vector<256x64xbf16>, vector<128x64xf32> -> vector<128x64xf32>
    %54 = arith.truncf %53 : vector<128x64xf32> to vector<128x64xbf16>
    %c64_26 = arith.constant 64 : index
    %c0_27 = arith.constant 0 : index
    %55 = vector.load %arg5[%c64_26, %c0_27] : memref<256x256xbf16, #tpu.memory_space<vmem>>, vector<64x256xbf16>
    %cst_28 = arith.constant dense<0.000000e+00> : vector<128x256xf32>
    %56 = tpu.matmul %54, %55, %cst_28 {dimension_numbers = #tpu.dot_dimension_numbers<[1], [0], [0], [1], [0, 0, 1, 1], [], []>} : vector<128x64xbf16>, vector<64x256xbf16>, vector<128x256xf32> -> vector<128x256xf32>
    %57 = arith.addf %37, %56 : vector<128x256xf32>
    %58 = vector.extract_strided_slice %16 {offsets = [0, 128], sizes = [128, 64], strides = [1, 1]} : vector<128x256xbf16> to vector<128x64xbf16>
    %c0_29 = arith.constant 0 : index
    %c128 = arith.constant 128 : index
    %59 = vector.load %arg8[%c0_29, %c128] : memref<256x256xbf16, #tpu.memory_space<vmem>>, vector<256x64xbf16>
    %c0_30 = arith.constant 0 : index
    %c128_31 = arith.constant 128 : index
    %60 = vector.load %arg9[%c0_30, %c128_31] : memref<256x256xbf16, #tpu.memory_space<vmem>>, vector<256x64xbf16>
    %cst_32 = arith.constant dense<0.000000e+00> : vector<128x256xf32>
    %61 = tpu.matmul %58, %59, %cst_32 {dimension_numbers = #tpu.dot_dimension_numbers<[1], [1], [0], [0], [0, 0, 1, 0], [], []>} : vector<128x64xbf16>, vector<256x64xbf16>, vector<128x256xf32> -> vector<128x256xf32>
    %cst_33 = arith.constant dense<0xFF800000> : vector<128xf32>
    %62 = vector.multi_reduction <maximumf>, %61, %cst_33 [1] : vector<128x256xf32> to vector<128xf32>
    %63 = vector.shape_cast %62 : vector<128xf32> to vector<128x1xf32>
    %64 = vector.broadcast %63 : vector<128x1xf32> to vector<128x256xf32>
    %65 = arith.subf %61, %64 : vector<128x256xf32>
    %66 = math.exp %65 : vector<128x256xf32>
    %cst_34 = arith.constant dense<0.000000e+00> : vector<128xf32>
    %67 = vector.multi_reduction <add>, %66, %cst_34 [1] : vector<128x256xf32> to vector<128xf32>
    %68 = vector.shape_cast %67 : vector<128xf32> to vector<128x1xf32>
    %69 = tpu.reciprocal %68 {approx = true} : vector<128x1xf32> -> vector<128x1xf32>
    %70 = vector.broadcast %69 : vector<128x1xf32> to vector<128x256xf32>
    %71 = arith.mulf %66, %70 : vector<128x256xf32>
    %72 = arith.truncf %71 : vector<128x256xf32> to vector<128x256xbf16>
    %cst_35 = arith.constant dense<0.000000e+00> : vector<128x64xf32>
    %73 = tpu.matmul %72, %60, %cst_35 {dimension_numbers = #tpu.dot_dimension_numbers<[1], [0], [0], [1], [0, 0, 1, 1], [], []>} : vector<128x256xbf16>, vector<256x64xbf16>, vector<128x64xf32> -> vector<128x64xf32>
    %74 = arith.truncf %73 : vector<128x64xf32> to vector<128x64xbf16>
    %c128_36 = arith.constant 128 : index
    %c0_37 = arith.constant 0 : index
    %75 = vector.load %arg5[%c128_36, %c0_37] : memref<256x256xbf16, #tpu.memory_space<vmem>>, vector<64x256xbf16>
    %cst_38 = arith.constant dense<0.000000e+00> : vector<128x256xf32>
    %76 = tpu.matmul %74, %75, %cst_38 {dimension_numbers = #tpu.dot_dimension_numbers<[1], [0], [0], [1], [0, 0, 1, 1], [], []>} : vector<128x64xbf16>, vector<64x256xbf16>, vector<128x256xf32> -> vector<128x256xf32>
    %77 = arith.addf %57, %76 : vector<128x256xf32>
    %78 = vector.extract_strided_slice %16 {offsets = [0, 192], sizes = [128, 64], strides = [1, 1]} : vector<128x256xbf16> to vector<128x64xbf16>
    %c0_39 = arith.constant 0 : index
    %c192 = arith.constant 192 : index
    %79 = vector.load %arg8[%c0_39, %c192] : memref<256x256xbf16, #tpu.memory_space<vmem>>, vector<256x64xbf16>
    %c0_40 = arith.constant 0 : index
    %c192_41 = arith.constant 192 : index
    %80 = vector.load %arg9[%c0_40, %c192_41] : memref<256x256xbf16, #tpu.memory_space<vmem>>, vector<256x64xbf16>
    %cst_42 = arith.constant dense<0.000000e+00> : vector<128x256xf32>
    %81 = tpu.matmul %78, %79, %cst_42 {dimension_numbers = #tpu.dot_dimension_numbers<[1], [1], [0], [0], [0, 0, 1, 0], [], []>} : vector<128x64xbf16>, vector<256x64xbf16>, vector<128x256xf32> -> vector<128x256xf32>
    %cst_43 = arith.constant dense<0xFF800000> : vector<128xf32>
    %82 = vector.multi_reduction <maximumf>, %81, %cst_43 [1] : vector<128x256xf32> to vector<128xf32>
    %83 = vector.shape_cast %82 : vector<128xf32> to vector<128x1xf32>
    %84 = vector.broadcast %83 : vector<128x1xf32> to vector<128x256xf32>
    %85 = arith.subf %81, %84 : vector<128x256xf32>
    %86 = math.exp %85 : vector<128x256xf32>
    %cst_44 = arith.constant dense<0.000000e+00> : vector<128xf32>
    %87 = vector.multi_reduction <add>, %86, %cst_44 [1] : vector<128x256xf32> to vector<128xf32>
    %88 = vector.shape_cast %87 : vector<128xf32> to vector<128x1xf32>
    %89 = tpu.reciprocal %88 {approx = true} : vector<128x1xf32> -> vector<128x1xf32>
    %90 = vector.broadcast %89 : vector<128x1xf32> to vector<128x256xf32>
    %91 = arith.mulf %86, %90 : vector<128x256xf32>
    %92 = arith.truncf %91 : vector<128x256xf32> to vector<128x256xbf16>
    %cst_45 = arith.constant dense<0.000000e+00> : vector<128x64xf32>
    %93 = tpu.matmul %92, %80, %cst_45 {dimension_numbers = #tpu.dot_dimension_numbers<[1], [0], [0], [1], [0, 0, 1, 1], [], []>} : vector<128x256xbf16>, vector<256x64xbf16>, vector<128x64xf32> -> vector<128x64xf32>
    %94 = arith.truncf %93 : vector<128x64xf32> to vector<128x64xbf16>
    %c192_46 = arith.constant 192 : index
    %c0_47 = arith.constant 0 : index
    %95 = vector.load %arg5[%c192_46, %c0_47] : memref<256x256xbf16, #tpu.memory_space<vmem>>, vector<64x256xbf16>
    %cst_48 = arith.constant dense<0.000000e+00> : vector<128x256xf32>
    %96 = tpu.matmul %94, %95, %cst_48 {dimension_numbers = #tpu.dot_dimension_numbers<[1], [0], [0], [1], [0, 0, 1, 1], [], []>} : vector<128x64xbf16>, vector<64x256xbf16>, vector<128x256xf32> -> vector<128x256xf32>
    %97 = arith.addf %77, %96 : vector<128x256xf32>
    %c0_49 = arith.constant 0 : index
    %c0_50 = arith.constant 0 : index
    %98 = vector.load %arg6[%c0_49, %c0_50] : memref<1x256xf32, #tpu.memory_space<vmem>>, vector<1x256xf32>
    %99 = vector.broadcast %98 : vector<1x256xf32> to vector<128x256xf32>
    %100 = arith.addf %97, %99 : vector<128x256xf32>
    %c0_51 = arith.constant 0 : index
    %c0_52 = arith.constant 0 : index
    %c0_53 = arith.constant 0 : index
    %101 = vector.load %arg7[%c0_51, %c0_52, %c0_53] : memref<1x128x256xf32, #tpu.memory_space<vmem>>, vector<1x128x256xf32>
    %102 = vector.shape_cast %101 : vector<1x128x256xf32> to vector<128x256xf32>
    %103 = vector.shape_cast %100 : vector<128x256xf32> to vector<1x128x256xf32>
    tpu.vector_store %arg7[%c0_51, %c0_52, %c0_53], %103 {strides = array<i32>} : memref<1x128x256xf32, #tpu.memory_space<vmem>>, vector<1x128x256xf32>,
    return
  }
  func.func @transform_0(%arg0: i32, %arg1: i32) -> (i32, i32, i32) {
    %c0_i32 = arith.constant 0 : i32
    %c0_i32_0 = arith.constant 0 : i32
    %c0_i32_1 = arith.constant 0 : i32
    return %arg0, %c0_i32, %c0_i32_0 : i32, i32, i32
  }
  func.func @transform_1(%arg0: i32, %arg1: i32) -> (i32, i32) {
    %c0_i32 = arith.constant 0 : i32
    %c0_i32_0 = arith.constant 0 : i32
    %c0_i32_1 = arith.constant 0 : i32
    return %c0_i32, %c0_i32_0 : i32, i32
  }
  func.func @transform_2(%arg0: i32, %arg1: i32) -> (i32, i32) {
    %c0_i32 = arith.constant 0 : i32
    %c0_i32_0 = arith.constant 0 : i32
    %c0_i32_1 = arith.constant 0 : i32
    return %c0_i32, %c0_i32_0 : i32, i32
  }
  func.func @transform_3(%arg0: i32, %arg1: i32) -> (i32, i32) {
    %c0_i32 = arith.constant 0 : i32
    %c0_i32_0 = arith.constant 0 : i32
    %c0_i32_1 = arith.constant 0 : i32
    return %c0_i32, %c0_i32_0 : i32, i32
  }
  func.func @transform_4(%arg0: i32, %arg1: i32) -> (i32, i32) {
    %c0_i32 = arith.constant 0 : i32
    %c0_i32_0 = arith.constant 0 : i32
    %c0_i32_1 = arith.constant 0 : i32
    return %c0_i32, %c0_i32_0 : i32, i32
  }
  func.func @transform_5(%arg0: i32, %arg1: i32) -> (i32, i32, i32) {
    %c0_i32 = arith.constant 0 : i32
    %c0_i32_0 = arith.constant 0 : i32
    return %arg0, %arg1, %c0_i32 : i32, i32, i32
  }
}

</mosaic_0001>

<bundles_post_ra>
// kernel: tpu_custom_call.1
= control target key start
LH: loop header
LB: loop body
LE: loop exit
PB: predicated region body
PF: predicated region fallthrough
CT: control target
= control target key end

     0   :  { %s9379_s0 = inlined_call_operand.hbm [shape: f32[2,256,256], index: 0, kind: input, shape index: {}]   ;;  %s9380_s1 = inlined_call_operand.hbm [shape: bf16[256,768], index: 1, kind: input, shape index: {}]   ;;  %s9381_s2 = inlined_call_operand.vmem [shape: f32[1,768], index: 2, kind: input, shape index: {}]   ;;  %s9382_s3 = inlined_call_operand.hbm [shape: bf16[256,256], index: 3, kind: input, shape index: {}]   ;;  %s9383_s4 = inlined_call_operand.vmem [shape: f32[1,256], index: 4, kind: input, shape index: {}]   ;;  %s9384_s5 = inlined_call_operand.hbm [shape: f32[2,256,256], index: 5, kind: output, shape index: {}]  }
   0x1   :  { %9422 = sst [smem:[#allocation34_spill]] %s9380_s1 }
   0x2   :  { %9423 = sst [smem:[#allocation35_spill]] %s9382_s3 }
   0x3   :  { %9424 = sst [smem:[#allocation36_spill]] %s9384_s5 }
   0x4   :  { %10 = vsyncpa [#allocation5], 0 }
   0x5   :  { %12 = vsyncpa [#allocation5 + $0x1], 0 }
   0x6   :  { %13 = vsyncpa [#allocation8], 0 }
   0x7   :  { %14 = vsyncpa [#allocation6], 0 }
   0x8   :  { %16 = vsyncpa [#allocation6 + $0x1], 0  ;;  %s6996_s18 = smov 0   ;;  %s6998_s19 = smov 0  }
   0x9   :  { %s7000_s20 = smov 0   ;;  %s7002_s21 = smov 0  }
   0xa   :  { %s7004_s22 = smov 0   ;;  %s7006_s23 = smov 0  }
   0xb   :  { %s7008_s24 = smov 0   ;;  %s7010_s25 = smov 0  }
   0xc   :  { %s7012_s26 = smov 0   ;;  %s7014_s27 = smov 0  }
   0xd   :  { %s7016_s28 = smov 0  }
   0xe LB: > { %9425 = sst [smem:[#allocation14_spill]] %s6910_s18  ;;  %s5253_s29 = sadd.s32 4294967295, %s6950_s28   ;;  %s6950_s28 = sphi %s7016_s28, %s22_s28   ;;  %s6946_s27 = sphi %s7014_s27, %s9524_s27   ;;  %s6942_s26 = sphi %s7012_s26, %s9516_s26   ;;  %s6938_s25 = sphi %s7010_s25, %s9523_s25   ;;  %s6934_s24 = sphi %s7008_s24, %s9515_s24   ;;  %s6930_s23 = sphi %s7006_s23, %s9522_s23   ;;  %s6926_s22 = sphi %s7004_s22, %s9521_s22   ;;  %s6922_s21 = sphi %s7002_s21, %s9520_s21   ;;  %s6918_s20 = sphi %s7000_s20, %s9519_s20   ;;  %s6914_s19 = sphi %s6998_s19, %s9518_s19   ;;  %s6910_s18 = sphi %s6996_s18, %s9517_s18  }
   0xf   : > { %9426 = sst [smem:[#allocation15_spill]] %s6942_s26  ;;  %s5254_s30 = sadd.s32 4294967294, %s6950_s28  }
  0x10   : > { %p54_p0 = scmp.ne.s32.totalorder %s6926_s22, %s6922_s21  ;;  %p7052_p1 = scmp.eq.s32.totalorder %s5253_s29, 0 }
  0x11   : > { %p163_p2 = scmp.ne.s32.totalorder %s6918_s20, %s6914_s19  ;;  %p164_p4 = scmp.eq.s32.totalorder %s5253_s29, 3 }
  0x12   : > { %s9427_s6 = scalar_select %p7052_p1, 1, 0 }
  0x13   : > { %p7061_p3 = por %p7052_p1, %p54_p0  ;;  %p169_p5 = scmp.ne.s32.totalorder %s6914_s19, %s6910_s18 }
  0x14   : > { %p170_p6 = scmp.eq.s32.totalorder %s5254_s30, 3  ;;  %p7067_p7 = por %p164_p4, %p163_p2 }
  0x15   : > { %s9428_s8 = scalar_select %p7061_p3, 1, 0 }
  0x16   : > { %s9429_s9 = scalar_select %p7067_p7, 1, 0 }
  0x17   : > { %p5255_p8 = scmp.ge.s32.totalorder %s6950_s28, 1  ;;  %p7072_p9 = por %p170_p6, %p169_p5 }
  0x18   : > { %9430 = sst [smem:[#allocation16_spill]] %s9429_s9  ;;  %p177_p10 = scmp.lt.s32.totalorder %s6950_s28, 5 }
  0x19   : > { %s9431_s10 = scalar_select %p7072_p9, 1, 0 }
  0x1a   : > { %p7077_p11 = pnand %p5255_p8, %p177_p10  ;;  %s6952_s12 = smov [#allocation7]  }
  0x1b   : > { %9432 = sst [smem:[#allocation17_spill]] %s9431_s10  ;;  %s189_s13 = sshll.u32 %s6952_s12, 4  ;;  %s190_s13 = int_to_ptr.vmem [resolvable:$true] %s189_s13 }
  0x1c   : > { %s9433_s11 = scalar_select %p7077_p11, 1, 0 }
  0x1d   : > { %p6021_p12 = pneg %p7077_p11  ;;  %s6953_s15 = smov [#allocation9]  }
  0x1e   : > { %s205_s16 = sshll.u32 %s6953_s15, 4  ;;  %s9435_s1 = sld [smem:[#allocation34_spill]]  ;;  %s7089_s16 = int_to_ptr.vmem [resolvable:$true] %s205_s16 }
  0x1f   : > { %p7085_p13 = pnand %p6021_p12, %p7052_p1 }
  0x21   : > { %p6740_p2 = pneg %p7085_p13 }
  0x24   : > { %s6738_s29 = scalar_lea.hbm %s9435_s1, 12288 }
  0x25   : > { %p6739_p0 = scmp.ne.s32.totalorder %s9435_s1, %s6738_s29  ;;  %p6745_p6 = scmp.lt.u32.totalorder %s6738_s29, %s9435_s1 }
  0x27   : > { %p6741_p4 = pnand %p6740_p2, %p6739_p0 }
  0x29   : > { %p6742_p5 = pneg %p6741_p4 }
  0x2b   : > { %p6747_p8 = pnand %p6745_p6, %p6742_p5 }
  0x2d   : > { %6750 = shalt.err (!%p6747_p8)
}
  0x2e   : > { %s6751_s15 = scalar_lea.vmem %s190_s13, 12288  ;;  %p6759_p7 = scmp.lt.s32.totalorder %s190_s13, %s190_s13 }
  0x2f   : > { %p6752_p10 = scmp.ne.s32.totalorder %s190_s13, %s6751_s15  ;;  %p6760_p1 = scmp.lt.s32.totalorder %s6751_s15, %s6751_s15 }
  0x31   : > { %p6754_p12 = pnand %p6752_p10, %p6740_p2  ;;  %p6761_p3 = por %p6760_p1, %p6759_p7 }
  0x33   : > { %p6755_p9 = pneg %p6754_p12 }
  0x35   : > { %p6762_p11 = pnand %p6761_p3, %p6755_p9 }
  0x37   : > { %6765 = shalt.err (!%p6762_p11)
}
  0x38   : > { %s6954_s17 = smov 384   ;;  %s6955_s21 = smov 24  }
  0x39   : > { %6024 = dma.hbm_to_vmem [thread:$0]  (!%p7085_p13), %s9435_s1, 12288, %s190_s13, [#allocation8], %s6954_s17, %s6954_s17, %s6955_s21  }
  0x3a   : > { %s9436_s3 = sld [smem:[#allocation35_spill]] }
  0x40   : > { %s6766_s12 = scalar_lea.hbm %s9436_s3, 4096 }
  0x41   : > { %p6767_p0 = scmp.ne.s32.totalorder %s9436_s3, %s6766_s12  ;;  %p6773_p7 = scmp.lt.u32.totalorder %s6766_s12, %s9436_s3 }
  0x43   : > { %p6769_p1 = pnand %p6767_p0, %p6740_p2 }
  0x45   : > { %p6770_p3 = pneg %p6769_p1 }
  0x47   : > { %p6775_p9 = pnand %p6773_p7, %p6770_p3 }
  0x49   : > { %6778 = shalt.err (!%p6775_p9)
}
  0x4a   : > { %s6779_s13 = scalar_lea.vmem %s7089_s16, 4096  ;;  %p6787_p6 = scmp.lt.s32.totalorder %s7089_s16, %s7089_s16 }
  0x4b   : > { %p6780_p11 = scmp.ne.s32.totalorder %s7089_s16, %s6779_s13  ;;  %p6788_p8 = scmp.lt.s32.totalorder %s6779_s13, %s6779_s13 }
  0x4d   : > { %p6782_p4 = pnand %p6780_p11, %p6740_p2  ;;  %p6789_p10 = por %p6788_p8, %p6787_p6 }
  0x4f   : > { %p6783_p5 = pneg %p6782_p4 }
  0x51   : > { %p6790_p12 = pnand %p6789_p10, %p6783_p5 }
  0x53   : > { %6793 = shalt.err (!%p6790_p12)
}
  0x54   : > { %s6956_s5 = smov 128   ;;  %s6957_s18 = smov 8  }
  0x55   : > { %6027 = dma.hbm_to_vmem [thread:$0]  (!%p7085_p13), %s9436_s3, 4096, %s7089_s16, [#allocation8], %s6956_s5, %s6956_s5, %s6957_s18  }
  0x56   : > { %s31_s21 = sadd.s32 1, %s6942_s26  ;;  %s34_s7 = sadd.s32 1, %s6946_s27 }
  0x57   : > { %p32_p2 = scmp.ge.s32.totalorder %s31_s21, 2  ;;  %s41_s10 = sadd.s32 1, %s6930_s23 }
  0x58   : > { %p48_p0 = scmp.ne.s32.totalorder %s6930_s23, %s6926_s22  ;;  %p49_p1 = scmp.eq.s32.totalorder %s6950_s28, 0 }
  0x59   : > { %s9526_s21 = smov (%p32_p2, %s31_s21), 0  ;;  %s9528_s7 = smov (!%p32_p2, %s34_s7), %s6946_s27 }
  0x5a   : > { %9437 = sst [smem:[#allocation18_spill]] %s9526_s21  ;;  %p7147_p3 = por %p49_p1, %p48_p0 }
  0x5b   : > { %s149_s29 = ssub.s32 %s6942_s26, %s9526_s21  ;;  %p36_p13 = scmp.ge.s32.totalorder %s9528_s7, 2 }
  0x5c   : > { %p6038_p7 = scmp.lt.s32.totalorder %s6950_s28, 4  ;;  %s222_s16 = sand.u32 1, %s6930_s23  }
  0x5d   : > { %s5470_s30 = sshll.u32 %s6946_s27, 13  ;;  %s9530_s7 = smov (%p36_p13, %s9528_s7), 0 }
  0x5e   : > { %s5259_s12 = sshll.u32 %s222_s16, 9  ;;  %s38_s15 = ssub.s32 %s6946_s27, %s9530_s7 }
  0x5f   : > { %p39_p9 = scmp.eq.s32.totalorder %s38_s15, 0  ;;  %s150_s13 = sor.u32 %s149_s29, %s38_s15 }
  0x60   : > { %p151_p11 = scmp.eq.s32.totalorder %s150_s13, 0  ;;  %s7163_s9 = scalar_lea.hbm %s9379_s0, %s5470_s30 }
  0x61   : > { %s7166_s17 = scalar_select %p39_p9, %s6930_s23, %s41_s10  }
  0x62   : > { %s9439_s1 = sadd.s32 1, %s6918_s20  ;;  %s226_s21 = scalar_lea.vmem [#allocation4], %s5259_s12 }
  0x63   : > { %s7171_s3 = scalar_select %p151_p11, %s6918_s20, %s9439_s1  }
  0x64   : > { %s233_s26 = sshll.u32 %s226_s21, 4  ;;  %p7177_p4 = pnand %p6038_p7, %p7147_p3  ;;  %s7181_s26 = int_to_ptr.vmem [resolvable:$true] %s233_s26 }
  0x65   : > { %s7183_s30 = scalar_lea.sflag [#allocation5], %s222_s16  ;;  %s6794_s10 = scalar_lea.hbm %s7163_s9, 8192 }
  0x66   : > { %p6795_p5 = scmp.ne.s32.totalorder %s7163_s9, %s6794_s10  ;;  %p6796_p6 = pneg %p7177_p4 }
  0x67   : > { %s6799_s14 = scalar_lea.hbm %s9379_s0, 16384  ;;  %p6800_p12 = scmp.lt.u32.totalorder %s7163_s9, %s9379_s0 }
  0x68   : > { %p6797_p8 = pnand %p6796_p6, %p6795_p5  ;;  %p6801_p2 = scmp.lt.u32.totalorder %s6799_s14, %s6794_s10 }
  0x69   : > { %p6803_p1 = scmp.lt.u32.totalorder %s6794_s10, %s7163_s9 }
  0x6a   : > { %p6798_p10 = pneg %p6797_p8  ;;  %p6802_p0 = por %p6801_p2, %p6800_p12 }
  0x6c   : > { %p6804_p3 = por %p6803_p1, %p6802_p0 }
  0x6e   : > { %p6805_p13 = pnand %p6804_p3, %p6798_p10 }
  0x70   : > { %6808 = shalt.err (!%p6805_p13)
}
  0x71   : > { %s6809_s16 = scalar_lea.vmem %s7181_s26, 8192  ;;  %s6958_s13 = smov [#allocation4]  }
  0x72   : > { %p6810_p7 = scmp.ne.s32.totalorder %s7181_s26, %s6809_s16  ;;  %s6814_s5 = sshll.u32 %s6958_s13, 4  ;;  %s6815_s5 = int_to_ptr.vmem [resolvable:$false] %s6814_s5 }
  0x73   : > { %s6816_s18 = scalar_lea.vmem %s6815_s5, 16384  ;;  %p6817_p5 = scmp.lt.s32.totalorder %s7181_s26, %s6815_s5 }
  0x74   : > { %p6812_p9 = pnand %p6810_p7, %p6796_p6  ;;  %p6818_p8 = scmp.lt.s32.totalorder %s6816_s18, %s6809_s16 }
  0x76   : > { %p6813_p11 = pneg %p6812_p9  ;;  %p6819_p12 = por %p6818_p8, %p6817_p5 }
  0x78   : > { %p6820_p2 = pnand %p6819_p12, %p6813_p11 }
  0x7a   : > { %6823 = shalt.err (!%p6820_p2)
}
  0x7b   : > { %s6959_s10 = smov 256   ;;  %s6960_s1 = smov 16  }
  0x7c   : > { %6031 = dma.hbm_to_vmem [thread:$0]  (!%p7177_p4), %s7163_s9, 8192, %s7181_s26, %s7183_s30, %s6959_s10, %s6959_s10, %s6960_s1  }
  0x7d   : > { %p9441_p6 = scmp.ne.s32.totalorder %s9433_s11, 0 }
  0x7f   : > { %245 = sbr.rel (%p9441_p6) target bundleno = 3947 (0xf6b), region = 40 }
  0x86   : > { %s247_s21 = sand.u32 1, %s6926_s22   ;;  %p9442_p10 = scmp.ne.s32.totalorder %s9428_s8, 0 }
  0x87   : > { %s5263_s14 = sshll.u32 %s247_s21, 9  ;;  %s248_s12 = scalar_lea.sflag [#allocation5], %s247_s21 }
  0x88   : > { %s7214_s15 = scalar_lea.vmem [#allocation4], %s5263_s14 }
  0x89   : > { %6897 = dma.done.wait (%p9442_p10), %s248_s12, 8192  }
  0x8a   : > { %6899 = vsyncadd (%p9442_p10), %s248_s12, 4294959104  ;;  %p9443_p0 = scmp.ne.s32.totalorder %s9427_s6, 0 }
  0x8c   : > { %6901 = dma.done.wait (%p9443_p0), [#allocation8], 16384  }
  0x8d   : > { %6903 = vsyncadd (%p9443_p0), [#allocation8], 4294950912  ;;  %s283_s26 = sand.u32 1, %s6914_s19   ;;  %p5267_p4 = scmp.ne.s32.totalorder %s6934_s24, 0 }
  0x8e   : > { %s5266_s11 = sshll.u32 %s283_s26, 8  ;;  %v6142_v0 = vld [vmem:[#allocation7 + $0xc] ss:$24 sps:$4 sm:$0xff] (!%p5267_p4)   ;;  %v6146_v2 = vld [vmem:[#allocation7 + $0x8] ss:$24 sps:$4 sm:$0xff] (!%p5267_p4)   ;;  %v295_v47 = vld [vmem:[%s7214_s15 + $0x18] sm:$0xff] (!%p5267_p4) }
  0x8f   : > { %s7227_s9 = scalar_lea.vmem [#allocation10], %s5266_s11  ;;  %291 = sbr.rel (%p5267_p4) target bundleno = 548 (0x224), region = 56  ;;  %v6144_v1 = vld [vmem:[#allocation7 + $0x14] ss:$24 sps:$4 sm:$0xff] (!%p5267_p4)   ;;  %794 = vmatprep.subr.bf16.mxu0 (!%p5267_p4), %v6142_v0  ;;  %v6147_v3 = vld [vmem:[#allocation7 + $0x10] ss:$24 sps:$4 sm:$0xff] (!%p5267_p4)  }
  0x90   : > { %987 = vmatprep.subr.bf16.mxu1 (!%p5267_p4), %v6144_v1  ;;  %v6148_v4 = vld [vmem:[#allocation7 + $0x3c] ss:$24 sps:$4 sm:$0xff] (!%p5267_p4)   ;;  %795 = vmatpush1.bf16.msra.mxu0 (!%p5267_p4), %v6146_v2  ;;  %v6152_v6 = vld [vmem:[#allocation7 + $0x38] ss:$24 sps:$4 sm:$0xff] (!%p5267_p4)   ;;  %v6154_v8 = vld [vmem:[#allocation7 + $0x6c] ss:$24 sps:$4 sm:$0xff] (!%p5267_p4)  }
  0x91   : > { %988 = vmatpush1.bf16.msra.mxu1 (!%p5267_p4), %v6147_v3  ;;  %v6150_v5 = vld [vmem:[#allocation7 + $0x44] ss:$24 sps:$4 sm:$0xff] (!%p5267_p4)   ;;  %796 = vmatprep.subr.bf16.mxu0 (!%p5267_p4), %v6148_v4  ;;  %v6153_v7 = vld [vmem:[#allocation7 + $0x40] ss:$24 sps:$4 sm:$0xff] (!%p5267_p4)   ;;  %v6156_v9 = vld [vmem:[#allocation7 + $0x74] ss:$24 sps:$4 sm:$0xff] (!%p5267_p4)  }
  0x92   : > { %989 = vmatprep.subr.bf16.mxu1 (!%p5267_p4), %v6150_v5  ;;  %v6158_v10 = vld [vmem:[#allocation7 + $0x68] ss:$24 sps:$4 sm:$0xff] (!%p5267_p4)   ;;  %v6160_v12 = vld [vmem:[#allocation7 + $0x9c] ss:$24 sps:$4 sm:$0xff] (!%p5267_p4)   ;;  %v6164_v14 = vld [vmem:[#allocation7 + $0x98] ss:$24 sps:$4 sm:$0xff] (!%p5267_p4)  }
  0x93   : > { %v6159_v11 = vld [vmem:[#allocation7 + $0x70] ss:$24 sps:$4 sm:$0xff] (!%p5267_p4)   ;;  %v6162_v13 = vld [vmem:[#allocation7 + $0xa4] ss:$24 sps:$4 sm:$0xff] (!%p5267_p4)   ;;  %v6165_v15 = vld [vmem:[#allocation7 + $0xa0] ss:$24 sps:$4 sm:$0xff] (!%p5267_p4)  }
  0x94   : > { %797 = vmatpush1.bf16.msra.mxu0 (!%p5267_p4), %v6152_v6  ;;  %v6166_v16 = vld [vmem:[#allocation7 + $0xcc] ss:$24 sps:$4 sm:$0xff] (!%p5267_p4)   ;;  %v6170_v18 = vld [vmem:[#allocation7 + $0xc8] ss:$24 sps:$4 sm:$0xff] (!%p5267_p4)   ;;  %v6172_v20 = vld [vmem:[#allocation7 + $0xfc] ss:$24 sps:$4 sm:$0xff] (!%p5267_p4)  }
  0x95   : > { %990 = vmatpush1.bf16.msra.mxu1 (!%p5267_p4), %v6153_v7  ;;  %798 = vmatprep.subr.bf16.mxu0 (!%p5267_p4), %v6154_v8  ;;  %v6168_v17 = vld [vmem:[#allocation7 + $0xd4] ss:$24 sps:$4 sm:$0xff] (!%p5267_p4)   ;;  %v6171_v19 = vld [vmem:[#allocation7 + $0xd0] ss:$24 sps:$4 sm:$0xff] (!%p5267_p4)   ;;  %v6174_v21 = vld [vmem:[#allocation7 + $0x104] ss:$24 sps:$4 sm:$0xff] (!%p5267_p4)  }
  0x96   : > { %991 = vmatprep.subr.bf16.mxu1 %v6156_v9  ;;  %v6176_v22 = vld [vmem:[#allocation7 + $0xf8] ss:$24 sps:$4 sm:$0xff]   ;;  %v6178_v24 = vld [vmem:[#allocation7 + $0x12c] ss:$24 sps:$4 sm:$0xff]   ;;  %v6182_v26 = vld [vmem:[#allocation7 + $0x128] ss:$24 sps:$4 sm:$0xff]  }
  0x97   : > { %v6177_v23 = vld [vmem:[#allocation7 + $0x100] ss:$24 sps:$4 sm:$0xff]   ;;  %v6180_v25 = vld [vmem:[#allocation7 + $0x134] ss:$24 sps:$4 sm:$0xff]   ;;  %v6183_v27 = vld [vmem:[#allocation7 + $0x130] ss:$24 sps:$4 sm:$0xff]  }
  0x98   : > { %799 = vmatpush1.bf16.msra.mxu0 %v6158_v10  ;;  %v6184_v28 = vld [vmem:[#allocation7 + $0x15c] ss:$24 sps:$4 sm:$0xff]   ;;  %v6188_v30 = vld [vmem:[#allocation7 + $0x158] ss:$24 sps:$4 sm:$0xff]   ;;  %v6190_v32 = vld [vmem:[#allocation7 + $0x18c] ss:$24 sps:$4 sm:$0xff]  }
  0x99   : > { %992 = vmatpush1.bf16.msra.mxu1 %v6159_v11  ;;  %800 = vmatprep.subr.bf16.mxu0 %v6160_v12  ;;  %v6186_v29 = vld [vmem:[#allocation7 + $0x164] ss:$24 sps:$4 sm:$0xff]   ;;  %v6189_v31 = vld [vmem:[#allocation7 + $0x160] ss:$24 sps:$4 sm:$0xff]   ;;  %v6192_v33 = vld [vmem:[#allocation7 + $0x194] ss:$24 sps:$4 sm:$0xff]  }
  0x9a   : > { %993 = vmatprep.subr.bf16.mxu1 %v6162_v13  ;;  %v6194_v34 = vld [vmem:[#allocation7 + $0x188] ss:$24 sps:$4 sm:$0xff]   ;;  %v6196_v36 = vld [vmem:[#allocation7 + $0x1bc] ss:$24 sps:$4 sm:$0xff]   ;;  %v6200_v38 = vld [vmem:[#allocation7 + $0x1b8] ss:$24 sps:$4 sm:$0xff]  }
  0x9b   : > { %v6195_v35 = vld [vmem:[#allocation7 + $0x190] ss:$24 sps:$4 sm:$0xff]   ;;  %v6198_v37 = vld [vmem:[#allocation7 + $0x1c4] ss:$24 sps:$4 sm:$0xff]   ;;  %v6201_v39 = vld [vmem:[#allocation7 + $0x1c0] ss:$24 sps:$4 sm:$0xff]  }
  0x9c   : > { %801 = vmatpush1.bf16.msra.mxu0 %v6164_v14  ;;  %v6202_v40 = vld [vmem:[#allocation7 + $0x1ec] ss:$24 sps:$4 sm:$0xff]   ;;  %v6206_v42 = vld [vmem:[#allocation7 + $0x1e8] ss:$24 sps:$4 sm:$0xff]   ;;  %v6208_v44 = vld [vmem:[#allocation7 + $0x21c] ss:$24 sps:$4 sm:$0xff]  }
  0x9d   : > { %994 = vmatpush1.bf16.msra.mxu1 %v6165_v15  ;;  %802 = vmatprep.subr.bf16.mxu0 %v6166_v16  ;;  %v6204_v41 = vld [vmem:[#allocation7 + $0x1f4] ss:$24 sps:$4 sm:$0xff]   ;;  %v6207_v43 = vld [vmem:[#allocation7 + $0x1f0] ss:$24 sps:$4 sm:$0xff]   ;;  %v6210_v45 = vld [vmem:[#allocation7 + $0x224] ss:$24 sps:$4 sm:$0xff]  }
  0x9e   : > { %995 = vmatprep.subr.bf16.mxu1 %v6168_v17  ;;  %v293_v46 = vld [vmem:[%s7214_s15 + $0x8] sm:$0xff]  ;;  %v6212_v48 = vld [vmem:[#allocation7 + $0x218] ss:$24 sps:$4 sm:$0xff]   ;;  %v6220_v55 = vld [vmem:[#allocation7 + $0x27c] ss:$24 sps:$4 sm:$0xff]  }
  0x9f   : > { %v6213_v49 = vld [vmem:[#allocation7 + $0x220] ss:$24 sps:$4 sm:$0xff]   ;;  %v357_v50 = vpack.c.bf16 %v295_v47, %v293_v46  ;;  %v6214_v51 = vld [vmem:[#allocation7 + $0x24c] ss:$24 sps:$4 sm:$0xff]   ;;  %v6219_v54 = vld [vmem:[#allocation7 + $0x250] ss:$24 sps:$4 sm:$0xff]  }
  0xa0   : > { %803 = vmatpush1.bf16.msra.mxu0 %v6170_v18  ;;  %v6216_v52 = vld [vmem:[#allocation7 + $0x254] ss:$24 sps:$4 sm:$0xff]   ;;  %v6218_v53 = vld [vmem:[#allocation7 + $0x248] ss:$24 sps:$4 sm:$0xff]   ;;  %v6222_v56 = vld [vmem:[#allocation7 + $0x284] ss:$24 sps:$4 sm:$0xff]  }
  0xa1   : > { %996 = vmatpush1.bf16.msra.mxu1 %v6171_v19  ;;  %804 = vmatprep.subr.bf16.mxu0 %v6172_v20  ;;  %v6224_v57 = vld [vmem:[#allocation7 + $0x278] ss:$24 sps:$4 sm:$0xff]   ;;  %v6226_v59 = vld [vmem:[#allocation7 + $0x2ac] ss:$24 sps:$4 sm:$0xff]   ;;  %v6230_v61 = vld [vmem:[#allocation7 + $0x2a8] ss:$24 sps:$4 sm:$0xff]  }
  0xa2   : > { %997 = vmatprep.subr.bf16.mxu1 %v6174_v21  ;;  %826 = vmatprep.mubr.bf16.mxu0 %v357_v50  ;;  %v6225_v58 = vld [vmem:[#allocation7 + $0x280] ss:$24 sps:$4 sm:$0xff]   ;;  %v6228_v60 = vld [vmem:[#allocation7 + $0x2b4] ss:$24 sps:$4 sm:$0xff]   ;;  %v6231_v62 = vld [vmem:[#allocation7 + $0x2b0] ss:$24 sps:$4 sm:$0xff]  }
  0xa3   : > { %1019 = vmatprep.mubr.bf16.mxu1 %v357_v50  ;;  %v6232_v63 = vld [vmem:[#allocation7 + $0x2dc] ss:$24 sps:$4 sm:$0xff]   ;;  %v6236_v1 = vld [vmem:[#allocation7 + $0x2d8] ss:$24 sps:$4 sm:$0xff]   ;;  %v292_v3 = vld [vmem:[%s7214_s15] sm:$0xff] }
  0xa4   : > { %805 = vmatpush1.bf16.msra.mxu0 %v6176_v22  ;;  %v6234_v0 = vld [vmem:[#allocation7 + $0x2e4] ss:$24 sps:$4 sm:$0xff]   ;;  %v6237_v2 = vld [vmem:[#allocation7 + $0x2e0] ss:$24 sps:$4 sm:$0xff]   ;;  %v294_v4 = vld [vmem:[%s7214_s15 + $0x10] sm:$0xff] }
  0xa5   : > { %998 = vmatpush1.bf16.msra.mxu1 %v6177_v23  ;;  %806 = vmatprep.subr.bf16.mxu0 %v6178_v24  ;;  %v297_v5 = vld [vmem:[%s7214_s15 + $0x28] sm:$0xff]  ;;  %v299_v6 = vld [vmem:[%s7214_s15 + $0x38] sm:$0xff]  ;;  %v356_v7 = vpack.c.bf16 %v294_v4, %v292_v3  ;;  %v296_v9 = vld [vmem:[%s7214_s15 + $0x20] sm:$0xff] }
  0xa6   : > { %999 = vmatprep.subr.bf16.mxu1 %v6180_v25  ;;  %v359_v8 = vpack.c.bf16 %v299_v6, %v297_v5  ;;  %v298_v10 = vld [vmem:[%s7214_s15 + $0x30] sm:$0xff]  ;;  %v301_v11 = vld [vmem:[%s7214_s15 + $0x48] sm:$0xff]  ;;  %v303_v12 = vld [vmem:[%s7214_s15 + $0x58] sm:$0xff] }
  0xa7   : > { %v358_v13 = vpack.c.bf16 %v298_v10, %v296_v9  ;;  %v361_v14 = vpack.c.bf16 %v303_v12, %v301_v11  ;;  %v300_v15 = vld [vmem:[%s7214_s15 + $0x40] sm:$0xff]  ;;  %v302_v16 = vld [vmem:[%s7214_s15 + $0x50] sm:$0xff]  ;;  %v305_v17 = vld [vmem:[%s7214_s15 + $0x68] sm:$0xff] }
  0xa8   : > { %807 = vmatpush1.bf16.msra.mxu0 %v6182_v26  ;;  %v307_v18 = vld [vmem:[%s7214_s15 + $0x78] sm:$0xff]  ;;  %v360_v19 = vpack.c.bf16 %v302_v16, %v300_v15  ;;  %v304_v21 = vld [vmem:[%s7214_s15 + $0x60] sm:$0xff]  ;;  %v306_v22 = vld [vmem:[%s7214_s15 + $0x70] sm:$0xff] }
  0xa9   : > { %1000 = vmatpush1.bf16.msra.mxu1 %v6183_v27  ;;  %808 = vmatprep.subr.bf16.mxu0 %v6184_v28  ;;  %v363_v20 = vpack.c.bf16 %v307_v18, %v305_v17  ;;  %v309_v23 = vld [vmem:[%s7214_s15 + $0x88] sm:$0xff]  ;;  %v311_v24 = vld [vmem:[%s7214_s15 + $0x98] sm:$0xff]  ;;  %v362_v25 = vpack.c.bf16 %v306_v22, %v304_v21  ;;  %v308_v27 = vld [vmem:[%s7214_s15 + $0x80] sm:$0xff] }
  0xaa   : > { %1001 = vmatprep.subr.bf16.mxu1 %v6186_v29  ;;  %v365_v26 = vpack.c.bf16 %v311_v24, %v309_v23  ;;  %v310_v28 = vld [vmem:[%s7214_s15 + $0x90] sm:$0xff]  ;;  %v313_v29 = vld [vmem:[%s7214_s15 + $0xa8] sm:$0xff]  ;;  %v336_v5 = vld [vmem:[%s7214_s15 + $0x160] sm:$0xff] }
  0xab   : > { %v322_v46 = vld [vmem:[%s7214_s15 + $0xf0] sm:$0xff]  ;;  %v325_v47 = vld [vmem:[%s7214_s15 + $0x108] sm:$0xff]  ;;  %v340_v11 = vld [vmem:[%s7214_s15 + $0x180] sm:$0xff] }
  0xac   : > { %809 = vmatpush1.bf16.msra.mxu0 %v6188_v30  ;;  %v315_v30 = vld [vmem:[%s7214_s15 + $0xb8] sm:$0xff]  ;;  %v338_v6 = vld [vmem:[%s7214_s15 + $0x170] sm:$0xff]  ;;  %v344_v17 = vld [vmem:[%s7214_s15 + $0x1a0] sm:$0xff] }
  0xad   : > { %1002 = vmatpush1.bf16.msra.mxu1 %v6189_v31  ;;  %810 = vmatprep.subr.bf16.mxu0 %v6190_v32  ;;  %v364_v31 = vpack.c.bf16 %v310_v28, %v308_v27  ;;  %v367_v32 = vpack.c.bf16 %v315_v30, %v313_v29  ;;  %v378_v9 = vpack.c.bf16 %v338_v6, %v336_v5  ;;  %v342_v12 = vld [vmem:[%s7214_s15 + $0x190] sm:$0xff]  ;;  %v348_v23 = vld [vmem:[%s7214_s15 + $0x1c0] sm:$0xff] }
  0xae   : > { %1003 = vmatprep.subr.bf16.mxu1 %v6192_v33  ;;  %v312_v33 = vld [vmem:[%s7214_s15 + $0xa0] sm:$0xff]  ;;  %v380_v15 = vpack.c.bf16 %v342_v12, %v340_v11  ;;  %v346_v18 = vld [vmem:[%s7214_s15 + $0x1b0] sm:$0xff] }
  0xaf   : > { %v382_v21 = vpack.c.bf16 %v346_v18, %v344_v17  ;;  %v350_v24 = vld [vmem:[%s7214_s15 + $0x1d0] sm:$0xff]  ;;  %v352_v29 = vld [vmem:[%s7214_s15 + $0x1e0] sm:$0xff] }
  0xb0   : > { %811 = vmatpush1.bf16.msra.mxu0 %v6194_v34  ;;  %v314_v34 = vld [vmem:[%s7214_s15 + $0xb0] sm:$0xff]  ;;  %v384_v27 = vpack.c.bf16 %v350_v24, %v348_v23 }
  0xb1   : > { %1004 = vmatpush1.bf16.msra.mxu1 %v6195_v35  ;;  %812 = vmatprep.subr.bf16.mxu0 %v6196_v36  ;;  %v317_v35 = vld [vmem:[%s7214_s15 + $0xc8] sm:$0xff]  ;;  %v319_v36 = vld [vmem:[%s7214_s15 + $0xd8] sm:$0xff]  ;;  %v354_v30 = vld [vmem:[%s7214_s15 + $0x1f0] sm:$0xff] }
  0xb2   : > { %1005 = vmatprep.subr.bf16.mxu1 %v6198_v37  ;;  %v366_v37 = vpack.c.bf16 %v314_v34, %v312_v33 }
  0xb4   : > { %813 = vmatpush1.bf16.msra.mxu0 %v6200_v38  ;;  %v369_v38 = vpack.c.bf16 %v319_v36, %v317_v35  ;;  %v452_v36 = vld [vmem:[%s9381_s2 + $0x2] sm:$0xf] }
  0xb5   : > { %1006 = vmatpush1.bf16.msra.mxu1 %v6201_v39  ;;  %814 = vmatprep.subr.bf16.mxu0 %v6202_v40  ;;  %v316_v39 = vld [vmem:[%s7214_s15 + $0xc0] sm:$0xff]  ;;  %v318_v40 = vld [vmem:[%s7214_s15 + $0xd0] sm:$0xff] }
  0xb6   : > { %1007 = vmatprep.subr.bf16.mxu1 %v6204_v41  ;;  %v321_v41 = vld [vmem:[%s7214_s15 + $0xe8] sm:$0xff] }
  0xb8   : > { %815 = vmatpush1.bf16.msra.mxu0 %v6206_v42  ;;  %v323_v42 = vld [vmem:[%s7214_s15 + $0xf8] sm:$0xff] }
  0xb9   : > { %1008 = vmatpush1.bf16.msra.mxu1 %v6207_v43  ;;  %816 = vmatprep.subr.bf16.mxu0 %v6208_v44  ;;  %v368_v43 = vpack.c.bf16 %v318_v40, %v316_v39  ;;  %v371_v44 = vpack.c.bf16 %v323_v42, %v321_v41 }
  0xba   : > { %1009 = vmatprep.subr.bf16.mxu1 %v6210_v45  ;;  %v320_v45 = vld [vmem:[%s7214_s15 + $0xe0] sm:$0xff] }
  0xbc   : > { %817 = vmatpush1.bf16.msra.mxu0 %v6212_v48  ;;  %v327_v48 = vld [vmem:[%s7214_s15 + $0x118] sm:$0xff] }
  0xbd   : > { %1010 = vmatpush1.bf16.msra.mxu1 %v6213_v49  ;;  %818 = vmatprep.subr.bf16.mxu0 %v6214_v51  ;;  %v370_v49 = vpack.c.bf16 %v322_v46, %v320_v45  ;;  %v373_v50 = vpack.c.bf16 %v327_v48, %v325_v47  ;;  %v324_v51 = vld [vmem:[%s7214_s15 + $0x100] sm:$0xff] }
  0xbe   : > { %1011 = vmatprep.subr.bf16.mxu1 %v6216_v52  ;;  %v326_v52 = vld [vmem:[%s7214_s15 + $0x110] sm:$0xff] }
  0xc0   : > { %819 = vmatpush1.bf16.msra.mxu0 %v6218_v53  ;;  %v329_v53 = vld [vmem:[%s7214_s15 + $0x128] sm:$0xff] }
  0xc1   : > { %1012 = vmatpush1.bf16.msra.mxu1 %v6219_v54  ;;  %820 = vmatprep.subr.bf16.mxu0 %v6220_v55  ;;  %v331_v54 = vld [vmem:[%s7214_s15 + $0x138] sm:$0xff]  ;;  %v372_v55 = vpack.c.bf16 %v326_v52, %v324_v51 }
  0xc2   : > { %1013 = vmatprep.subr.bf16.mxu1 %v6222_v56  ;;  %v375_v56 = vpack.c.bf16 %v331_v54, %v329_v53 }
  0xc4   : > { %821 = vmatpush1.bf16.msra.mxu0 %v6224_v57  ;;  %v328_v57 = vld [vmem:[%s7214_s15 + $0x120] sm:$0xff] }
  0xc5   : > { %1014 = vmatpush1.bf16.msra.mxu1 %v6225_v58  ;;  %822 = vmatprep.subr.bf16.mxu0 %v6226_v59  ;;  %v330_v58 = vld [vmem:[%s7214_s15 + $0x130] sm:$0xff]  ;;  %v333_v59 = vld [vmem:[%s7214_s15 + $0x148] sm:$0xff] }
  0xc6   : > { %1015 = vmatprep.subr.bf16.mxu1 %v6228_v60  ;;  %v335_v60 = vld [vmem:[%s7214_s15 + $0x158] sm:$0xff] }
  0xc8   : > { %823 = vmatpush1.bf16.msra.mxu0 %v6230_v61  ;;  %v374_v61 = vpack.c.bf16 %v330_v58, %v328_v57 }
  0xc9   : > { %1016 = vmatpush1.bf16.msra.mxu1 %v6231_v62  ;;  %824 = vmatprep.subr.bf16.mxu0 %v6232_v63  ;;  %v377_v62 = vpack.c.bf16 %v335_v60, %v333_v59  ;;  %v332_v63 = vld [vmem:[%s7214_s15 + $0x140] sm:$0xff] }
  0xca   : > { %1017 = vmatprep.subr.bf16.mxu1 %v6234_v0  ;;  %v334_v0 = vld [vmem:[%s7214_s15 + $0x150] sm:$0xff] }
  0xcb   : > { %v376_v3 = vpack.c.bf16 %v334_v0, %v332_v63 }
  0xcc   : > { %825 = vmatpush1.bf16.msra.mxu0 %v6236_v1  ;;  %v337_v1 = vld [vmem:[%s7214_s15 + $0x168] sm:$0xff] }
  0xcd   : > { %1018 = vmatpush1.bf16.msra.mxu1 %v6237_v2  ;;  %v339_v2 = vld [vmem:[%s7214_s15 + $0x178] sm:$0xff] }
  0xce   : > { %v379_v4 = vpack.c.bf16 %v339_v2, %v337_v1 }
  0xcf   : > { %827 = vmatmul.mubr.bf16.vlgmr.msra.gmra.mrb[0].mxu0 %v356_v7 }
  0xd0   : > { %1020 = vmatmul.mubr.bf16.vlgmr.msra.gmra.mrb[0].mxu1 %v356_v7  ;;  %836 = vmatprep.mubr.bf16.mxu0 %v359_v8  ;;  %v341_v7 = vld [vmem:[%s7214_s15 + $0x188] sm:$0xff] }
  0xd1   : > { %1029 = vmatprep.mubr.bf16.mxu1 %v359_v8  ;;  %v343_v8 = vld [vmem:[%s7214_s15 + $0x198] sm:$0xff] }
  0xd2   : > { %v381_v10 = vpack.c.bf16 %v343_v8, %v341_v7 }
  0xd7   : > { %837 = vmatmul.mubr.bf16.gmra.mrb[4].mxu0 %v358_v13 }
  0xd8   : > { %1030 = vmatmul.mubr.bf16.gmra.mrb[4].mxu1 %v358_v13  ;;  %846 = vmatprep.mubr.bf16.mxu0 %v361_v14  ;;  %v345_v13 = vld [vmem:[%s7214_s15 + $0x1a8] sm:$0xff] }
  0xd9   : > { %1039 = vmatprep.mubr.bf16.mxu1 %v361_v14  ;;  %v347_v14 = vld [vmem:[%s7214_s15 + $0x1b8] sm:$0xff] }
  0xda   : > { %v383_v16 = vpack.c.bf16 %v347_v14, %v345_v13 }
  0xdf   : > { %847 = vmatmul.mubr.bf16.gmra.mrb[8].mxu0 %v360_v19 }
  0xe0   : > { %1040 = vmatmul.mubr.bf16.gmra.mrb[8].mxu1 %v360_v19  ;;  %856 = vmatprep.mubr.bf16.mxu0 %v363_v20  ;;  %v349_v19 = vld [vmem:[%s7214_s15 + $0x1c8] sm:$0xff] }
  0xe1   : > { %1049 = vmatprep.mubr.bf16.mxu1 %v363_v20  ;;  %v351_v20 = vld [vmem:[%s7214_s15 + $0x1d8] sm:$0xff] }
  0xe2   : > { %v385_v22 = vpack.c.bf16 %v351_v20, %v349_v19 }
  0xe7   : > { %857 = vmatmul.mubr.bf16.gmra.mrb[12].mxu0 %v362_v25 }
  0xe8   : > { %1050 = vmatmul.mubr.bf16.gmra.mrb[12].mxu1 %v362_v25  ;;  %866 = vmatprep.mubr.bf16.mxu0 %v365_v26  ;;  %v353_v25 = vld [vmem:[%s7214_s15 + $0x1e8] sm:$0xff] }
  0xe9   : > { %1059 = vmatprep.mubr.bf16.mxu1 %v365_v26  ;;  %v355_v26 = vld [vmem:[%s7214_s15 + $0x1f8] sm:$0xff] }
  0xea   : > { %v387_v28 = vpack.c.bf16 %v355_v26, %v353_v25 }
  0xef   : > { %867 = vmatmul.mubr.bf16.gmra.mrb[16].mxu0 %v364_v31 }
  0xf0   : > { %1060 = vmatmul.mubr.bf16.gmra.mrb[16].mxu1 %v364_v31  ;;  %876 = vmatprep.mubr.bf16.mxu0 %v367_v32  ;;  %v386_v31 = vpack.c.bf16 %v354_v30, %v352_v29 }
  0xf1   : > { %1069 = vmatprep.mubr.bf16.mxu1 %v367_v32  ;;  %v454_v32 = vlaneseq }
  0xf3   : > { %v455_v33 = vshrl.u32 %v454_v32, 7 }
  0xf5   : > { %v456_v34 = vsub.s32 0, %v455_v33  ;;  %v464_v35 = vsub.s32 2, %v455_v33 }
  0xf7   : > { %877 = vmatmul.mubr.bf16.gmra.mrb[20].mxu0 %v366_v37  ;;  %v7297_v39 = vrot.slane %v452_v36, %v456_v34  ;;  %v7299_v40 = vrot.slane %v452_v36, %v464_v35 }
  0xf8   : > { %1070 = vmatmul.mubr.bf16.gmra.mrb[20].mxu1 %v366_v37  ;;  %886 = vmatprep.mubr.bf16.mxu0 %v369_v38  ;;  %v460_v37 = vsub.s32 1, %v455_v33 }
  0xf9   : > { %1079 = vmatprep.mubr.bf16.mxu1 %v369_v38  ;;  %v468_v38 = vsub.s32 3, %v455_v33 }
  0xff   : > { %887 = vmatmul.mubr.bf16.gmra.mrb[24].mxu0 %v368_v43 }
 0x100   : > { %1080 = vmatmul.mubr.bf16.gmra.mrb[24].mxu1 %v368_v43  ;;  %896 = vmatprep.mubr.bf16.mxu0 %v371_v44  ;;  %v7301_v43 = vrot.slane %v452_v36, %v460_v37 }
 0x101   : > { %1089 = vmatprep.mubr.bf16.mxu1 %v371_v44  ;;  %v7303_v44 = vrot.slane %v452_v36, %v468_v38 }
 0x107   : > { %897 = vmatmul.mubr.bf16.gmra.mrb[28].mxu0 %v370_v49 }
 0x108   : > { %1090 = vmatmul.mubr.bf16.gmra.mrb[28].mxu1 %v370_v49  ;;  %906 = vmatprep.mubr.bf16.mxu0 %v373_v50 }
 0x109   : > { %1099 = vmatprep.mubr.bf16.mxu1 %v373_v50 }
 0x10f   : > { %907 = vmatmul.mubr.bf16.gmra.mrb[32].mxu0 %v372_v55 }
 0x110   : > { %1100 = vmatmul.mubr.bf16.gmra.mrb[32].mxu1 %v372_v55  ;;  %916 = vmatprep.mubr.bf16.mxu0 %v375_v56 }
 0x111   : > { %1109 = vmatprep.mubr.bf16.mxu1 %v375_v56 }
 0x117   : > { %917 = vmatmul.mubr.bf16.gmra.mrb[36].mxu0 %v374_v61 }
 0x118   : > { %1110 = vmatmul.mubr.bf16.gmra.mrb[36].mxu1 %v374_v61  ;;  %926 = vmatprep.mubr.bf16.mxu0 %v377_v62 }
 0x119   : > { %1119 = vmatprep.mubr.bf16.mxu1 %v377_v62 }
 0x11f   : > { %927 = vmatmul.mubr.bf16.gmra.mrb[40].mxu0 %v376_v3 }
 0x120   : > { %1120 = vmatmul.mubr.bf16.gmra.mrb[40].mxu1 %v376_v3  ;;  %936 = vmatprep.mubr.bf16.mxu0 %v379_v4 }
 0x121   : > { %1129 = vmatprep.mubr.bf16.mxu1 %v379_v4 }
 0x127   : > { %937 = vmatmul.mubr.bf16.gmra.mrb[44].mxu0 %v378_v9 }
 0x128   : > { %1130 = vmatmul.mubr.bf16.gmra.mrb[44].mxu1 %v378_v9  ;;  %946 = vmatprep.mubr.bf16.mxu0 %v381_v10 }
 0x129   : > { %1139 = vmatprep.mubr.bf16.mxu1 %v381_v10 }
 0x12f   : > { %947 = vmatmul.mubr.bf16.gmra.mrb[48].mxu0 %v380_v15 }
 0x130   : > { %1140 = vmatmul.mubr.bf16.gmra.mrb[48].mxu1 %v380_v15  ;;  %956 = vmatprep.mubr.bf16.mxu0 %v383_v16 }
 0x131   : > { %1149 = vmatprep.mubr.bf16.mxu1 %v383_v16 }
 0x137   : > { %957 = vmatmul.mubr.bf16.gmra.mrb[52].mxu0 %v382_v21 }
 0x138   : > { %1150 = vmatmul.mubr.bf16.gmra.mrb[52].mxu1 %v382_v21  ;;  %966 = vmatprep.mubr.bf16.mxu0 %v385_v22 }
 0x139   : > { %1159 = vmatprep.mubr.bf16.mxu1 %v385_v22 }
 0x13f   : > { %967 = vmatmul.mubr.bf16.gmra.mrb[56].mxu0 %v384_v27 }
 0x140   : > { %1160 = vmatmul.mubr.bf16.gmra.mrb[56].mxu1 %v384_v27  ;;  %976 = vmatprep.mubr.bf16.mxu0 %v387_v28 }
 0x141   : > { %1169 = vmatprep.mubr.bf16.mxu1 %v387_v28 }
 0x147   : > { %977 = vmatmul.mubr.bf16.gmra.mrb[60].mxu0 %v386_v31 }
 0x148   : > { %1170 = vmatmul.mubr.bf16.gmra.mrb[60].mxu1 %v386_v31 }
 0x1a2   : > { %v828_v41 = vpop.f32.mrb[0].mxu0 }
 0x1a3   : > { %v1021_v42 = vpop.f32.mrb[0].mxu1  ;;  %v830_v45 = vpop.f32.mrb[1].mxu0  ;;  %v829_v49 = vadd.f32 %v828_v41, %v7297_v39 }
 0x1a4   : > { %v1023_v46 = vpop.f32.mrb[1].mxu1  ;;  %v832_v47 = vpop.f32.mrb[2].mxu0  ;;  %v1022_v50 = vadd.f32 %v1021_v42, %v7299_v40  ;;  %v831_v55 = vadd.f32 %v830_v45, %v7301_v43 }
 0x1a5   : > { %v1025_v48 = vpop.f32.mrb[2].mxu1  ;;  %v833_v51 = vadd.f32 %v832_v47, %v7297_v39  ;;  %v834_v53 = vpop.f32.mrb[3].mxu0  ;;  %v1024_v56 = vadd.f32 %v1023_v46, %v7303_v44 }
 0x1a6   : > { %v1026_v52 = vadd.f32 %v1025_v48, %v7299_v40  ;;  %v1027_v54 = vpop.f32.mrb[3].mxu1  ;;  %v835_v57 = vadd.f32 %v834_v53, %v7301_v43 }
 0x1a7   : > { %v1028_v58 = vadd.f32 %v1027_v54, %v7303_v44  ;;  %v1180_v59 = vpack.c.bf16 %v833_v51, %v829_v49 }
 0x1a8   : > { %v1244_v60 = vpack.c.bf16 %v1026_v52, %v1022_v50  ;;  %v1181_v61 = vpack.c.bf16 %v835_v57, %v831_v55 }
 0x1a9   : > { %v1245_v62 = vpack.c.bf16 %v1028_v58, %v1024_v56  ;;  %1212 = vst [vmem:[#allocation2] sm:$0xff] %v1180_v59 }
 0x1aa   : > { %1276 = vst [vmem:[#allocation3] sm:$0xff] %v1244_v60  ;;  %1213 = vst [vmem:[#allocation2 + $0x8] sm:$0xff] %v1181_v61  ;;  %v838_v63 = vpop.f32.mrb[4].mxu0 }
 0x1ab   : > { %1277 = vst [vmem:[#allocation3 + $0x8] sm:$0xff] %v1245_v62  ;;  %v1031_v0 = vpop.f32.mrb[4].mxu1  ;;  %v840_v1 = vpop.f32.mrb[5].mxu0  ;;  %v839_v5 = vadd.f32 %v838_v63, %v7297_v39 }
 0x1ac   : > { %v1033_v2 = vpop.f32.mrb[5].mxu1  ;;  %v842_v3 = vpop.f32.mrb[6].mxu0  ;;  %v1032_v6 = vadd.f32 %v1031_v0, %v7299_v40  ;;  %v841_v11 = vadd.f32 %v840_v1, %v7301_v43 }
 0x1ad   : > { %v1035_v4 = vpop.f32.mrb[6].mxu1  ;;  %v843_v7 = vadd.f32 %v842_v3, %v7297_v39  ;;  %v844_v9 = vpop.f32.mrb[7].mxu0  ;;  %v1034_v12 = vadd.f32 %v1033_v2, %v7303_v44 }
 0x1ae   : > { %v1036_v8 = vadd.f32 %v1035_v4, %v7299_v40  ;;  %v1037_v10 = vpop.f32.mrb[7].mxu1  ;;  %v845_v13 = vadd.f32 %v844_v9, %v7301_v43 }
 0x1af   : > { %v1038_v14 = vadd.f32 %v1037_v10, %v7303_v44  ;;  %v1182_v15 = vpack.c.bf16 %v843_v7, %v839_v5 }
 0x1b0   : > { %v1246_v16 = vpack.c.bf16 %v1036_v8, %v1032_v6  ;;  %v1183_v17 = vpack.c.bf16 %v845_v13, %v841_v11 }
 0x1b1   : > { %v1247_v18 = vpack.c.bf16 %v1038_v14, %v1034_v12  ;;  %1214 = vst [vmem:[#allocation2 + $0x10] sm:$0xff] %v1182_v15 }
 0x1b2   : > { %1278 = vst [vmem:[#allocation3 + $0x10] sm:$0xff] %v1246_v16  ;;  %1215 = vst [vmem:[#allocation2 + $0x18] sm:$0xff] %v1183_v17  ;;  %v848_v19 = vpop.f32.mrb[8].mxu0 }
 0x1b3   : > { %1279 = vst [vmem:[#allocation3 + $0x18] sm:$0xff] %v1247_v18  ;;  %v1041_v20 = vpop.f32.mrb[8].mxu1  ;;  %v850_v21 = vpop.f32.mrb[9].mxu0  ;;  %v849_v25 = vadd.f32 %v848_v19, %v7297_v39 }
 0x1b4   : > { %v1043_v22 = vpop.f32.mrb[9].mxu1  ;;  %v852_v23 = vpop.f32.mrb[10].mxu0  ;;  %v1042_v26 = vadd.f32 %v1041_v20, %v7299_v40  ;;  %v851_v31 = vadd.f32 %v850_v21, %v7301_v43 }
 0x1b5   : > { %v1045_v24 = vpop.f32.mrb[10].mxu1  ;;  %v853_v27 = vadd.f32 %v852_v23, %v7297_v39  ;;  %v854_v29 = vpop.f32.mrb[11].mxu0  ;;  %v1044_v32 = vadd.f32 %v1043_v22, %v7303_v44 }
 0x1b6   : > { %v1046_v28 = vadd.f32 %v1045_v24, %v7299_v40  ;;  %v1047_v30 = vpop.f32.mrb[11].mxu1  ;;  %v855_v33 = vadd.f32 %v854_v29, %v7301_v43 }
 0x1b7   : > { %v1048_v34 = vadd.f32 %v1047_v30, %v7303_v44  ;;  %v1184_v35 = vpack.c.bf16 %v853_v27, %v849_v25 }
 0x1b8   : > { %v1248_v36 = vpack.c.bf16 %v1046_v28, %v1042_v26  ;;  %v1185_v37 = vpack.c.bf16 %v855_v33, %v851_v31 }
 0x1b9   : > { %v1249_v38 = vpack.c.bf16 %v1048_v34, %v1044_v32  ;;  %1216 = vst [vmem:[#allocation2 + $0x20] sm:$0xff] %v1184_v35 }
 0x1ba   : > { %1280 = vst [vmem:[#allocation3 + $0x20] sm:$0xff] %v1248_v36  ;;  %1217 = vst [vmem:[#allocation2 + $0x28] sm:$0xff] %v1185_v37  ;;  %v858_v41 = vpop.f32.mrb[12].mxu0 }
 0x1bb   : > { %1281 = vst [vmem:[#allocation3 + $0x28] sm:$0xff] %v1249_v38  ;;  %v1051_v42 = vpop.f32.mrb[12].mxu1  ;;  %v860_v45 = vpop.f32.mrb[13].mxu0  ;;  %v859_v49 = vadd.f32 %v858_v41, %v7297_v39 }
 0x1bc   : > { %v1053_v46 = vpop.f32.mrb[13].mxu1  ;;  %v862_v47 = vpop.f32.mrb[14].mxu0  ;;  %v1052_v50 = vadd.f32 %v1051_v42, %v7299_v40  ;;  %v861_v55 = vadd.f32 %v860_v45, %v7301_v43 }
 0x1bd   : > { %v1055_v48 = vpop.f32.mrb[14].mxu1  ;;  %v863_v51 = vadd.f32 %v862_v47, %v7297_v39  ;;  %v864_v53 = vpop.f32.mrb[15].mxu0  ;;  %v1054_v56 = vadd.f32 %v1053_v46, %v7303_v44 }
 0x1be   : > { %v1056_v52 = vadd.f32 %v1055_v48, %v7299_v40  ;;  %v1057_v54 = vpop.f32.mrb[15].mxu1  ;;  %v865_v57 = vadd.f32 %v864_v53, %v7301_v43 }
 0x1bf   : > { %v1058_v58 = vadd.f32 %v1057_v54, %v7303_v44  ;;  %v1186_v59 = vpack.c.bf16 %v863_v51, %v859_v49 }
 0x1c0   : > { %v1250_v60 = vpack.c.bf16 %v1056_v52, %v1052_v50  ;;  %v1187_v61 = vpack.c.bf16 %v865_v57, %v861_v55 }
 0x1c1   : > { %v1251_v62 = vpack.c.bf16 %v1058_v58, %v1054_v56  ;;  %1218 = vst [vmem:[#allocation2 + $0x30] sm:$0xff] %v1186_v59 }
 0x1c2   : > { %1282 = vst [vmem:[#allocation3 + $0x30] sm:$0xff] %v1250_v60  ;;  %1219 = vst [vmem:[#allocation2 + $0x38] sm:$0xff] %v1187_v61  ;;  %v868_v63 = vpop.f32.mrb[16].mxu0 }
 0x1c3   : > { %1283 = vst [vmem:[#allocation3 + $0x38] sm:$0xff] %v1251_v62  ;;  %v1061_v0 = vpop.f32.mrb[16].mxu1  ;;  %v870_v1 = vpop.f32.mrb[17].mxu0  ;;  %v869_v5 = vadd.f32 %v868_v63, %v7297_v39 }
 0x1c4   : > { %v1063_v2 = vpop.f32.mrb[17].mxu1  ;;  %v872_v3 = vpop.f32.mrb[18].mxu0  ;;  %v1062_v6 = vadd.f32 %v1061_v0, %v7299_v40  ;;  %v871_v11 = vadd.f32 %v870_v1, %v7301_v43 }
 0x1c5   : > { %v1065_v4 = vpop.f32.mrb[18].mxu1  ;;  %v873_v7 = vadd.f32 %v872_v3, %v7297_v39  ;;  %v874_v9 = vpop.f32.mrb[19].mxu0  ;;  %v1064_v12 = vadd.f32 %v1063_v2, %v7303_v44 }
 0x1c6   : > { %v1066_v8 = vadd.f32 %v1065_v4, %v7299_v40  ;;  %v1067_v10 = vpop.f32.mrb[19].mxu1  ;;  %v875_v13 = vadd.f32 %v874_v9, %v7301_v43 }
 0x1c7   : > { %v1068_v14 = vadd.f32 %v1067_v10, %v7303_v44  ;;  %v1188_v15 = vpack.c.bf16 %v873_v7, %v869_v5 }
 0x1c8   : > { %v1252_v16 = vpack.c.bf16 %v1066_v8, %v1062_v6  ;;  %v1189_v17 = vpack.c.bf16 %v875_v13, %v871_v11 }
 0x1c9   : > { %v1253_v18 = vpack.c.bf16 %v1068_v14, %v1064_v12  ;;  %1220 = vst [vmem:[#allocation2 + $0x40] sm:$0xff] %v1188_v15 }
 0x1ca   : > { %1284 = vst [vmem:[#allocation3 + $0x40] sm:$0xff] %v1252_v16  ;;  %1221 = vst [vmem:[#allocation2 + $0x48] sm:$0xff] %v1189_v17  ;;  %v878_v19 = vpop.f32.mrb[20].mxu0 }
 0x1cb   : > { %1285 = vst [vmem:[#allocation3 + $0x48] sm:$0xff] %v1253_v18  ;;  %v1071_v20 = vpop.f32.mrb[20].mxu1  ;;  %v880_v21 = vpop.f32.mrb[21].mxu0  ;;  %v879_v25 = vadd.f32 %v878_v19, %v7297_v39 }
 0x1cc   : > { %v1073_v22 = vpop.f32.mrb[21].mxu1  ;;  %v882_v23 = vpop.f32.mrb[22].mxu0  ;;  %v1072_v26 = vadd.f32 %v1071_v20, %v7299_v40  ;;  %v881_v31 = vadd.f32 %v880_v21, %v7301_v43 }
 0x1cd   : > { %v1075_v24 = vpop.f32.mrb[22].mxu1  ;;  %v883_v27 = vadd.f32 %v882_v23, %v7297_v39  ;;  %v884_v29 = vpop.f32.mrb[23].mxu0  ;;  %v1074_v32 = vadd.f32 %v1073_v22, %v7303_v44 }
 0x1ce   : > { %v1076_v28 = vadd.f32 %v1075_v24, %v7299_v40  ;;  %v1077_v30 = vpop.f32.mrb[23].mxu1  ;;  %v885_v33 = vadd.f32 %v884_v29, %v7301_v43 }
 0x1cf   : > { %v1078_v34 = vadd.f32 %v1077_v30, %v7303_v44  ;;  %v1190_v35 = vpack.c.bf16 %v883_v27, %v879_v25 }
 0x1d0   : > { %v1254_v36 = vpack.c.bf16 %v1076_v28, %v1072_v26  ;;  %v1191_v37 = vpack.c.bf16 %v885_v33, %v881_v31 }
 0x1d1   : > { %v1255_v38 = vpack.c.bf16 %v1078_v34, %v1074_v32  ;;  %1222 = vst [vmem:[#allocation2 + $0x50] sm:$0xff] %v1190_v35 }
 0x1d2   : > { %1286 = vst [vmem:[#allocation3 + $0x50] sm:$0xff] %v1254_v36  ;;  %1223 = vst [vmem:[#allocation2 + $0x58] sm:$0xff] %v1191_v37  ;;  %v888_v41 = vpop.f32.mrb[24].mxu0 }
 0x1d3   : > { %1287 = vst [vmem:[#allocation3 + $0x58] sm:$0xff] %v1255_v38  ;;  %v1081_v42 = vpop.f32.mrb[24].mxu1  ;;  %v890_v45 = vpop.f32.mrb[25].mxu0  ;;  %v889_v49 = vadd.f32 %v888_v41, %v7297_v39 }
 0x1d4   : > { %v1083_v46 = vpop.f32.mrb[25].mxu1  ;;  %v892_v47 = vpop.f32.mrb[26].mxu0  ;;  %v1082_v50 = vadd.f32 %v1081_v42, %v7299_v40  ;;  %v891_v55 = vadd.f32 %v890_v45, %v7301_v43 }
 0x1d5   : > { %v1085_v48 = vpop.f32.mrb[26].mxu1  ;;  %v893_v51 = vadd.f32 %v892_v47, %v7297_v39  ;;  %v894_v53 = vpop.f32.mrb[27].mxu0  ;;  %v1084_v56 = vadd.f32 %v1083_v46, %v7303_v44 }
 0x1d6   : > { %v1086_v52 = vadd.f32 %v1085_v48, %v7299_v40  ;;  %v1087_v54 = vpop.f32.mrb[27].mxu1  ;;  %v895_v57 = vadd.f32 %v894_v53, %v7301_v43 }
 0x1d7   : > { %v1088_v58 = vadd.f32 %v1087_v54, %v7303_v44  ;;  %v1192_v59 = vpack.c.bf16 %v893_v51, %v889_v49 }
 0x1d8   : > { %v1256_v60 = vpack.c.bf16 %v1086_v52, %v1082_v50  ;;  %v1193_v61 = vpack.c.bf16 %v895_v57, %v891_v55 }
 0x1d9   : > { %v1257_v62 = vpack.c.bf16 %v1088_v58, %v1084_v56  ;;  %1224 = vst [vmem:[#allocation2 + $0x60] sm:$0xff] %v1192_v59 }
 0x1da   : > { %1288 = vst [vmem:[#allocation3 + $0x60] sm:$0xff] %v1256_v60  ;;  %1225 = vst [vmem:[#allocation2 + $0x68] sm:$0xff] %v1193_v61  ;;  %v898_v63 = vpop.f32.mrb[28].mxu0 }
 0x1db   : > { %1289 = vst [vmem:[#allocation3 + $0x68] sm:$0xff] %v1257_v62  ;;  %v1091_v0 = vpop.f32.mrb[28].mxu1  ;;  %v900_v1 = vpop.f32.mrb[29].mxu0  ;;  %v899_v5 = vadd.f32 %v898_v63, %v7297_v39 }
 0x1dc   : > { %v1093_v2 = vpop.f32.mrb[29].mxu1  ;;  %v902_v3 = vpop.f32.mrb[30].mxu0  ;;  %v1092_v6 = vadd.f32 %v1091_v0, %v7299_v40  ;;  %v901_v11 = vadd.f32 %v900_v1, %v7301_v43 }
 0x1dd   : > { %v1095_v4 = vpop.f32.mrb[30].mxu1  ;;  %v903_v7 = vadd.f32 %v902_v3, %v7297_v39  ;;  %v904_v9 = vpop.f32.mrb[31].mxu0  ;;  %v1094_v12 = vadd.f32 %v1093_v2, %v7303_v44 }
 0x1de   : > { %v1096_v8 = vadd.f32 %v1095_v4, %v7299_v40  ;;  %v1097_v10 = vpop.f32.mrb[31].mxu1  ;;  %v905_v13 = vadd.f32 %v904_v9, %v7301_v43 }
 0x1df   : > { %v1098_v14 = vadd.f32 %v1097_v10, %v7303_v44  ;;  %v1194_v15 = vpack.c.bf16 %v903_v7, %v899_v5 }
 0x1e0   : > { %v1258_v16 = vpack.c.bf16 %v1096_v8, %v1092_v6  ;;  %v1195_v17 = vpack.c.bf16 %v905_v13, %v901_v11 }
 0x1e1   : > { %v1259_v18 = vpack.c.bf16 %v1098_v14, %v1094_v12  ;;  %1226 = vst [vmem:[#allocation2 + $0x70] sm:$0xff] %v1194_v15 }
 0x1e2   : > { %1290 = vst [vmem:[#allocation3 + $0x70] sm:$0xff] %v1258_v16  ;;  %1227 = vst [vmem:[#allocation2 + $0x78] sm:$0xff] %v1195_v17  ;;  %v908_v19 = vpop.f32.mrb[32].mxu0 }
 0x1e3   : > { %1291 = vst [vmem:[#allocation3 + $0x78] sm:$0xff] %v1259_v18  ;;  %v1101_v20 = vpop.f32.mrb[32].mxu1  ;;  %v910_v21 = vpop.f32.mrb[33].mxu0  ;;  %v909_v25 = vadd.f32 %v908_v19, %v7297_v39 }
 0x1e4   : > { %v1103_v22 = vpop.f32.mrb[33].mxu1  ;;  %v912_v23 = vpop.f32.mrb[34].mxu0  ;;  %v1102_v26 = vadd.f32 %v1101_v20, %v7299_v40  ;;  %v911_v31 = vadd.f32 %v910_v21, %v7301_v43 }
 0x1e5   : > { %v1105_v24 = vpop.f32.mrb[34].mxu1  ;;  %v913_v27 = vadd.f32 %v912_v23, %v7297_v39  ;;  %v914_v29 = vpop.f32.mrb[35].mxu0  ;;  %v1104_v32 = vadd.f32 %v1103_v22, %v7303_v44 }
 0x1e6   : > { %v1106_v28 = vadd.f32 %v1105_v24, %v7299_v40  ;;  %v1107_v30 = vpop.f32.mrb[35].mxu1  ;;  %v915_v33 = vadd.f32 %v914_v29, %v7301_v43 }
 0x1e7   : > { %v1108_v34 = vadd.f32 %v1107_v30, %v7303_v44  ;;  %v1196_v35 = vpack.c.bf16 %v913_v27, %v909_v25 }
 0x1e8   : > { %v1260_v36 = vpack.c.bf16 %v1106_v28, %v1102_v26  ;;  %v1197_v37 = vpack.c.bf16 %v915_v33, %v911_v31 }
 0x1e9   : > { %v1261_v38 = vpack.c.bf16 %v1108_v34, %v1104_v32  ;;  %1228 = vst [vmem:[#allocation2 + $0x80] sm:$0xff] %v1196_v35 }
 0x1ea   : > { %1292 = vst [vmem:[#allocation3 + $0x80] sm:$0xff] %v1260_v36  ;;  %1229 = vst [vmem:[#allocation2 + $0x88] sm:$0xff] %v1197_v37  ;;  %v918_v41 = vpop.f32.mrb[36].mxu0 }
 0x1eb   : > { %1293 = vst [vmem:[#allocation3 + $0x88] sm:$0xff] %v1261_v38  ;;  %v1111_v42 = vpop.f32.mrb[36].mxu1  ;;  %v920_v45 = vpop.f32.mrb[37].mxu0  ;;  %v919_v49 = vadd.f32 %v918_v41, %v7297_v39 }
 0x1ec   : > { %v1113_v46 = vpop.f32.mrb[37].mxu1  ;;  %v922_v47 = vpop.f32.mrb[38].mxu0  ;;  %v1112_v50 = vadd.f32 %v1111_v42, %v7299_v40  ;;  %v921_v55 = vadd.f32 %v920_v45, %v7301_v43 }
 0x1ed   : > { %v1115_v48 = vpop.f32.mrb[38].mxu1  ;;  %v923_v51 = vadd.f32 %v922_v47, %v7297_v39  ;;  %v924_v53 = vpop.f32.mrb[39].mxu0  ;;  %v1114_v56 = vadd.f32 %v1113_v46, %v7303_v44 }
 0x1ee   : > { %v1116_v52 = vadd.f32 %v1115_v48, %v7299_v40  ;;  %v1117_v54 = vpop.f32.mrb[39].mxu1  ;;  %v925_v57 = vadd.f32 %v924_v53, %v7301_v43 }
 0x1ef   : > { %v1118_v58 = vadd.f32 %v1117_v54, %v7303_v44  ;;  %v1198_v59 = vpack.c.bf16 %v923_v51, %v919_v49 }
 0x1f0   : > { %v1262_v60 = vpack.c.bf16 %v1116_v52, %v1112_v50  ;;  %v1199_v61 = vpack.c.bf16 %v925_v57, %v921_v55 }
 0x1f1   : > { %v1263_v62 = vpack.c.bf16 %v1118_v58, %v1114_v56  ;;  %1230 = vst [vmem:[#allocation2 + $0x90] sm:$0xff] %v1198_v59 }
 0x1f2   : > { %1294 = vst [vmem:[#allocation3 + $0x90] sm:$0xff] %v1262_v60  ;;  %1231 = vst [vmem:[#allocation2 + $0x98] sm:$0xff] %v1199_v61  ;;  %v928_v63 = vpop.f32.mrb[40].mxu0 }
 0x1f3   : > { %1295 = vst [vmem:[#allocation3 + $0x98] sm:$0xff] %v1263_v62  ;;  %v1121_v0 = vpop.f32.mrb[40].mxu1  ;;  %v930_v1 = vpop.f32.mrb[41].mxu0  ;;  %v929_v5 = vadd.f32 %v928_v63, %v7297_v39 }
 0x1f4   : > { %v1123_v2 = vpop.f32.mrb[41].mxu1  ;;  %v932_v3 = vpop.f32.mrb[42].mxu0  ;;  %v1122_v6 = vadd.f32 %v1121_v0, %v7299_v40  ;;  %v931_v11 = vadd.f32 %v930_v1, %v7301_v43 }
 0x1f5   : > { %v1125_v4 = vpop.f32.mrb[42].mxu1  ;;  %v933_v7 = vadd.f32 %v932_v3, %v7297_v39  ;;  %v934_v9 = vpop.f32.mrb[43].mxu0  ;;  %v1124_v12 = vadd.f32 %v1123_v2, %v7303_v44 }
 0x1f6   : > { %v1126_v8 = vadd.f32 %v1125_v4, %v7299_v40  ;;  %v1127_v10 = vpop.f32.mrb[43].mxu1  ;;  %v935_v13 = vadd.f32 %v934_v9, %v7301_v43 }
 0x1f7   : > { %v1128_v14 = vadd.f32 %v1127_v10, %v7303_v44  ;;  %v1200_v15 = vpack.c.bf16 %v933_v7, %v929_v5 }
 0x1f8   : > { %v1264_v16 = vpack.c.bf16 %v1126_v8, %v1122_v6  ;;  %v1201_v17 = vpack.c.bf16 %v935_v13, %v931_v11 }
 0x1f9   : > { %v1265_v18 = vpack.c.bf16 %v1128_v14, %v1124_v12  ;;  %1232 = vst [vmem:[#allocation2 + $0xa0] sm:$0xff] %v1200_v15 }
 0x1fa   : > { %1296 = vst [vmem:[#allocation3 + $0xa0] sm:$0xff] %v1264_v16  ;;  %1233 = vst [vmem:[#allocation2 + $0xa8] sm:$0xff] %v1201_v17  ;;  %v938_v19 = vpop.f32.mrb[44].mxu0 }
 0x1fb   : > { %1297 = vst [vmem:[#allocation3 + $0xa8] sm:$0xff] %v1265_v18  ;;  %v1131_v20 = vpop.f32.mrb[44].mxu1  ;;  %v940_v21 = vpop.f32.mrb[45].mxu0  ;;  %v939_v25 = vadd.f32 %v938_v19, %v7297_v39 }
 0x1fc   : > { %v1133_v22 = vpop.f32.mrb[45].mxu1  ;;  %v942_v23 = vpop.f32.mrb[46].mxu0  ;;  %v1132_v26 = vadd.f32 %v1131_v20, %v7299_v40  ;;  %v941_v31 = vadd.f32 %v940_v21, %v7301_v43 }
 0x1fd   : > { %v1135_v24 = vpop.f32.mrb[46].mxu1  ;;  %v943_v27 = vadd.f32 %v942_v23, %v7297_v39  ;;  %v944_v29 = vpop.f32.mrb[47].mxu0  ;;  %v1134_v32 = vadd.f32 %v1133_v22, %v7303_v44 }
 0x1fe   : > { %v1136_v28 = vadd.f32 %v1135_v24, %v7299_v40  ;;  %v1137_v30 = vpop.f32.mrb[47].mxu1  ;;  %v945_v33 = vadd.f32 %v944_v29, %v7301_v43 }
 0x1ff   : > { %v1138_v34 = vadd.f32 %v1137_v30, %v7303_v44  ;;  %v1202_v35 = vpack.c.bf16 %v943_v27, %v939_v25 }
 0x200   : > { %v1266_v36 = vpack.c.bf16 %v1136_v28, %v1132_v26  ;;  %v1203_v37 = vpack.c.bf16 %v945_v33, %v941_v31 }
 0x201   : > { %v1267_v38 = vpack.c.bf16 %v1138_v34, %v1134_v32  ;;  %1234 = vst [vmem:[#allocation2 + $0xb0] sm:$0xff] %v1202_v35 }
 0x202   : > { %1298 = vst [vmem:[#allocation3 + $0xb0] sm:$0xff] %v1266_v36  ;;  %1235 = vst [vmem:[#allocation2 + $0xb8] sm:$0xff] %v1203_v37  ;;  %v948_v41 = vpop.f32.mrb[48].mxu0 }
 0x203   : > { %1299 = vst [vmem:[#allocation3 + $0xb8] sm:$0xff] %v1267_v38  ;;  %v1141_v42 = vpop.f32.mrb[48].mxu1  ;;  %v950_v45 = vpop.f32.mrb[49].mxu0  ;;  %v949_v49 = vadd.f32 %v948_v41, %v7297_v39 }
 0x204   : > { %v1143_v46 = vpop.f32.mrb[49].mxu1  ;;  %v952_v47 = vpop.f32.mrb[50].mxu0  ;;  %v1142_v50 = vadd.f32 %v1141_v42, %v7299_v40  ;;  %v951_v55 = vadd.f32 %v950_v45, %v7301_v43 }
 0x205   : > { %v1145_v48 = vpop.f32.mrb[50].mxu1  ;;  %v953_v51 = vadd.f32 %v952_v47, %v7297_v39  ;;  %v954_v53 = vpop.f32.mrb[51].mxu0  ;;  %v1144_v56 = vadd.f32 %v1143_v46, %v7303_v44 }
 0x206   : > { %v1146_v52 = vadd.f32 %v1145_v48, %v7299_v40  ;;  %v1147_v54 = vpop.f32.mrb[51].mxu1  ;;  %v955_v57 = vadd.f32 %v954_v53, %v7301_v43 }
 0x207   : > { %v1148_v58 = vadd.f32 %v1147_v54, %v7303_v44  ;;  %v1204_v59 = vpack.c.bf16 %v953_v51, %v949_v49 }
 0x208   : > { %v1268_v60 = vpack.c.bf16 %v1146_v52, %v1142_v50  ;;  %v1205_v61 = vpack.c.bf16 %v955_v57, %v951_v55 }
 0x209   : > { %v1269_v62 = vpack.c.bf16 %v1148_v58, %v1144_v56  ;;  %1236 = vst [vmem:[#allocation2 + $0xc0] sm:$0xff] %v1204_v59 }
 0x20a   : > { %1300 = vst [vmem:[#allocation3 + $0xc0] sm:$0xff] %v1268_v60  ;;  %1237 = vst [vmem:[#allocation2 + $0xc8] sm:$0xff] %v1205_v61  ;;  %v958_v63 = vpop.f32.mrb[52].mxu0 }
 0x20b   : > { %1301 = vst [vmem:[#allocation3 + $0xc8] sm:$0xff] %v1269_v62  ;;  %v1151_v0 = vpop.f32.mrb[52].mxu1  ;;  %v960_v1 = vpop.f32.mrb[53].mxu0  ;;  %v959_v5 = vadd.f32 %v958_v63, %v7297_v39 }
 0x20c   : > { %v1153_v2 = vpop.f32.mrb[53].mxu1  ;;  %v962_v3 = vpop.f32.mrb[54].mxu0  ;;  %v1152_v6 = vadd.f32 %v1151_v0, %v7299_v40  ;;  %v961_v11 = vadd.f32 %v960_v1, %v7301_v43 }
 0x20d   : > { %v1155_v4 = vpop.f32.mrb[54].mxu1  ;;  %v963_v7 = vadd.f32 %v962_v3, %v7297_v39  ;;  %v964_v9 = vpop.f32.mrb[55].mxu0  ;;  %v1154_v12 = vadd.f32 %v1153_v2, %v7303_v44 }
 0x20e   : > { %v1156_v8 = vadd.f32 %v1155_v4, %v7299_v40  ;;  %v1157_v10 = vpop.f32.mrb[55].mxu1  ;;  %v965_v13 = vadd.f32 %v964_v9, %v7301_v43 }
 0x20f   : > { %v1158_v14 = vadd.f32 %v1157_v10, %v7303_v44  ;;  %v1206_v15 = vpack.c.bf16 %v963_v7, %v959_v5 }
 0x210   : > { %v1270_v16 = vpack.c.bf16 %v1156_v8, %v1152_v6  ;;  %v1207_v17 = vpack.c.bf16 %v965_v13, %v961_v11 }
 0x211   : > { %v1271_v18 = vpack.c.bf16 %v1158_v14, %v1154_v12  ;;  %1238 = vst [vmem:[#allocation2 + $0xd0] sm:$0xff] %v1206_v15 }
 0x212   : > { %1302 = vst [vmem:[#allocation3 + $0xd0] sm:$0xff] %v1270_v16  ;;  %1239 = vst [vmem:[#allocation2 + $0xd8] sm:$0xff] %v1207_v17  ;;  %v968_v19 = vpop.f32.mrb[56].mxu0 }
 0x213   : > { %1303 = vst [vmem:[#allocation3 + $0xd8] sm:$0xff] %v1271_v18  ;;  %v1161_v20 = vpop.f32.mrb[56].mxu1  ;;  %v970_v21 = vpop.f32.mrb[57].mxu0  ;;  %v969_v25 = vadd.f32 %v968_v19, %v7297_v39 }
 0x214   : > { %v1163_v22 = vpop.f32.mrb[57].mxu1  ;;  %v972_v23 = vpop.f32.mrb[58].mxu0  ;;  %v1162_v26 = vadd.f32 %v1161_v20, %v7299_v40  ;;  %v971_v31 = vadd.f32 %v970_v21, %v7301_v43 }
 0x215   : > { %v1165_v24 = vpop.f32.mrb[58].mxu1  ;;  %v973_v27 = vadd.f32 %v972_v23, %v7297_v39  ;;  %v974_v29 = vpop.f32.mrb[59].mxu0  ;;  %v1164_v32 = vadd.f32 %v1163_v22, %v7303_v44 }
 0x216   : > { %v1166_v28 = vadd.f32 %v1165_v24, %v7299_v40  ;;  %v1167_v30 = vpop.f32.mrb[59].mxu1  ;;  %v975_v33 = vadd.f32 %v974_v29, %v7301_v43 }
 0x217   : > { %v1168_v34 = vadd.f32 %v1167_v30, %v7303_v44  ;;  %v1208_v35 = vpack.c.bf16 %v973_v27, %v969_v25 }
 0x218   : > { %v1272_v36 = vpack.c.bf16 %v1166_v28, %v1162_v26  ;;  %v1209_v37 = vpack.c.bf16 %v975_v33, %v971_v31 }
 0x219   : > { %v1273_v38 = vpack.c.bf16 %v1168_v34, %v1164_v32  ;;  %1240 = vst [vmem:[#allocation2 + $0xe0] sm:$0xff] %v1208_v35 }
 0x21a   : > { %1304 = vst [vmem:[#allocation3 + $0xe0] sm:$0xff] %v1272_v36  ;;  %1241 = vst [vmem:[#allocation2 + $0xe8] sm:$0xff] %v1209_v37  ;;  %v978_v41 = vpop.f32.mrb[60].mxu0 }
 0x21b   : > { %1305 = vst [vmem:[#allocation3 + $0xe8] sm:$0xff] %v1273_v38  ;;  %v1171_v42 = vpop.f32.mrb[60].mxu1  ;;  %v980_v45 = vpop.f32.mrb[61].mxu0  ;;  %v979_v49 = vadd.f32 %v978_v41, %v7297_v39 }
 0x21c   : > { %v1173_v46 = vpop.f32.mrb[61].mxu1  ;;  %v982_v47 = vpop.f32.mrb[62].mxu0  ;;  %v1172_v50 = vadd.f32 %v1171_v42, %v7299_v40  ;;  %v981_v55 = vadd.f32 %v980_v45, %v7301_v43 }
 0x21d   : > { %v1175_v48 = vpop.f32.mrb[62].mxu1  ;;  %v983_v51 = vadd.f32 %v982_v47, %v7297_v39  ;;  %v984_v53 = vpop.f32.mrb[63].mxu0  ;;  %v1174_v56 = vadd.f32 %v1173_v46, %v7303_v44 }
 0x21e   : > { %v1176_v52 = vadd.f32 %v1175_v48, %v7299_v40  ;;  %v1177_v54 = vpop.f32.mrb[63].mxu1  ;;  %v985_v57 = vadd.f32 %v984_v53, %v7301_v43 }
 0x21f   : > { %v1178_v58 = vadd.f32 %v1177_v54, %v7303_v44  ;;  %v1210_v59 = vpack.c.bf16 %v983_v51, %v979_v49 }
 0x220   : > { %v1274_v60 = vpack.c.bf16 %v1176_v52, %v1172_v50  ;;  %v1211_v61 = vpack.c.bf16 %v985_v57, %v981_v55 }
 0x221   : > { %v1275_v62 = vpack.c.bf16 %v1178_v58, %v1174_v56  ;;  %1242 = vst [vmem:[#allocation2 + $0xf0] sm:$0xff] %v1210_v59 }
 0x222   : > { %1306 = vst [vmem:[#allocation3 + $0xf0] sm:$0xff] %v1274_v60  ;;  %1243 = vst [vmem:[#allocation2 + $0xf8] sm:$0xff] %v1211_v61 }
 0x223   : > { %1307 = vst [vmem:[#allocation3 + $0xf8] sm:$0xff] %v1275_v62 }
 0x224 PF: > { %v6238_v39 = vld [vmem:[#allocation7 + $0x4] ss:$24 sps:$4 sm:$0xff]   ;;  %v6240_v40 = vld [vmem:[#allocation7] ss:$24 sps:$4 sm:$0xff]   ;;  %v6241_v63 = vld [vmem:[#allocation7 + $0x34] ss:$24 sps:$4 sm:$0xff]  }
 0x225   : > { %1566 = vmatprep.subr.bf16.mxu0 %v6238_v39  ;;  %v6243_v0 = vld [vmem:[#allocation7 + $0x30] ss:$24 sps:$4 sm:$0xff]   ;;  %v6244_v43 = vld [vmem:[#allocation7 + $0x64] ss:$24 sps:$4 sm:$0xff]   ;;  %v6246_v44 = vld [vmem:[#allocation7 + $0x60] ss:$24 sps:$4 sm:$0xff]  }
 0x226   : > { %1567 = vmatpush1.bf16.msra.mxu0 %v6240_v40  ;;  %v6247_v1 = vld [vmem:[#allocation7 + $0x94] ss:$24 sps:$4 sm:$0xff]   ;;  %s5332_s29 = sshll.u32 %s6934_s24, 7  ;;  %v6249_v2 = vld [vmem:[#allocation7 + $0x90] ss:$24 sps:$4 sm:$0xff]   ;;  %vm1759_vm0 = vcmask 523264  }
 0x227   : > { %1568 = vmatprep.subr.bf16.mxu0 %v6241_v63  ;;  %v6250_v3 = vld [vmem:[#allocation7 + $0xc4] ss:$24 sps:$4 sm:$0xff]   ;;  %s1309_s30 = sshra.s32 %s5332_s29, 3  ;;  %v6252_v4 = vld [vmem:[#allocation7 + $0xc0] ss:$24 sps:$4 sm:$0xff]   ;;  %v7443_v19 = vld [vmem:[#allocation2 + $0x90] sm:$0xff] }
 0x228   : > { %s5471_s16 = sshll.u32 %s1309_s30, 4  ;;  %v6253_v5 = vld [vmem:[#allocation7 + $0xf4] ss:$24 sps:$4 sm:$0xff]   ;;  %v6255_v6 = vld [vmem:[#allocation7 + $0xf0] ss:$24 sps:$4 sm:$0xff]   ;;  %v7439_v17 = vld [vmem:[#allocation2 + $0x80] sm:$0xff] }
 0x229   : > { %s7435_s13 = scalar_lea.vmem %s7214_s15, %s5471_s16 [#allocation4]  ;;  %v6256_v7 = vld [vmem:[#allocation7 + $0x124] ss:$24 sps:$4 sm:$0xff]   ;;  %v6258_v11 = vld [vmem:[#allocation7 + $0x120] ss:$24 sps:$4 sm:$0xff]   ;;  %v6259_v12 = vld [vmem:[#allocation7 + $0x154] ss:$24 sps:$4 sm:$0xff]   ;;  %5969 = vmatprep.subr.msk.bf16.mxu1 %vm1759_vm0, %v7439_v17 }
 0x22a   : > { %1569 = vmatpush1.bf16.msra.mxu0 %v6243_v0  ;;  %v1315_v8 = vld [vmem:[%s7435_s13 + $0x8] sm:$0xff]  ;;  %v1317_v9 = vld [vmem:[%s7435_s13 + $0x18] sm:$0xff]  ;;  %v7441_v18 = vld [vmem:[#allocation2] sm:$0xff]  ;;  %s6961_s5 = smov 64   ;;  %s5472_s14 = sshll.u32 %s6934_s24, 5 }
 0x22b   : > { %1570 = vmatprep.subr.bf16.mxu0 %v6244_v43  ;;  %v1347_v10 = vpack.c.bf16 %v1317_v9, %v1315_v8  ;;  %v6261_v13 = vld [vmem:[#allocation7 + $0x150] ss:$24 sps:$4 sm:$0xff]   ;;  %v6262_v14 = vld [vmem:[#allocation7 + $0x184] ss:$24 sps:$4 sm:$0xff]   ;;  %v6264_v15 = vld [vmem:[#allocation7 + $0x180] ss:$24 sps:$4 sm:$0xff]   ;;  %2354 = vrot.lane.b32.xlu0 %v7441_v18, %s6961_s5 }
 0x22c   : > { %v6265_v16 = vld [vmem:[#allocation7 + $0x1b4] ss:$24 sps:$4 sm:$0xff]   ;;  %v1785_v20 = vsel %vm1759_vm0, %v7441_v18, 0  ;;  %v6267_v21 = vld [vmem:[#allocation7 + $0x1b0] ss:$24 sps:$4 sm:$0xff]   ;;  %v7453_v26 = vld [vmem:[#allocation2 + $0xa0] sm:$0xff]  ;;  %2370 = vrot.lane.b32.xlu1 %v7439_v17, %s6961_s5  ;;  %v1396_v18 = vlaneseq }
 0x22d   : > { %1598 = vmatprep.mubr.bf16.mxu0 %v1347_v10  ;;  %5474 = vmatpush3.bf16.xpose.msra.mxu1 %v1785_v20  ;;  %v6268_v22 = vld [vmem:[#allocation7 + $0x1e4] ss:$24 sps:$4 sm:$0xff]   ;;  %v7451_v23 = vld [vmem:[#allocation2 + $0x10] sm:$0xff]  ;;  %v6270_v24 = vld [vmem:[#allocation7 + $0x1e0] ss:$24 sps:$4 sm:$0xff]   ;;  %s5466_s12 = sshll.u32 %s6938_s25, 6 }
 0x22e   : > { %1571 = vmatpush1.bf16.msra.mxu0 %v6246_v44  ;;  %5970 = vmatprep.subr.msk.bf16.mxu1 %vm1759_vm0, %v7443_v19  ;;  %v6271_v25 = vld [vmem:[#allocation7 + $0x214] ss:$24 sps:$4 sm:$0xff]   ;;  %v1788_v27 = vsel %vm1759_vm0, %v7451_v23, 0  ;;  %v6273_v28 = vld [vmem:[#allocation7 + $0x210] ss:$24 sps:$4 sm:$0xff]   ;;  %v7457_v30 = vld [vmem:[#allocation2 + $0x20] sm:$0xff]  ;;  %s5142_s15 = sadd.s32 %s5472_s14, %s5466_s12 }
 0x22f   : > { %1572 = vmatprep.subr.bf16.mxu0 %v6247_v1  ;;  %v6274_v29 = vld [vmem:[#allocation7 + $0x244] ss:$24 sps:$4 sm:$0xff]   ;;  %v6276_v31 = vld [vmem:[#allocation7 + $0x240] ss:$24 sps:$4 sm:$0xff]   ;;  %v1791_v32 = vsel %vm1759_vm0, %v7457_v30, 0  ;;  %v7463_v34 = vld [vmem:[#allocation2 + $0xb0] sm:$0xff]  ;;  %2356 = vrot.lane.b32.xlu0 %v7451_v23, %s6961_s5 }
 0x230   : > { %v6277_v33 = vld [vmem:[#allocation7 + $0x274] ss:$24 sps:$4 sm:$0xff]   ;;  %v6279_v35 = vld [vmem:[#allocation7 + $0x270] ss:$24 sps:$4 sm:$0xff]   ;;  %v6280_v36 = vld [vmem:[#allocation7 + $0x2a4] ss:$24 sps:$4 sm:$0xff]   ;;  %2372 = vrot.lane.b32.xlu1 %v7443_v19, %s6961_s5 }
 0x231   : > { %v7467_v37 = vld [vmem:[#allocation2 + $0x30] sm:$0xff]  ;;  %v6282_v38 = vld [vmem:[#allocation7 + $0x2a0] ss:$24 sps:$4 sm:$0xff]   ;;  %v1319_v49 = vld [vmem:[%s7435_s13 + $0x28] sm:$0xff]  ;;  %v7549_v17 = vshrl.u32 %v1396_v18, 7  ;;  %s5467_s11 = sshll.u32 %s5142_s15, 7 }
 0x232   : > { %1573 = vmatpush1.bf16.msra.mxu0 %v6249_v2  ;;  %v1794_v41 = vsel %vm1759_vm0, %v7467_v37, 0  ;;  %v6283_v42 = vld [vmem:[#allocation7 + $0x2d4] ss:$24 sps:$4 sm:$0xff]   ;;  %v7471_v45 = vld [vmem:[#allocation2 + $0xc0] sm:$0xff]  ;;  %v6285_v46 = vld [vmem:[#allocation7 + $0x2d0] ss:$24 sps:$4 sm:$0xff]  }
 0x233   : > { %1574 = vmatprep.subr.bf16.mxu0 %v6250_v3  ;;  %v1314_v47 = vld [vmem:[%s7435_s13] sm:$0xff]  ;;  %v1316_v48 = vld [vmem:[%s7435_s13 + $0x10] sm:$0xff]  ;;  %v1321_v50 = vld [vmem:[%s7435_s13 + $0x38] sm:$0xff]  ;;  %2358 = vrot.lane.b32.xlu0 %v7457_v30, %s6961_s5  ;;  %9444 = vst [vmem:[#allocation19_spill] sm:$0xff] %v7549_v17  ;;  %v9398_v23 = vsub.s32 0, %v7549_v17  ;;  %v9397_v30 = vsub.s32 1, %v7549_v17 }
 0x234   : > { %v7479_v51 = vld [vmem:[#allocation2 + $0x40] sm:$0xff]  ;;  %v1346_v52 = vpack.c.bf16 %v1316_v48, %v1314_v47  ;;  %v1349_v53 = vpack.c.bf16 %v1321_v50, %v1319_v49  ;;  %v7483_v55 = vld [vmem:[#allocation2 + $0xd0] sm:$0xff]  ;;  %v1323_v58 = vld [vmem:[%s7435_s13 + $0x48] sm:$0xff]  ;;  %2374 = vrot.lane.b32.xlu1 %v7453_v26, %s6961_s5  ;;  %s5145_s6 = sshll.u32 %s7227_s9, 4  ;;  %s9509_s24 = sld [smem:[#allocation16_spill]]  ;;  %s9310_s6 = int_to_ptr.vmem [resolvable:$true] %s5145_s6 }
 0x235   : > { %5476 = vmatpush3.bf16.xpose.msra.mxu1 %v1788_v27  ;;  %v1797_v54 = vsel %vm1759_vm0, %v7479_v51, 0  ;;  %v1318_v56 = vld [vmem:[%s7435_s13 + $0x20] sm:$0xff]  ;;  %v1320_v57 = vld [vmem:[%s7435_s13 + $0x30] sm:$0xff]  ;;  %v1325_v59 = vld [vmem:[%s7435_s13 + $0x58] sm:$0xff]  ;;  %s9510_s29 = sld [smem:[#allocation36_spill]]  ;;  %s9318_s16 = scalar_lea.sflag [#allocation6], %s283_s26 }
 0x236   : > { %1575 = vmatpush1.bf16.msra.mxu0 %v6252_v4  ;;  %5971 = vmatprep.subr.msk.bf16.mxu1 %vm1759_vm0, %v7453_v26  ;;  %v7491_v60 = vld [vmem:[#allocation2 + $0x50] sm:$0xff]  ;;  %v1348_v61 = vpack.c.bf16 %v1320_v57, %v1318_v56  ;;  %v1351_v62 = vpack.c.bf16 %v1325_v59, %v1323_v58  ;;  %v7495_v40 = vld [vmem:[#allocation2 + $0xe0] sm:$0xff]  ;;  %v1327_v43 = vld [vmem:[%s7435_s13 + $0x68] sm:$0xff] }
 0x237   : > { %1576 = vmatprep.subr.bf16.mxu0 %v6253_v5  ;;  %v1800_v39 = vsel %vm1759_vm0, %v7491_v60, 0  ;;  %v1322_v63 = vld [vmem:[%s7435_s13 + $0x40] sm:$0xff]  ;;  %v1324_v0 = vld [vmem:[%s7435_s13 + $0x50] sm:$0xff]  ;;  %v1329_v44 = vld [vmem:[%s7435_s13 + $0x78] sm:$0xff]  ;;  %2360 = vrot.lane.b32.xlu0 %v7467_v37, %s6961_s5 }
 0x238   : > { %v7503_v1 = vld [vmem:[#allocation2 + $0x60] sm:$0xff]  ;;  %v1350_v2 = vpack.c.bf16 %v1324_v0, %v1322_v63  ;;  %v1353_v3 = vpack.c.bf16 %v1329_v44, %v1327_v43  ;;  %v1333_v8 = vld [vmem:[%s7435_s13 + $0x98] sm:$0xff]  ;;  %2376 = vrot.lane.b32.xlu1 %v7463_v34, %s6961_s5 }
 0x239   : > { %v1803_v4 = vsel %vm1759_vm0, %v7503_v1, 0  ;;  %v1326_v5 = vld [vmem:[%s7435_s13 + $0x60] sm:$0xff] }
 0x23a   : > { %1577 = vmatpush1.bf16.msra.mxu0 %v6255_v6  ;;  %v1328_v6 = vld [vmem:[%s7435_s13 + $0x70] sm:$0xff]  ;;  %v1334_v20 = vld [vmem:[%s7435_s13 + $0xa0] sm:$0xff]  ;;  %p9511_p3 = scmp.ne.s32.totalorder %s9509_s24, 0 }
 0x23b   : > { %1578 = vmatprep.subr.bf16.mxu0 %v6256_v7  ;;  %v1331_v7 = vld [vmem:[%s7435_s13 + $0x88] sm:$0xff]  ;;  %v1352_v9 = vpack.c.bf16 %v1328_v6, %v1326_v5  ;;  %v1394_v19 = vld [vmem:[%s9381_s2] sm:$0x3]  ;;  %s9308_s30 = scalar_lea.hbm %s9510_s29, %s5467_s11 }
 0x23c   : > { %v1355_v10 = vpack.c.bf16 %v1333_v8, %v1331_v7  ;;  %v7558_v26 = vrot.slane %v1394_v19, %v9398_v23  ;;  %v7562_v37 = vrot.slane %v1394_v19, %v9397_v30 }
 0x23d   : > { %5478 = vmatpush3.bf16.xpose.msra.mxu1 %v1791_v32  ;;  %v1345_v32 = vld [vmem:[%s7435_s13 + $0xf8] sm:$0xff] }
 0x23e   : > { %1579 = vmatpush1.bf16.msra.mxu0 %v6258_v11  ;;  %5972 = vmatprep.subr.msk.bf16.mxu1 %vm1759_vm0, %v7463_v34  ;;  %v1330_v11 = vld [vmem:[%s7435_s13 + $0x80] sm:$0xff] }
 0x23f   : > { %1580 = vmatprep.subr.bf16.mxu0 %v6259_v12  ;;  %v1332_v12 = vld [vmem:[%s7435_s13 + $0x90] sm:$0xff] }
 0x242   : > { %1581 = vmatpush1.bf16.msra.mxu0 %v6261_v13  ;;  %v1335_v13 = vld [vmem:[%s7435_s13 + $0xa8] sm:$0xff] }
 0x243   : > { %1582 = vmatprep.subr.bf16.mxu0 %v6262_v14  ;;  %v1337_v14 = vld [vmem:[%s7435_s13 + $0xb8] sm:$0xff] }
 0x245   : > { %5480 = vmatpush3.bf16.xpose.msra.mxu1 %v1794_v41 }
 0x246   : > { %1583 = vmatpush1.bf16.msra.mxu0 %v6264_v15  ;;  %5973 = vmatprep.subr.msk.bf16.mxu1 %vm1759_vm0, %v7471_v45  ;;  %v1354_v15 = vpack.c.bf16 %v1332_v12, %v1330_v11 }
 0x247   : > { %1584 = vmatprep.subr.bf16.mxu0 %v6265_v16  ;;  %v1357_v16 = vpack.c.bf16 %v1337_v14, %v1335_v13 }
 0x24a   : > { %1585 = vmatpush1.bf16.msra.mxu0 %v6267_v21  ;;  %v1336_v21 = vld [vmem:[%s7435_s13 + $0xb0] sm:$0xff] }
 0x24b   : > { %1586 = vmatprep.subr.bf16.mxu0 %v6268_v22  ;;  %v1339_v22 = vld [vmem:[%s7435_s13 + $0xc8] sm:$0xff] }
 0x24d   : > { %5482 = vmatpush3.bf16.xpose.msra.mxu1 %v1797_v54 }
 0x24e   : > { %1587 = vmatpush1.bf16.msra.mxu0 %v6270_v24  ;;  %5974 = vmatprep.subr.msk.bf16.mxu1 %vm1759_vm0, %v7483_v55  ;;  %v1341_v24 = vld [vmem:[%s7435_s13 + $0xd8] sm:$0xff] }
 0x24f   : > { %1588 = vmatprep.subr.bf16.mxu0 %v6271_v25  ;;  %v1356_v25 = vpack.c.bf16 %v1336_v21, %v1334_v20  ;;  %v1359_v27 = vpack.c.bf16 %v1341_v24, %v1339_v22 }
 0x252   : > { %1589 = vmatpush1.bf16.msra.mxu0 %v6273_v28  ;;  %v1338_v28 = vld [vmem:[%s7435_s13 + $0xc0] sm:$0xff] }
 0x253   : > { %1590 = vmatprep.subr.bf16.mxu0 %v6274_v29  ;;  %v1340_v29 = vld [vmem:[%s7435_s13 + $0xd0] sm:$0xff] }
 0x255   : > { %5484 = vmatpush3.bf16.xpose.msra.mxu1 %v1800_v39 }
 0x256   : > { %1591 = vmatpush1.bf16.msra.mxu0 %v6276_v31  ;;  %5975 = vmatprep.subr.msk.bf16.mxu1 %vm1759_vm0, %v7495_v40  ;;  %v1343_v31 = vld [vmem:[%s7435_s13 + $0xe8] sm:$0xff] }
 0x257   : > { %1592 = vmatprep.subr.bf16.mxu0 %v6277_v33  ;;  %v1358_v33 = vpack.c.bf16 %v1340_v29, %v1338_v28 }
 0x25a   : > { %1593 = vmatpush1.bf16.msra.mxu0 %v6279_v35  ;;  %v1361_v35 = vpack.c.bf16 %v1345_v32, %v1343_v31 }
 0x25b   : > { %1594 = vmatprep.subr.bf16.mxu0 %v6280_v36  ;;  %v1342_v36 = vld [vmem:[%s7435_s13 + $0xe0] sm:$0xff] }
 0x25d   : > { %5486 = vmatpush3.bf16.xpose.msra.mxu1 %v1803_v4 }
 0x25e   : > { %1595 = vmatpush1.bf16.msra.mxu0 %v6282_v38  ;;  %v1344_v38 = vld [vmem:[%s7435_s13 + $0xf0] sm:$0xff]  ;;  %s6824_s13 = scalar_lea.vmem %s9310_s6, 4096 }
 0x25f   : > { %1596 = vmatprep.subr.bf16.mxu0 %v6283_v42  ;;  %v1360_v41 = vpack.c.bf16 %v1344_v38, %v1342_v36  ;;  %v7525_v42 = vld [vmem:[#allocation2 + $0xf0] sm:$0xff]  ;;  %p6825_p1 = scmp.ne.s32.totalorder %s9310_s6, %s6824_s13 }
 0x260   : > { %5976 = vmatprep.subr.msk.bf16.mxu1 %vm1759_vm0, %v7525_v42 }
 0x261   : > { %p6826_p13 = pnand %p6825_p1, %p9511_p3 }
 0x262   : > { %1597 = vmatpush1.bf16.msra.mxu0 %v6285_v46  ;;  %v7527_v46 = vld [vmem:[#allocation2 + $0x70] sm:$0xff] }
 0x263   : > { %v1806_v47 = vsel %vm1759_vm0, %v7527_v46, 0  ;;  %p6827_p7 = pneg %p6826_p13 }
 0x265   : > { %1599 = vmatmul.mubr.bf16.vlgmr.msra.gmra.mrb[0].mxu0 %v1346_v52  ;;  %5488 = vmatpush3.bf16.xpose.msra.mxu1 %v1806_v47 }
 0x266   : > { %1608 = vmatprep.mubr.bf16.mxu0 %v1349_v53 }
 0x26d   : > { %1609 = vmatmul.mubr.bf16.gmra.mrb[4].mxu0 %v1348_v61 }
 0x26e   : > { %1618 = vmatprep.mubr.bf16.mxu0 %v1351_v62 }
 0x275   : > { %1619 = vmatmul.mubr.bf16.gmra.mrb[8].mxu0 %v1350_v2 }
 0x276   : > { %1628 = vmatprep.mubr.bf16.mxu0 %v1353_v3 }
 0x27d   : > { %1629 = vmatmul.mubr.bf16.gmra.mrb[12].mxu0 %v1352_v9 }
 0x27e   : > { %1638 = vmatprep.mubr.bf16.mxu0 %v1355_v10 }
 0x285   : > { %1639 = vmatmul.mubr.bf16.gmra.mrb[16].mxu0 %v1354_v15 }
 0x286   : > { %1648 = vmatprep.mubr.bf16.mxu0 %v1357_v16 }
 0x28d   : > { %1649 = vmatmul.mubr.bf16.gmra.mrb[20].mxu0 %v1356_v25 }
 0x28e   : > { %1658 = vmatprep.mubr.bf16.mxu0 %v1359_v27 }
 0x295   : > { %1659 = vmatmul.mubr.bf16.gmra.mrb[24].mxu0 %v1358_v33 }
 0x296   : > { %1668 = vmatprep.mubr.bf16.mxu0 %v1361_v35 }
 0x29d   : > { %1669 = vmatmul.mubr.bf16.gmra.mrb[28].mxu0 %v1360_v41 }
 0x338   : > { %v1600_v34 = vpop.f32.mrb[0].mxu0 }
 0x339   : > { %v1601_v48 = vadd.f32 %v1600_v34, %v7558_v26  ;;  %v1602_v49 = vpop.f32.mrb[1].mxu0 }
 0x33a   : > { %v1603_v50 = vadd.f32 %v1602_v49, %v7562_v37  ;;  %v1604_v52 = vpop.f32.mrb[2].mxu0 }
 0x33b   : > { %v1605_v53 = vadd.f32 %v1604_v52, %v7558_v26  ;;  %v1606_v54 = vpop.f32.mrb[3].mxu0  ;;  %v1679_v57 = vmul.f32 0.125, %v1601_v48 }
 0x33c   : > { %v1607_v56 = vadd.f32 %v1606_v54, %v7562_v37  ;;  %v1680_v59 = vmul.f32 0.125, %v1603_v50 }
 0x33d   : > { %v1681_v58 = vmul.f32 0.125, %v1605_v53 }
 0x33e   : > { %v1682_v61 = vmul.f32 0.125, %v1607_v56 }
 0x33f   : > { %v7568_v62 = vpack.c.bf16 %v1681_v58, %v1679_v57 }
 0x340   : > { %v7570_v39 = vpack.c.bf16 %v1682_v61, %v1680_v59  ;;  %v1610_v63 = vpop.f32.mrb[4].mxu0 }
 0x341   : > { %v1611_v0 = vadd.f32 %v1610_v63, %v7558_v26  ;;  %v1612_v43 = vpop.f32.mrb[5].mxu0  ;;  %5489 = vmatprep.mubr.msk.bf16.mxu1 %vm1759_vm0, %v7568_v62 }
 0x342   : > { %9445 = vst [vmem:[#allocation20_spill] sm:$0xff] %v7570_v39  ;;  %v1613_v44 = vadd.f32 %v1612_v43, %v7562_v37  ;;  %v1614_v2 = vpop.f32.mrb[6].mxu0  ;;  %5490 = vmatmul.mubr.msk.bf16.vlgmr.msra.gmra.mrb[0].mxu1 %vm1759_vm0, %v7568_v62 }
 0x343   : > { %v1615_v3 = vadd.f32 %v1614_v2, %v7558_v26  ;;  %v1616_v4 = vpop.f32.mrb[7].mxu0  ;;  %v1683_v6 = vmul.f32 0.125, %v1611_v0 }
 0x344   : > { %v1617_v5 = vadd.f32 %v1616_v4, %v7562_v37  ;;  %v1684_v8 = vmul.f32 0.125, %v1613_v44 }
 0x345   : > { %v1685_v7 = vmul.f32 0.125, %v1615_v3 }
 0x346   : > { %v1686_v9 = vmul.f32 0.125, %v1617_v5 }
 0x347   : > { %v7580_v10 = vpack.c.bf16 %v1685_v7, %v1683_v6 }
 0x348   : > { %v7582_v11 = vpack.c.bf16 %v1686_v9, %v1684_v8  ;;  %v1620_v12 = vpop.f32.mrb[8].mxu0 }
 0x349   : > { %v1621_v13 = vadd.f32 %v1620_v12, %v7558_v26  ;;  %v1622_v14 = vpop.f32.mrb[9].mxu0  ;;  %5491 = vmatprep.mubr.msk.bf16.mxu1 %vm1759_vm0, %v7580_v10 }
 0x34a   : > { %9446 = vst [vmem:[#allocation21_spill] sm:$0xff] %v7582_v11  ;;  %v1623_v15 = vadd.f32 %v1622_v14, %v7562_v37  ;;  %v1624_v16 = vpop.f32.mrb[10].mxu0  ;;  %5492 = vmatmul.mubr.msk.bf16.gmra.mrb[4].mxu1 %vm1759_vm0, %v7580_v10 }
 0x34b   : > { %v1625_v20 = vadd.f32 %v1624_v16, %v7558_v26  ;;  %v1626_v21 = vpop.f32.mrb[11].mxu0  ;;  %v1687_v24 = vmul.f32 0.125, %v1621_v13 }
 0x34c   : > { %v1627_v22 = vadd.f32 %v1626_v21, %v7562_v37  ;;  %v1688_v27 = vmul.f32 0.125, %v1623_v15 }
 0x34d   : > { %v1689_v25 = vmul.f32 0.125, %v1625_v20 }
 0x34e   : > { %v1690_v28 = vmul.f32 0.125, %v1627_v22 }
 0x34f   : > { %v7592_v29 = vpack.c.bf16 %v1689_v25, %v1687_v24 }
 0x350   : > { %v7594_v31 = vpack.c.bf16 %v1690_v28, %v1688_v27  ;;  %v1630_v32 = vpop.f32.mrb[12].mxu0 }
 0x351   : > { %v1631_v33 = vadd.f32 %v1630_v32, %v7558_v26  ;;  %v1632_v35 = vpop.f32.mrb[13].mxu0  ;;  %5493 = vmatprep.mubr.msk.bf16.mxu1 %vm1759_vm0, %v7592_v29 }
 0x352   : > { %9447 = vst [vmem:[#allocation22_spill] sm:$0xff] %v7594_v31  ;;  %v1633_v36 = vadd.f32 %v1632_v35, %v7562_v37  ;;  %v1634_v38 = vpop.f32.mrb[14].mxu0  ;;  %5494 = vmatmul.mubr.msk.bf16.gmra.mrb[8].mxu1 %vm1759_vm0, %v7592_v29 }
 0x353   : > { %v1635_v41 = vadd.f32 %v1634_v38, %v7558_v26  ;;  %v1636_v47 = vpop.f32.mrb[15].mxu0  ;;  %v1691_v19 = vmul.f32 0.125, %v1631_v33 }
 0x354   : > { %v1637_v18 = vadd.f32 %v1636_v47, %v7562_v37  ;;  %v1692_v48 = vmul.f32 0.125, %v1633_v36 }
 0x355   : > { %v1693_v34 = vmul.f32 0.125, %v1635_v41 }
 0x356   : > { %v1694_v49 = vmul.f32 0.125, %v1637_v18 }
 0x357   : > { %v7604_v50 = vpack.c.bf16 %v1693_v34, %v1691_v19 }
 0x358   : > { %v7606_v52 = vpack.c.bf16 %v1694_v49, %v1692_v48  ;;  %v1640_v53 = vpop.f32.mrb[16].mxu0 }
 0x359   : > { %v1641_v54 = vadd.f32 %v1640_v53, %v7558_v26  ;;  %v1642_v56 = vpop.f32.mrb[17].mxu0  ;;  %5495 = vmatprep.mubr.msk.bf16.mxu1 %vm1759_vm0, %v7604_v50 }
 0x35a   : > { %9448 = vst [vmem:[#allocation23_spill] sm:$0xff] %v7606_v52  ;;  %v1643_v57 = vadd.f32 %v1642_v56, %v7562_v37  ;;  %v1644_v58 = vpop.f32.mrb[18].mxu0  ;;  %5496 = vmatmul.mubr.msk.bf16.gmra.mrb[12].mxu1 %vm1759_vm0, %v7604_v50 }
 0x35b   : > { %v1645_v59 = vadd.f32 %v1644_v58, %v7558_v26  ;;  %v1646_v61 = vpop.f32.mrb[19].mxu0  ;;  %v1695_v0 = vmul.f32 0.125, %v1641_v54 }
 0x35c   : > { %v1647_v63 = vadd.f32 %v1646_v61, %v7562_v37  ;;  %v1696_v44 = vmul.f32 0.125, %v1643_v57 }
 0x35d   : > { %v1697_v43 = vmul.f32 0.125, %v1645_v59 }
 0x35e   : > { %v1698_v2 = vmul.f32 0.125, %v1647_v63 }
 0x35f   : > { %v7616_v3 = vpack.c.bf16 %v1697_v43, %v1695_v0 }
 0x360   : > { %v7618_v4 = vpack.c.bf16 %v1698_v2, %v1696_v44  ;;  %v1650_v5 = vpop.f32.mrb[20].mxu0 }
 0x361   : > { %v1651_v6 = vadd.f32 %v1650_v5, %v7558_v26  ;;  %v1652_v7 = vpop.f32.mrb[21].mxu0  ;;  %5497 = vmatprep.mubr.msk.bf16.mxu1 %vm1759_vm0, %v7616_v3 }
 0x362   : > { %9449 = vst [vmem:[#allocation24_spill] sm:$0xff] %v7618_v4  ;;  %v1653_v8 = vadd.f32 %v1652_v7, %v7562_v37  ;;  %v1654_v9 = vpop.f32.mrb[22].mxu0  ;;  %5498 = vmatmul.mubr.msk.bf16.gmra.mrb[16].mxu1 %vm1759_vm0, %v7616_v3  ;;  %v1743_v7 = vld [vmem:[#allocation3] sm:$0xff] }
 0x363   : > { %v1655_v12 = vadd.f32 %v1654_v9, %v7558_v26  ;;  %v1656_v13 = vpop.f32.mrb[23].mxu0  ;;  %v1699_v15 = vmul.f32 0.125, %v1651_v6  ;;  %v1751_v6 = vld [vmem:[#allocation3 + $0x80] sm:$0xff] }
 0x364   : > { %v1657_v14 = vadd.f32 %v1656_v13, %v7562_v37  ;;  %v1700_v20 = vmul.f32 0.125, %v1653_v8  ;;  %v1752_v8 = vld [vmem:[#allocation3 + $0x90] sm:$0xff]  ;;  %5505 = vmatprep.subr.bf16.mxu0 %v1751_v6  ;;  %v1745_v9 = vld [vmem:[#allocation3 + $0x20] sm:$0xff]  ;;  %v2371_v13 = vpop.permute.xlu1 %2370 }
 0x365   : > { %v1701_v16 = vmul.f32 0.125, %v1655_v12  ;;  %5506 = vmatpush3.bf16.msra.mxu0 %v1743_v7  ;;  %v1754_v12 = vld [vmem:[#allocation3 + $0xb0] sm:$0xff]  ;;  %5978 = vmatprep.subr.msk.bf16.mxu1 %vm1759_vm0, %v2371_v13 }
 0x366   : > { %v1702_v21 = vmul.f32 0.125, %v1657_v14  ;;  %5507 = vmatprep.subr.bf16.mxu0 %v1752_v8  ;;  %v2355_v14 = vpop.permute.xlu0 %2354 }
 0x367   : > { %v7628_v22 = vpack.c.bf16 %v1701_v16, %v1699_v15  ;;  %v7661_v15 = vsel %vm1759_vm0, %v2355_v14, 0  ;;  %v1746_v16 = vld [vmem:[#allocation3 + $0x30] sm:$0xff] }
 0x368   : > { %v7630_v24 = vpack.c.bf16 %v1702_v21, %v1700_v20  ;;  %v1660_v25 = vpop.f32.mrb[24].mxu0  ;;  %5865 = vmatpush3.bf16.xpose.msra.mxu1 %v7661_v15  ;;  %v1755_v20 = vld [vmem:[#allocation3 + $0xc0] sm:$0xff]  ;;  %v7665_v21 = vpop.permute.xlu1 %2372 }
 0x369   : > { %v1661_v27 = vadd.f32 %v1660_v25, %v7558_v26  ;;  %v1662_v28 = vpop.f32.mrb[25].mxu0  ;;  %5499 = vmatprep.mubr.msk.bf16.mxu1 %vm1759_vm0, %v7628_v22  ;;  %5980 = vmatprep.subr.msk.bf16.mxu1 %vm1759_vm0, %v7665_v21 }
 0x36a   : > { %9450 = vst [vmem:[#allocation25_spill] sm:$0xff] %v7630_v24  ;;  %v1663_v32 = vadd.f32 %v1662_v28, %v7562_v37  ;;  %v1664_v33 = vpop.f32.mrb[26].mxu0  ;;  %5500 = vmatmul.mubr.msk.bf16.gmra.mrb[20].mxu1 %vm1759_vm0, %v7628_v22  ;;  %v2357_v25 = vpop.permute.xlu0 %2356  ;;  %v1756_v28 = vld [vmem:[#allocation3 + $0xd0] sm:$0xff] }
 0x36b   : > { %v1665_v35 = vadd.f32 %v1664_v33, %v7558_v26  ;;  %v1666_v36 = vpop.f32.mrb[27].mxu0  ;;  %v1703_v41 = vmul.f32 0.125, %v1661_v27  ;;  %v1747_v27 = vld [vmem:[#allocation3 + $0x40] sm:$0xff] }
 0x36c   : > { %v1667_v38 = vadd.f32 %v1666_v36, %v7562_v37  ;;  %v1704_v18 = vmul.f32 0.125, %v1663_v32  ;;  %v7670_v32 = vsel %vm1759_vm0, %v2357_v25, 0  ;;  %v7672_v33 = vpop.permute.xlu1 %2374  ;;  %v1757_v36 = vld [vmem:[#allocation3 + $0xe0] sm:$0xff] }
 0x36d   : > { %v1705_v47 = vmul.f32 0.125, %v1665_v35  ;;  %v1748_v35 = vld [vmem:[#allocation3 + $0x50] sm:$0xff] }
 0x36e   : > { %v1706_v19 = vmul.f32 0.125, %v1667_v38  ;;  %v2359_v38 = vpop.permute.xlu0 %2358 }
 0x36f   : > { %v7640_v34 = vpack.c.bf16 %v1705_v47, %v1703_v41  ;;  %v1749_v41 = vld [vmem:[#allocation3 + $0x60] sm:$0xff]  ;;  %v1758_v47 = vld [vmem:[#allocation3 + $0xf0] sm:$0xff] }
 0x370   : > { %v7642_v48 = vpack.c.bf16 %v1706_v19, %v1704_v18  ;;  %v1670_v49 = vpop.f32.mrb[28].mxu0  ;;  %5866 = vmatpush3.bf16.xpose.msra.mxu1 %v7670_v32  ;;  %v7678_v18 = vsel %vm1759_vm0, %v2359_v38, 0  ;;  %v7680_v19 = vpop.permute.xlu1 %2376 }
 0x371   : > { %v1671_v53 = vadd.f32 %v1670_v49, %v7558_v26  ;;  %v1672_v54 = vpop.f32.mrb[29].mxu0  ;;  %5501 = vmatprep.mubr.msk.bf16.mxu1 %vm1759_vm0, %v7640_v34  ;;  %5982 = vmatprep.subr.msk.bf16.mxu1 %vm1759_vm0, %v7672_v33  ;;  %v1750_v49 = vld [vmem:[#allocation3 + $0x70] sm:$0xff] }
 0x372   : > { %9451 = vst [vmem:[#allocation26_spill] sm:$0xff] %v7642_v48  ;;  %v1673_v56 = vadd.f32 %v1672_v54, %v7562_v37  ;;  %v1674_v57 = vpop.f32.mrb[30].mxu0  ;;  %5502 = vmatmul.mubr.msk.bf16.gmra.mrb[24].mxu1 %vm1759_vm0, %v7640_v34 }
 0x373   : > { %v1707_v58 = vmul.f32 0.125, %v1671_v53  ;;  %v1675_v59 = vadd.f32 %v1674_v57, %v7558_v26  ;;  %v1676_v61 = vpop.f32.mrb[31].mxu0  ;;  %v1744_v26 = vld [vmem:[#allocation3 + $0x10] sm:$0xff]  ;;  %v2361_v53 = vpop.permute.xlu0 %2360 }
 0x374   : > { %v1708_v63 = vmul.f32 0.125, %v1673_v56  ;;  %v1677_v0 = vadd.f32 %v1676_v61, %v7562_v37  ;;  %v1753_v37 = vld [vmem:[#allocation3 + $0xa0] sm:$0xff]  ;;  %5508 = vmatpush3.bf16.msra.mxu0 %v1744_v26  ;;  %v7687_v54 = vsel %vm1759_vm0, %v2361_v53, 0 }
 0x375   : > { %v1709_v43 = vmul.f32 0.125, %v1675_v59  ;;  %5509 = vmatprep.subr.bf16.mxu0 %v1753_v37 }
 0x376   : > { %v1710_v44 = vmul.f32 0.125, %v1677_v0 }
 0x377   : > { %v7652_v2 = vpack.c.bf16 %v1709_v43, %v1707_v58 }
 0x378   : > { %v7654_v5 = vpack.c.bf16 %v1710_v44, %v1708_v63  ;;  %5510 = vmatpush3.bf16.msra.mxu0 %v1745_v9  ;;  %5867 = vmatpush3.bf16.xpose.msra.mxu1 %v7678_v18 }
 0x379   : > { %5503 = vmatprep.mubr.msk.bf16.mxu1 %vm1759_vm0, %v7652_v2  ;;  %5511 = vmatprep.subr.bf16.mxu0 %v1754_v12 }
 0x37a   : > { %9452 = vst [vmem:[#allocation27_spill] sm:$0xff] %v7654_v5  ;;  %5504 = vmatmul.mubr.msk.bf16.gmra.mrb[28].mxu1 %vm1759_vm0, %v7652_v2  ;;  %5984 = vmatprep.subr.msk.bf16.mxu1 %vm1759_vm0, %v7680_v19 }
 0x37c   : > { %5512 = vmatpush3.bf16.msra.mxu0 %v1746_v16 }
 0x37d   : > { %5513 = vmatprep.subr.bf16.mxu0 %v1755_v20 }
 0x380   : > { %5514 = vmatpush3.bf16.msra.mxu0 %v1747_v27  ;;  %5868 = vmatpush3.bf16.xpose.msra.mxu1 %v7687_v54 }
 0x381   : > { %5515 = vmatprep.subr.bf16.mxu0 %v1756_v28 }
 0x384   : > { %5516 = vmatpush3.bf16.msra.mxu0 %v1748_v35 }
 0x385   : > { %5517 = vmatprep.subr.bf16.mxu0 %v1757_v36 }
 0x388   : > { %5518 = vmatpush3.bf16.msra.mxu0 %v1749_v41 }
 0x389   : > { %5519 = vmatprep.subr.bf16.mxu0 %v1758_v47 }
 0x38c   : > { %5520 = vmatpush3.bf16.msra.mxu0 %v1750_v49 }
 0x38d   : > { %5977 = vmatprep.subr.msk.bf16.mxu0 %vm1759_vm0, %v2371_v13 }
 0x415   : > { %v7690_v56 = vpop.f32.mrb[0].mxu1 }
 0x416   : > { %v7692_v57 = vpop.f32.mrb[1].mxu1 }
 0x417   : > { %v7694_v58 = vpop.f32.mrb[2].mxu1  ;;  %v1945_v59 = vmax.f32 %v7690_v56, %v7692_v57 }
 0x418   : > { %v7698_v61 = vpop.f32.mrb[3].mxu1 }
 0x419   : > { %1946 = vmax.xlane.f32.xlu0 %v1945_v59  ;;  %v1948_v63 = vmax.f32 %v7694_v58, %v7698_v61 }
 0x41d   : > { %1949 = vmax.xlane.f32.xlu0 %v1948_v63  ;;  %v7702_v0 = vpop.f32.mrb[4].mxu1 }
 0x41e   : > { %v7704_v43 = vpop.f32.mrb[5].mxu1 }
 0x41f   : > { %v7706_v44 = vpop.f32.mrb[6].mxu1  ;;  %v1951_v6 = vmax.f32 %v7702_v0, %v7704_v43 }
 0x420   : > { %v7710_v7 = vpop.f32.mrb[7].mxu1 }
 0x421   : > { %1952 = vmax.xlane.f32.xlu1 %v1951_v6  ;;  %v1954_v8 = vmax.f32 %v7706_v44, %v7710_v7 }
 0x425   : > { %1955 = vmax.xlane.f32.xlu1 %v1954_v8  ;;  %v7714_v26 = vpop.f32.mrb[8].mxu1 }
 0x426   : > { %v7716_v37 = vpop.f32.mrb[9].mxu1 }
 0x427   : > { %v7718_v9 = vpop.f32.mrb[10].mxu1  ;;  %v1957_v12 = vmax.f32 %v7714_v26, %v7716_v37 }
 0x428   : > { %v7722_v13 = vpop.f32.mrb[11].mxu1 }
 0x429   : > { %1958 = vmax.xlane.f32.xlu0 %v1957_v12  ;;  %v1960_v14 = vmax.f32 %v7718_v9, %v7722_v13 }
 0x42b   : > { %1961 = vmax.xlane.f32.xlu1 %v1960_v14 }
 0x42d   : > { %v7726_v16 = vpop.f32.mrb[12].mxu1 }
 0x42e   : > { %v7728_v20 = vpop.f32.mrb[13].mxu1 }
 0x42f   : > { %v7730_v25 = vpop.f32.mrb[14].mxu1  ;;  %v1963_v27 = vmax.f32 %v7726_v16, %v7728_v20 }
 0x430   : > { %v7734_v28 = vpop.f32.mrb[15].mxu1 }
 0x431   : > { %1964 = vmax.xlane.f32.xlu0 %v1963_v27  ;;  %v1966_v35 = vmax.f32 %v7730_v25, %v7734_v28 }
 0x433   : > { %1967 = vmax.xlane.f32.xlu1 %v1966_v35 }
 0x435   : > { %v7738_v36 = vpop.f32.mrb[16].mxu1 }
 0x436   : > { %v7740_v38 = vpop.f32.mrb[17].mxu1 }
 0x437   : > { %v7742_v41 = vpop.f32.mrb[18].mxu1  ;;  %v1969_v47 = vmax.f32 %v7738_v36, %v7740_v38 }
 0x438   : > { %v7746_v49 = vpop.f32.mrb[19].mxu1 }
 0x439   : > { %1970 = vmax.xlane.f32.xlu0 %v1969_v47  ;;  %v1972_v53 = vmax.f32 %v7742_v41, %v7746_v49 }
 0x43b   : > { %1973 = vmax.xlane.f32.xlu1 %v1972_v53 }
 0x43d   : > { %v7750_v59 = vpop.f32.mrb[20].mxu1 }
 0x43e   : > { %v7752_v63 = vpop.f32.mrb[21].mxu1 }
 0x43f   : > { %v7754_v6 = vpop.f32.mrb[22].mxu1  ;;  %v1975_v8 = vmax.f32 %v7750_v59, %v7752_v63 }
 0x440   : > { %v7758_v12 = vpop.f32.mrb[23].mxu1 }
 0x441   : > { %1976 = vmax.xlane.f32.xlu0 %v1975_v8  ;;  %v1978_v14 = vmax.f32 %v7754_v6, %v7758_v12 }
 0x443   : > { %1979 = vmax.xlane.f32.xlu1 %v1978_v14 }
 0x445   : > { %v7762_v27 = vpop.f32.mrb[24].mxu1 }
 0x446   : > { %v7764_v35 = vpop.f32.mrb[25].mxu1 }
 0x447   : > { %v7766_v47 = vpop.f32.mrb[26].mxu1  ;;  %v1981_v53 = vmax.f32 %v7762_v27, %v7764_v35 }
 0x448   : > { %v7770_v30 = vpop.f32.mrb[27].mxu1 }
 0x449   : > { %1982 = vmax.xlane.f32.xlu0 %v1981_v53  ;;  %v1984_v23 = vmax.f32 %v7766_v47, %v7770_v30 }
 0x44b   : > { %1985 = vmax.xlane.f32.xlu1 %v1984_v23 }
 0x44d   : > { %v7774_v8 = vpop.f32.mrb[28].mxu1 }
 0x44e   : > { %v7776_v17 = vpop.f32.mrb[29].mxu1 }
 0x44f   : > { %v1987_v14 = vmax.f32 %v7774_v8, %v7776_v17  ;;  %v7780_v5 = vpop.f32.mrb[30].mxu1 }
 0x450   : > { %v7782_v48 = vpop.f32.mrb[31].mxu1 }
 0x451   : > { %1988 = vmax.xlane.f32.xlu0 %v1987_v14  ;;  %v1990_v24 = vmax.f32 %v7780_v5, %v7782_v48 }
 0x45c   : > { %2378 = vrot.lane.b32.xlu1 %v7471_v45, %s6961_s5 }
 0x460   : > { %2364 = vrot.lane.b32.xlu1 %v7491_v60, %s6961_s5 }
 0x467   : > { %2362 = vrot.lane.b32.xlu0 %v7479_v51, %s6961_s5 }
 0x484   : > { %1991 = vmax.xlane.f32.xlu1 %v1990_v24 }
 0x495   : > { %2380 = vrot.lane.b32.xlu1 %v7483_v55, %s6961_s5 }
 0x4a6   : > { %v1947_v23 = vpop.xlane.xlu0 %1946 }
 0x4a7   : > { %v1993_v53 = vsub.f32 %v7690_v56, %v1947_v23  ;;  %v1994_v14 = vsub.f32 %v7692_v57, %v1947_v23 }
 0x4a9   : > { %v2025_v4 = vmul.f32 1.442695, %v1993_v53  ;;  %v2027_v52 = vmul.f32 1.442695, %v1994_v14 }
 0x4aa   : > { %v1950_v31 = vpop.xlane.xlu0 %1949 }
 0x4ab   : > { %6334 = vpow2.f32 %v2025_v4  ;;  %v1995_v45 = vsub.f32 %v7694_v58, %v1950_v31  ;;  %v1996_v60 = vsub.f32 %v7698_v61, %v1950_v31 }
 0x4ac   : > { %6336 = vpow2.f32 %v2027_v52 }
 0x4ad   : > { %v2029_v11 = vmul.f32 1.442695, %v1995_v45  ;;  %v2031_v51 = vmul.f32 1.442695, %v1996_v60 }
 0x4ae   : > { %v1953_v24 = vpop.xlane.xlu1 %1952 }
 0x4af   : > { %6338 = vpow2.f32 %v2029_v11  ;;  %v1997_v55 = vsub.f32 %v7702_v0, %v1953_v24  ;;  %v1998_v39 = vsub.f32 %v7704_v43, %v1953_v24 }
 0x4b0   : > { %6340 = vpow2.f32 %v2031_v51 }
 0x4b1   : > { %v2033_v56 = vmul.f32 1.442695, %v1997_v55  ;;  %v2035_v57 = vmul.f32 1.442695, %v1998_v39 }
 0x4b2   : > { %v1956_v23 = vpop.xlane.xlu1 %1955 }
 0x4b3   : > { %6342 = vpow2.f32 %v2033_v56  ;;  %v1999_v4 = vsub.f32 %v7706_v44, %v1956_v23  ;;  %v2000_v58 = vsub.f32 %v7710_v7, %v1956_v23 }
 0x4b4   : > { %6344 = vpow2.f32 %v2035_v57 }
 0x4b5   : > { %v7802_v31 = vpop.eup %6334  ;;  %v2037_v52 = vmul.f32 1.442695, %v1999_v4  ;;  %v2039_v61 = vmul.f32 1.442695, %v2000_v58 }
 0x4b6   : > { %v7804_v53 = vpop.eup %6336  ;;  %v1959_v11 = vpop.xlane.xlu0 %1958 }
 0x4b7   : > { %6346 = vpow2.f32 %v2037_v52  ;;  %v2001_v0 = vsub.f32 %v7714_v26, %v1959_v11  ;;  %v2002_v43 = vsub.f32 %v7716_v37, %v1959_v11  ;;  %v2089_v39 = vadd.f32 %v7804_v53, %v7802_v31 }
 0x4b8   : > { %6348 = vpow2.f32 %v2039_v61  ;;  %v1962_v44 = vpop.xlane.xlu1 %1961 }
 0x4b9   : > { %v7810_v14 = vpop.eup %6338  ;;  %v2041_v7 = vmul.f32 1.442695, %v2001_v0  ;;  %v2043_v45 = vmul.f32 1.442695, %v2002_v43  ;;  %v2003_v60 = vsub.f32 %v7718_v9, %v1962_v44  ;;  %v2004_v51 = vsub.f32 %v7722_v13, %v1962_v44  ;;  %2090 = vadd.xlane.f32.xlu0 %v2089_v39 }
 0x4ba   : > { %v7814_v24 = vpop.eup %6340 }
 0x4bb   : > { %6350 = vpow2.f32 %v2041_v7  ;;  %v2045_v26 = vmul.f32 1.442695, %v2003_v60  ;;  %v2047_v55 = vmul.f32 1.442695, %v2004_v51  ;;  %v2092_v37 = vadd.f32 %v7814_v24, %v7810_v14 }
 0x4bc   : > { %6352 = vpow2.f32 %v2043_v45 }
 0x4bd   : > { %v7818_v56 = vpop.eup %6342  ;;  %6354 = vpow2.f32 %v2045_v26  ;;  %2093 = vadd.xlane.f32.xlu1 %v2092_v37 }
 0x4be   : > { %v7820_v57 = vpop.eup %6344  ;;  %6356 = vpow2.f32 %v2047_v55  ;;  %v1965_v9 = vpop.xlane.xlu0 %1964 }
 0x4bf   : > { %v2005_v13 = vsub.f32 %v7726_v16, %v1965_v9  ;;  %v2006_v23 = vsub.f32 %v7728_v20, %v1965_v9  ;;  %v2095_v4 = vadd.f32 %v7820_v57, %v7818_v56 }
 0x4c0   : > { %v1968_v58 = vpop.xlane.xlu1 %1967 }
 0x4c1   : > { %v7826_v52 = vpop.eup %6346  ;;  %v2049_v61 = vmul.f32 1.442695, %v2005_v13  ;;  %v2051_v11 = vmul.f32 1.442695, %v2006_v23  ;;  %v2007_v0 = vsub.f32 %v7730_v25, %v1968_v58  ;;  %v2008_v43 = vsub.f32 %v7734_v28, %v1968_v58  ;;  %2096 = vadd.xlane.f32.xlu0 %v2095_v4 }
 0x4c2   : > { %v7830_v39 = vpop.eup %6348 }
 0x4c3   : > { %6358 = vpow2.f32 %v2049_v61  ;;  %v2053_v44 = vmul.f32 1.442695, %v2007_v0  ;;  %v2055_v16 = vmul.f32 1.442695, %v2008_v43  ;;  %v2098_v20 = vadd.f32 %v7830_v39, %v7826_v52 }
 0x4c4   : > { %6360 = vpow2.f32 %v2051_v11 }
 0x4c5   : > { %v7834_v7 = vpop.eup %6350  ;;  %6362 = vpow2.f32 %v2053_v44  ;;  %2099 = vadd.xlane.f32.xlu1 %v2098_v20 }
 0x4c6   : > { %v7836_v45 = vpop.eup %6352  ;;  %6364 = vpow2.f32 %v2055_v16  ;;  %v1971_v25 = vpop.xlane.xlu0 %1970 }
 0x4c7   : > { %v7838_v60 = vpop.eup %6354  ;;  %v2009_v28 = vsub.f32 %v7738_v36, %v1971_v25  ;;  %v2010_v51 = vsub.f32 %v7740_v38, %v1971_v25  ;;  %v2101_v26 = vadd.f32 %v7836_v45, %v7834_v7 }
 0x4c8   : > { %v7844_v55 = vpop.eup %6356  ;;  %v1974_v37 = vpop.xlane.xlu1 %1973 }
 0x4c9   : > { %v2057_v9 = vmul.f32 1.442695, %v2009_v28  ;;  %v2059_v13 = vmul.f32 1.442695, %v2010_v51  ;;  %v2011_v23 = vsub.f32 %v7742_v41, %v1974_v37  ;;  %v2012_v4 = vsub.f32 %v7746_v49, %v1974_v37  ;;  %2102 = vadd.xlane.f32.xlu0 %v2101_v26 }
 0x4ca   : > { %v2104_v58 = vadd.f32 %v7844_v55, %v7838_v60 }
 0x4cb   : > { %6366 = vpow2.f32 %v2057_v9  ;;  %v2061_v36 = vmul.f32 1.442695, %v2011_v23  ;;  %v2063_v61 = vmul.f32 1.442695, %v2012_v4 }
 0x4cc   : > { %6368 = vpow2.f32 %v2059_v13  ;;  %2105 = vadd.xlane.f32.xlu1 %v2104_v58 }
 0x4cd   : > { %v7850_v38 = vpop.eup %6358  ;;  %6370 = vpow2.f32 %v2061_v36 }
 0x4ce   : > { %v7852_v11 = vpop.eup %6360  ;;  %6372 = vpow2.f32 %v2063_v61  ;;  %v1977_v0 = vpop.xlane.xlu0 %1976 }
 0x4cf   : > { %v7854_v43 = vpop.eup %6362  ;;  %v2013_v41 = vsub.f32 %v7750_v59, %v1977_v0  ;;  %v2014_v49 = vsub.f32 %v7752_v63, %v1977_v0  ;;  %v2107_v44 = vadd.f32 %v7852_v11, %v7850_v38 }
 0x4d0   : > { %v7860_v16 = vpop.eup %6364  ;;  %v1980_v20 = vpop.xlane.xlu1 %1979 }
 0x4d1   : > { %v2065_v25 = vmul.f32 1.442695, %v2013_v41  ;;  %v2067_v28 = vmul.f32 1.442695, %v2014_v49  ;;  %v2015_v51 = vsub.f32 %v7754_v6, %v1980_v20  ;;  %v2016_v26 = vsub.f32 %v7758_v12, %v1980_v20  ;;  %2108 = vadd.xlane.f32.xlu0 %v2107_v44 }
 0x4d2   : > { %v2110_v37 = vadd.f32 %v7860_v16, %v7854_v43 }
 0x4d3   : > { %6374 = vpow2.f32 %v2065_v25  ;;  %v2069_v59 = vmul.f32 1.442695, %v2015_v51  ;;  %v2071_v9 = vmul.f32 1.442695, %v2016_v26 }
 0x4d4   : > { %6376 = vpow2.f32 %v2067_v28  ;;  %2111 = vadd.xlane.f32.xlu1 %v2110_v37 }
 0x4d5   : > { %v7866_v63 = vpop.eup %6366  ;;  %6378 = vpow2.f32 %v2069_v59 }
 0x4d6   : > { %v7868_v13 = vpop.eup %6368  ;;  %6380 = vpow2.f32 %v2071_v9  ;;  %v1983_v23 = vpop.xlane.xlu0 %1982 }
 0x4d7   : > { %v7870_v4 = vpop.eup %6370  ;;  %v2017_v6 = vsub.f32 %v7762_v27, %v1983_v23  ;;  %v2018_v12 = vsub.f32 %v7764_v35, %v1983_v23  ;;  %v2113_v58 = vadd.f32 %v7868_v13, %v7866_v63 }
 0x4d8   : > { %v7876_v36 = vpop.eup %6372  ;;  %v1986_v61 = vpop.xlane.xlu1 %1985 }
 0x4d9   : > { %v2073_v0 = vmul.f32 1.442695, %v2017_v6  ;;  %v2075_v41 = vmul.f32 1.442695, %v2018_v12  ;;  %v2019_v49 = vsub.f32 %v7766_v47, %v1986_v61  ;;  %v2020_v44 = vsub.f32 %v7770_v30, %v1986_v61  ;;  %2114 = vadd.xlane.f32.xlu1 %v2113_v58 }
 0x4da   : > { %v2116_v20 = vadd.f32 %v7876_v36, %v7870_v4 }
 0x4db   : > { %6382 = vpow2.f32 %v2073_v0  ;;  %v2077_v27 = vmul.f32 1.442695, %v2019_v49  ;;  %v2079_v25 = vmul.f32 1.442695, %v2020_v44 }
 0x4dc   : > { %6384 = vpow2.f32 %v2075_v41  ;;  %2117 = vadd.xlane.f32.xlu0 %v2116_v20  ;;  %v7882_v35 = vpop.permute.xlu1 %2378 }
 0x4dd   : > { %v7884_v28 = vpop.eup %6374  ;;  %6386 = vpow2.f32 %v2077_v27  ;;  %5986 = vmatprep.subr.msk.bf16.mxu1 %vm1759_vm0, %v7882_v35 }
 0x4de   : > { %v7888_v47 = vpop.eup %6376  ;;  %6388 = vpow2.f32 %v2079_v25  ;;  %v1989_v30 = vpop.xlane.xlu0 %1988 }
 0x4df   : > { %v7890_v51 = vpop.eup %6378  ;;  %v2119_v26 = vadd.f32 %v7888_v47, %v7884_v28  ;;  %v2021_v49 = vsub.f32 %v7774_v8, %v1989_v30  ;;  %v2022_v44 = vsub.f32 %v7776_v17, %v1989_v30 }
 0x4e0   : > { %v7894_v37 = vpop.eup %6380  ;;  %v2365_v25 = vpop.permute.xlu1 %2364 }
 0x4e1   : > { %2120 = vadd.xlane.f32.xlu1 %v2119_v26  ;;  %v2122_v59 = vadd.f32 %v7894_v37, %v7890_v51  ;;  %v2081_v20 = vmul.f32 1.442695, %v2021_v49  ;;  %v2083_v27 = vmul.f32 1.442695, %v2022_v44 }
 0x4e2   : > { %v2363_v9 = vpop.permute.xlu0 %2362 }
 0x4e3   : > { %2123 = vadd.xlane.f32.xlu0 %v2122_v59  ;;  %v7899_v23 = vsel %vm1759_vm0, %v2363_v9, 0  ;;  %6390 = vpow2.f32 %v2081_v20 }
 0x4e4   : > { %5869 = vmatpush3.bf16.xpose.msra.mxu1 %v7899_v23  ;;  %6392 = vpow2.f32 %v2083_v27 }
 0x4e5   : > { %v7902_v6 = vpop.eup %6382 }
 0x4e6   : > { %v7904_v12 = vpop.eup %6384 }
 0x4e7   : > { %v7906_v58 = vpop.eup %6386  ;;  %v2125_v61 = vadd.f32 %v7904_v12, %v7902_v6 }
 0x4e8   : > { %v7910_v0 = vpop.eup %6388 }
 0x4e9   : > { %2126 = vadd.xlane.f32.xlu1 %v2125_v61  ;;  %v2128_v41 = vadd.f32 %v7910_v0, %v7906_v58 }
 0x4eb   : > { %2129 = vadd.xlane.f32.xlu0 %v2128_v41 }
 0x4ed   : > { %v7930_v17 = vpop.eup %6390 }
 0x4ee   : > { %v7932_v8 = vpop.eup %6392 }
 0x4fa   : > { %2382 = vrot.lane.b32.xlu1 %v7495_v40, %s6961_s5 }
 0x501   : > { %2366 = vrot.lane.b32.xlu0 %v7503_v1, %s6961_s5  ;;  %v7925_v1 = vsel %vm1759_vm0, %v2365_v25, 0 }
 0x511   : > { %v1992_v26 = vpop.xlane.xlu1 %1991 }
 0x512   : > { %v2023_v59 = vsub.f32 %v7780_v5, %v1992_v26  ;;  %v2024_v9 = vsub.f32 %v7782_v48, %v1992_v26  ;;  %v2131_v48 = vadd.f32 %v7932_v8, %v7930_v17 }
 0x514   : > { %v2085_v61 = vmul.f32 1.442695, %v2023_v59  ;;  %v2087_v41 = vmul.f32 1.442695, %v2024_v9 }
 0x515   : > { %v7922_v40 = vpop.permute.xlu1 %2380 }
 0x516   : > { %6394 = vpow2.f32 %v2085_v61  ;;  %5988 = vmatprep.subr.msk.bf16.mxu1 %vm1759_vm0, %v7922_v40 }
 0x517   : > { %6396 = vpow2.f32 %v2087_v41  ;;  %5870 = vmatpush3.bf16.xpose.msra.mxu1 %v7925_v1 }
 0x51e   : > { %2132 = vadd.xlane.f32.xlu1 %v2131_v48 }
 0x520   : > { %v7936_v5 = vpop.eup %6394 }
 0x521   : > { %v7938_v30 = vpop.eup %6396 }
 0x522   : > { %v2134_v49 = vadd.f32 %v7938_v30, %v7936_v5 }
 0x524   : > { %2135 = vadd.xlane.f32.xlu0 %v2134_v49 }
 0x52f   : > { %2384 = vrot.lane.b32.xlu1 %v7525_v42, %s6961_s5 }
 0x533   : > { %2324 = vrot.lane.b32.xlu1 %v7580_v10, %s6961_s5 }
 0x537   : > { %2328 = vrot.lane.b32.xlu1 %v7604_v50, %s6961_s5 }
 0x53a   : > { %2368 = vrot.lane.b32.xlu0 %v7527_v46, %s6961_s5 }
 0x53b   : > { %2332 = vrot.lane.b32.xlu1 %v7628_v22, %s6961_s5 }
 0x53e   : > { %2322 = vrot.lane.b32.xlu0 %v7568_v62, %s6961_s5 }
 0x53f   : > { %2336 = vrot.lane.b32.xlu1 %v7652_v2, %s6961_s5 }
 0x542   : > { %2326 = vrot.lane.b32.xlu0 %v7592_v29, %s6961_s5 }
 0x546   : > { %v2091_v42 = vpop.xlane.xlu0 %2090  ;;  %2330 = vrot.lane.b32.xlu0 %v7616_v3, %s6961_s5 }
 0x547   : > { %6398 = vrcp.f32 %v2091_v42 }
 0x54a   : > { %2334 = vrot.lane.b32.xlu0 %v7640_v34, %s6961_s5  ;;  %v2094_v46 = vpop.xlane.xlu1 %2093 }
 0x54b   : > { %6400 = vrcp.f32 %v2094_v46 }
 0x54e   : > { %v2097_v10 = vpop.xlane.xlu0 %2096 }
 0x54f   : > { %6402 = vrcp.f32 %v2097_v10 }
 0x551   : > { %v6399_v62 = vpop.eup %6398 }
 0x552   : > { %v2100_v50 = vpop.xlane.xlu1 %2099  ;;  %v2153_v2 = vmul.f32 %v6399_v62, %v7802_v31  ;;  %v2154_v20 = vmul.f32 %v6399_v62, %v7804_v53 }
 0x553   : > { %6404 = vrcp.f32 %v2100_v50 }
 0x555   : > { %v6401_v22 = vpop.eup %6400 }
 0x556   : > { %v2155_v29 = vmul.f32 %v6401_v22, %v7810_v14  ;;  %v2103_v44 = vpop.xlane.xlu0 %2102  ;;  %v2156_v3 = vmul.f32 %v6401_v22, %v7814_v24 }
 0x557   : > { %6406 = vrcp.f32 %v2103_v44 }
 0x558   : > { %v2186_v27 = vpack.c.bf16 %v2156_v3, %v2154_v20  ;;  %v2185_v34 = vpack.c.bf16 %v2155_v29, %v2153_v2 }
 0x559   : > { %v2106_v25 = vpop.xlane.xlu1 %2105  ;;  %v6403_v26 = vpop.eup %6402 }
 0x55a   : > { %6408 = vrcp.f32 %v2106_v25  ;;  %2233 = vmatprep.mubr.bf16.mxu0 %v2186_v27  ;;  %v2158_v14 = vmul.f32 %v6403_v26, %v7820_v57  ;;  %v2157_v24 = vmul.f32 %v6403_v26, %v7818_v56 }
 0x55b   : > { %2234 = vmatmul.mubr.bf16.vlgmr.msra.gmra.mrb[32].mxu0 %v2185_v34 }
 0x55c   : > { %5570 = vmatpush3.bf16.xpose.msra.mxu0 %v7661_v15 }
 0x55d   : > { %v6405_v59 = vpop.eup %6404  ;;  %5979 = vmatprep.subr.msk.bf16.mxu0 %vm1759_vm0, %v7665_v21 }
 0x55e   : > { %v2109_v31 = vpop.xlane.xlu0 %2108  ;;  %v2160_v53 = vmul.f32 %v6405_v59, %v7830_v39  ;;  %v2159_v9 = vmul.f32 %v6405_v59, %v7826_v52 }
 0x55f   : > { %6410 = vrcp.f32 %v2109_v31 }
 0x560   : > { %v2188_v61 = vpack.c.bf16 %v2160_v53, %v2158_v14  ;;  %v2187_v41 = vpack.c.bf16 %v2159_v9, %v2157_v24 }
 0x561   : > { %v2112_v48 = vpop.xlane.xlu1 %2111  ;;  %v6407_v49 = vpop.eup %6406 }
 0x562   : > { %6412 = vrcp.f32 %v2112_v48  ;;  %2241 = vmatprep.mubr.bf16.mxu0 %v2188_v61  ;;  %v2162_v21 = vmul.f32 %v6407_v49, %v7836_v45  ;;  %v2161_v42 = vmul.f32 %v6407_v49, %v7834_v7 }
 0x563   : > { %2242 = vmatmul.mubr.bf16.gmra.mrb[36].mxu0 %v2187_v41 }
 0x564   : > { %v6409_v15 = vpop.eup %6408  ;;  %5572 = vmatpush3.bf16.xpose.msra.mxu0 %v7670_v32 }
 0x565   : > { %5981 = vmatprep.subr.msk.bf16.mxu0 %vm1759_vm0, %v7672_v33  ;;  %v2164_v56 = vmul.f32 %v6409_v15, %v7844_v55  ;;  %v2163_v57 = vmul.f32 %v6409_v15, %v7838_v60 }
 0x566   : > { %v2115_v52 = vpop.xlane.xlu1 %2114 }
 0x567   : > { %v2190_v39 = vpack.c.bf16 %v2164_v56, %v2162_v21  ;;  %6414 = vrcp.f32 %v2115_v52  ;;  %v2189_v10 = vpack.c.bf16 %v2163_v57, %v2161_v42 }
 0x569   : > { %v2118_v46 = vpop.xlane.xlu0 %2117  ;;  %2249 = vmatprep.mubr.bf16.mxu0 %v2190_v39  ;;  %v6411_v50 = vpop.eup %6410 }
 0x56a   : > { %6416 = vrcp.f32 %v2118_v46  ;;  %v2166_v33 = vmul.f32 %v6411_v50, %v7852_v11  ;;  %v2165_v62 = vmul.f32 %v6411_v50, %v7850_v38 }
 0x56b   : > { %2250 = vmatmul.mubr.bf16.gmra.mrb[40].mxu0 %v2189_v10 }
 0x56c   : > { %v6413_v32 = vpop.eup %6412  ;;  %5574 = vmatpush3.bf16.xpose.msra.mxu0 %v7678_v18 }
 0x56d   : > { %5983 = vmatprep.subr.msk.bf16.mxu0 %vm1759_vm0, %v7680_v19  ;;  %v2168_v45 = vmul.f32 %v6413_v32, %v7860_v16  ;;  %v2167_v60 = vmul.f32 %v6413_v32, %v7854_v43 }
 0x56e   : > { %v2121_v7 = vpop.xlane.xlu1 %2120 }
 0x56f   : > { %6418 = vrcp.f32 %v2121_v7  ;;  %v2192_v55 = vpack.c.bf16 %v2168_v45, %v2166_v33  ;;  %v2191_v2 = vpack.c.bf16 %v2167_v60, %v2165_v62  ;;  %v6725_v33 = vld [vmem:[#allocation3 + $0xc0] sm:$0xff] }
 0x570   : > { %v2124_v22 = vpop.xlane.xlu0 %2123 }
 0x571   : > { %6420 = vrcp.f32 %v2124_v22  ;;  %2257 = vmatprep.mubr.bf16.mxu0 %v2192_v55  ;;  %v6415_v29 = vpop.eup %6414 }
 0x572   : > { %v2170_v19 = vmul.f32 %v6415_v29, %v7868_v13  ;;  %v2169_v44 = vmul.f32 %v6415_v29, %v7866_v63 }
 0x573   : > { %2258 = vmatmul.mubr.bf16.gmra.mrb[44].mxu0 %v2191_v2  ;;  %v6724_v2 = vld [vmem:[#allocation3 + $0x20] sm:$0xff] }
 0x574   : > { %v6417_v18 = vpop.eup %6416  ;;  %5576 = vmatpush3.bf16.xpose.msra.mxu0 %v7687_v54 }
 0x575   : > { %5985 = vmatprep.subr.msk.bf16.mxu0 %vm1759_vm0, %v7882_v35  ;;  %v2172_v11 = vmul.f32 %v6417_v18, %v7876_v36  ;;  %v2171_v43 = vmul.f32 %v6417_v18, %v7870_v4 }
 0x576   : > { %v2127_v16 = vpop.xlane.xlu1 %2126 }
 0x577   : > { %6422 = vrcp.f32 %v2127_v16  ;;  %v2194_v38 = vpack.c.bf16 %v2172_v11, %v2170_v19  ;;  %v2193_v27 = vpack.c.bf16 %v2171_v43, %v2169_v44 }
 0x578   : > { %v2130_v20 = vpop.xlane.xlu0 %2129 }
 0x579   : > { %v6419_v3 = vpop.eup %6418  ;;  %6424 = vrcp.f32 %v2130_v20  ;;  %2265 = vmatprep.mubr.bf16.mxu0 %v2194_v38  ;;  %v6723_v38 = vld [vmem:[#allocation3 + $0xb0] sm:$0xff] }
 0x57a   : > { %v2383_v54 = vpop.permute.xlu1 %2382  ;;  %v2174_v4 = vmul.f32 %v6419_v3, %v7888_v47  ;;  %v2173_v26 = vmul.f32 %v6419_v3, %v7884_v28 }
 0x57b   : > { %v6421_v34 = vpop.eup %6420  ;;  %2266 = vmatmul.mubr.bf16.gmra.mrb[48].mxu0 %v2193_v27  ;;  %5990 = vmatprep.subr.msk.bf16.mxu1 %vm1759_vm0, %v2383_v54 }
 0x57c   : > { %5578 = vmatpush3.bf16.xpose.msra.mxu0 %v7899_v23  ;;  %v2367_v13 = vpop.permute.xlu0 %2366  ;;  %v2176_v36 = vmul.f32 %v6421_v34, %v7894_v37  ;;  %v2175_v63 = vmul.f32 %v6421_v34, %v7890_v51 }
 0x57d   : > { %v2429_v35 = vsel %vm1759_vm0, %v2367_v13, 0  ;;  %5987 = vmatprep.subr.msk.bf16.mxu0 %vm1759_vm0, %v7922_v40  ;;  %v6722_v13 = vld [vmem:[#allocation3 + $0x10] sm:$0xff] }
 0x57e   : > { %5871 = vmatpush3.bf16.xpose.msra.mxu1 %v2429_v35  ;;  %v2196_v25 = vpack.c.bf16 %v2176_v36, %v2174_v4  ;;  %v2195_v31 = vpack.c.bf16 %v2175_v63, %v2173_v26 }
 0x580   : > { %2273 = vmatprep.mubr.bf16.mxu0 %v2196_v25 }
 0x581   : > { %v6423_v59 = vpop.eup %6422 }
 0x582   : > { %v2178_v47 = vmul.f32 %v6423_v59, %v7904_v12  ;;  %v2177_v14 = vmul.f32 %v6423_v59, %v7902_v6  ;;  %v6721_v59 = vld [vmem:[#allocation3 + $0xa0] sm:$0xff] }
 0x583   : > { %v6425_v23 = vpop.eup %6424  ;;  %2274 = vmatmul.mubr.bf16.gmra.mrb[52].mxu0 %v2195_v31 }
 0x584   : > { %5580 = vmatpush3.bf16.xpose.msra.mxu0 %v7925_v1  ;;  %v2180_v37 = vmul.f32 %v6425_v23, %v7910_v0  ;;  %v2179_v40 = vmul.f32 %v6425_v23, %v7906_v58 }
 0x585   : > { %5989 = vmatprep.subr.msk.bf16.mxu0 %vm1759_vm0, %v2383_v54 }
 0x586   : > { %v2198_v51 = vpack.c.bf16 %v2180_v37, %v2178_v47  ;;  %v2197_v28 = vpack.c.bf16 %v2179_v40, %v2177_v14  ;;  %v6718_v14 = vld [vmem:[#allocation3] sm:$0xff] }
 0x588   : > { %2281 = vmatprep.mubr.bf16.mxu0 %v2198_v51 }
 0x58b   : > { %2282 = vmatmul.mubr.bf16.gmra.mrb[56].mxu0 %v2197_v28 }
 0x58c   : > { %5582 = vmatpush3.bf16.xpose.msra.mxu0 %v2429_v35 }
 0x5ab   : > { %v2133_v53 = vpop.xlane.xlu1 %2132 }
 0x5ac   : > { %6426 = vrcp.f32 %v2133_v53 }
 0x5af   : > { %v2385_v24 = vpop.permute.xlu1 %2384 }
 0x5b0   : > { %5991 = vmatprep.subr.msk.bf16.mxu0 %vm1759_vm0, %v2385_v24  ;;  %5992 = vmatprep.subr.msk.bf16.mxu1 %vm1759_vm0, %v2385_v24 }
 0x5b1   : > { %v2136_v12 = vpop.xlane.xlu0 %2135 }
 0x5b2   : > { %6428 = vrcp.f32 %v2136_v12 }
 0x5b3   : > { %v2325_v58 = vpop.permute.xlu1 %2324 }
 0x5b5   : > { %v2369_v0 = vpop.permute.xlu0 %2368 }
 0x5b6   : > { %v2432_v1 = vsel %vm1759_vm0, %v2369_v0, 0  ;;  %v6427_v9 = vpop.eup %6426 }
 0x5b7   : > { %5584 = vmatpush3.bf16.xpose.msra.mxu0 %v2432_v1  ;;  %5872 = vmatpush3.bf16.xpose.msra.mxu1 %v2432_v1  ;;  %v2329_v41 = vpop.permute.xlu1 %2328  ;;  %v2182_v49 = vmul.f32 %v6427_v9, %v7932_v8  ;;  %v2181_v21 = vmul.f32 %v6427_v9, %v7930_v17 }
 0x5b9   : > { %v2323_v6 = vpop.permute.xlu0 %2322 }
 0x5bb   : > { %v2333_v42 = vpop.permute.xlu1 %2332 }
 0x5bc   : > { %v6429_v61 = vpop.eup %6428 }
 0x5bd   : > { %v2327_v48 = vpop.permute.xlu0 %2326  ;;  %v2184_v15 = vmul.f32 %v6429_v61, %v7938_v30  ;;  %v2183_v56 = vmul.f32 %v6429_v61, %v7936_v5 }
 0x5bf   : > { %v2200_v57 = vpack.c.bf16 %v2184_v15, %v2182_v49  ;;  %v2199_v52 = vpack.c.bf16 %v2183_v56, %v2181_v21  ;;  %v2337_v17 = vpop.permute.xlu1 %2336 }
 0x5c1   : > { %v2331_v39 = vpop.permute.xlu0 %2330  ;;  %2289 = vmatprep.mubr.bf16.mxu0 %v2200_v57 }
 0x5c2   : > { %2290 = vmatmul.mubr.bf16.gmra.mrb[60].mxu0 %v2199_v52  ;;  %5593 = vmatprep.mubr.msk.bf16.mxu1 %vm1759_vm0, %v2331_v39 }
 0x5c3   : > { %5585 = vmatprep.mubr.msk.bf16.mxu0 %vm1759_vm0, %v2323_v6  ;;  %5594 = vmatmul.mubr.msk.bf16.vlgmr.msra.gmra.mrb[32].mxu1 %vm1759_vm0, %v2331_v39 }
 0x5c4   : > { %5595 = vmatprep.mubr.msk.bf16.mxu1 %vm1759_vm0, %v2333_v42 }
 0x5c5   : > { %v2335_v8 = vpop.permute.xlu0 %2334 }
 0x5ca   : > { %5586 = vmatmul.mubr.msk.bf16.vlgmr.msra.gmra.mrb[64].mxu0 %vm1759_vm0, %v2323_v6 }
 0x5cb   : > { %5587 = vmatprep.mubr.msk.bf16.mxu0 %vm1759_vm0, %v2325_v58  ;;  %5596 = vmatmul.mubr.msk.bf16.gmra.mrb[36].mxu1 %vm1759_vm0, %v2333_v42 }
 0x5cc   : > { %5597 = vmatprep.mubr.msk.bf16.mxu1 %vm1759_vm0, %v2335_v8 }
 0x5d2   : > { %5588 = vmatmul.mubr.msk.bf16.gmra.mrb[68].mxu0 %vm1759_vm0, %v2325_v58 }
 0x5d3   : > { %5589 = vmatprep.mubr.msk.bf16.mxu0 %vm1759_vm0, %v2327_v48  ;;  %5598 = vmatmul.mubr.msk.bf16.gmra.mrb[40].mxu1 %vm1759_vm0, %v2335_v8 }
 0x5d4   : > { %5599 = vmatprep.mubr.msk.bf16.mxu1 %vm1759_vm0, %v2337_v17 }
 0x5da   : > { %5590 = vmatmul.mubr.msk.bf16.gmra.mrb[72].mxu0 %vm1759_vm0, %v2327_v48 }
 0x5db   : > { %5591 = vmatprep.mubr.msk.bf16.mxu0 %vm1759_vm0, %v2329_v41  ;;  %5600 = vmatmul.mubr.msk.bf16.gmra.mrb[44].mxu1 %vm1759_vm0, %v2337_v17 }
 0x5e2   : > { %5592 = vmatmul.mubr.msk.bf16.gmra.mrb[76].mxu0 %vm1759_vm0, %v2329_v41 }
 0x62e   : > { %v5521_v5 = vpop.f32.mrb[32].mxu0 }
 0x62f   : > { %v5522_v30 = vpop.f32.mrb[33].mxu0 }
 0x630   : > { %v8032_v46 = vadd.f32 %v5522_v30, %v5521_v5  ;;  %v5524_v10 = vpop.f32.mrb[34].mxu0 }
 0x631   : > { %v5525_v50 = vpop.f32.mrb[35].mxu0 }
 0x632   : > { %v8034_v32 = vadd.f32 %v5525_v50, %v5524_v10 }
 0x636   : > { %v5527_v45 = vpop.f32.mrb[36].mxu0 }
 0x637   : > { %v5528_v60 = vpop.f32.mrb[37].mxu0 }
 0x638   : > { %v8038_v7 = vadd.f32 %v5528_v60, %v5527_v45  ;;  %v5530_v55 = vpop.f32.mrb[38].mxu0 }
 0x639   : > { %v5531_v62 = vpop.f32.mrb[39].mxu0 }
 0x63a   : > { %v8040_v22 = vadd.f32 %v5531_v62, %v5530_v55 }
 0x63e   : > { %v5533_v29 = vpop.f32.mrb[40].mxu0 }
 0x63f   : > { %v5534_v18 = vpop.f32.mrb[41].mxu0 }
 0x640   : > { %v8044_v19 = vadd.f32 %v5534_v18, %v5533_v29  ;;  %v5536_v11 = vpop.f32.mrb[42].mxu0 }
 0x641   : > { %v5537_v43 = vpop.f32.mrb[43].mxu0 }
 0x642   : > { %v8046_v16 = vadd.f32 %v5537_v43, %v5536_v11 }
 0x646   : > { %v5539_v44 = vpop.f32.mrb[44].mxu0 }
 0x647   : > { %v5540_v20 = vpop.f32.mrb[45].mxu0 }
 0x648   : > { %v8050_v3 = vadd.f32 %v5540_v20, %v5539_v44  ;;  %v5542_v27 = vpop.f32.mrb[46].mxu0 }
 0x649   : > { %v5543_v54 = vpop.f32.mrb[47].mxu0 }
 0x64a   : > { %v8052_v34 = vadd.f32 %v5543_v54, %v5542_v27 }
 0x64e   : > { %v5545_v4 = vpop.f32.mrb[48].mxu0 }
 0x64f   : > { %v5546_v36 = vpop.f32.mrb[49].mxu0 }
 0x650   : > { %v8056_v35 = vadd.f32 %v5546_v36, %v5545_v4  ;;  %v5548_v63 = vpop.f32.mrb[50].mxu0 }
 0x651   : > { %v5549_v25 = vpop.f32.mrb[51].mxu0 }
 0x652   : > { %v8058_v26 = vadd.f32 %v5549_v25, %v5548_v63 }
 0x656   : > { %v5551_v31 = vpop.f32.mrb[52].mxu0 }
 0x657   : > { %v5552_v23 = vpop.f32.mrb[53].mxu0 }
 0x658   : > { %v8062_v47 = vadd.f32 %v5552_v23, %v5551_v31  ;;  %v5554_v37 = vpop.f32.mrb[54].mxu0 }
 0x659   : > { %v5555_v40 = vpop.f32.mrb[55].mxu0 }
 0x65a   : > { %9453 = vst [vmem:[#allocation28_spill] sm:$0xff] %v8062_v47  ;;  %v8064_v51 = vadd.f32 %v5555_v40, %v5554_v37 }
 0x65c   : > { %9454 = vst [vmem:[#allocation29_spill] sm:$0xff] %v8064_v51 }
 0x65e   : > { %v5557_v28 = vpop.f32.mrb[56].mxu0 }
 0x65f   : > { %v5558_v53 = vpop.f32.mrb[57].mxu0 }
 0x660   : > { %v8068_v24 = vadd.f32 %v5558_v53, %v5557_v28  ;;  %v5560_v12 = vpop.f32.mrb[58].mxu0 }
 0x661   : > { %v5561_v0 = vpop.f32.mrb[59].mxu0 }
 0x662   : > { %9455 = vst [vmem:[#allocation30_spill] sm:$0xff] %v8068_v24  ;;  %v8070_v1 = vadd.f32 %v5561_v0, %v5560_v12 }
 0x664   : > { %9456 = vst [vmem:[#allocation31_spill] sm:$0xff] %v8070_v1 }
 0x695   : > { %v5563_v6 = vpop.f32.mrb[60].mxu0 }
 0x696   : > { %v5564_v9 = vpop.f32.mrb[61].mxu0  ;;  %v8074_v61 = vpop.f32.mrb[32].mxu1 }
 0x697   : > { %v8076_v41 = vadd.f32 %v5564_v9, %v5563_v6  ;;  %v5566_v48 = vpop.f32.mrb[62].mxu0  ;;  %v8078_v49 = vpop.f32.mrb[33].mxu1 }
 0x698   : > { %v5567_v15 = vpop.f32.mrb[63].mxu0  ;;  %v8080_v21 = vpop.f32.mrb[34].mxu1  ;;  %v2595_v56 = vmax.f32 %v8074_v61, %v8078_v49 }
 0x699   : > { %9457 = vst [vmem:[#allocation32_spill] sm:$0xff] %v8076_v41  ;;  %v8084_v57 = vadd.f32 %v5567_v15, %v5566_v48  ;;  %v8086_v52 = vpop.f32.mrb[35].mxu1 }
 0x69a   : > { %2596 = vmax.xlane.f32.xlu0 %v2595_v56  ;;  %v2598_v39 = vmax.f32 %v8080_v21, %v8086_v52 }
 0x69b   : > { %9458 = vst [vmem:[#allocation33_spill] sm:$0xff] %v8084_v57 }
 0x69c   : > { %2599 = vmax.xlane.f32.xlu1 %v2598_v39 }
 0x69d   : > { %v8092_v8 = vpop.f32.mrb[64].mxu0 }
 0x69e   : > { %v8094_v17 = vpop.f32.mrb[65].mxu0  ;;  %v8096_v5 = vpop.f32.mrb[36].mxu1 }
 0x69f   : > { %v8098_v30 = vpop.f32.mrb[66].mxu0  ;;  %v8100_v10 = vpop.f32.mrb[37].mxu1  ;;  %v2571_v50 = vmax.f32 %v8092_v8, %v8094_v17 }
 0x6a0   : > { %v8104_v45 = vpop.f32.mrb[67].mxu0  ;;  %v8106_v60 = vpop.f32.mrb[38].mxu1  ;;  %v2601_v55 = vmax.f32 %v8096_v5, %v8100_v10 }
 0x6a1   : > { %v8110_v62 = vpop.f32.mrb[39].mxu1  ;;  %v2574_v29 = vmax.f32 %v8098_v30, %v8104_v45 }
 0x6a2   : > { %2602 = vmax.xlane.f32.xlu0 %v2601_v55  ;;  %v2604_v18 = vmax.f32 %v8106_v60, %v8110_v62 }
 0x6a4   : > { %2605 = vmax.xlane.f32.xlu1 %v2604_v18 }
 0x6a5   : > { %v8116_v11 = vpop.f32.mrb[68].mxu0 }
 0x6a6   : > { %v8118_v43 = vpop.f32.mrb[69].mxu0  ;;  %v8120_v44 = vpop.f32.mrb[40].mxu1 }
 0x6a7   : > { %v8122_v20 = vpop.f32.mrb[70].mxu0  ;;  %v8124_v27 = vpop.f32.mrb[41].mxu1  ;;  %v2577_v54 = vmax.f32 %v8116_v11, %v8118_v43 }
 0x6a8   : > { %v8128_v4 = vpop.f32.mrb[71].mxu0  ;;  %v8130_v36 = vpop.f32.mrb[42].mxu1  ;;  %v2607_v63 = vmax.f32 %v8120_v44, %v8124_v27 }
 0x6a9   : > { %v8134_v25 = vpop.f32.mrb[43].mxu1  ;;  %v2580_v31 = vmax.f32 %v8122_v20, %v8128_v4 }
 0x6aa   : > { %2608 = vmax.xlane.f32.xlu0 %v2607_v63  ;;  %v2610_v23 = vmax.f32 %v8130_v36, %v8134_v25 }
 0x6ac   : > { %2611 = vmax.xlane.f32.xlu1 %v2610_v23 }
 0x6ad   : > { %v8140_v37 = vpop.f32.mrb[72].mxu0 }
 0x6ae   : > { %v8142_v40 = vpop.f32.mrb[73].mxu0  ;;  %v8144_v28 = vpop.f32.mrb[44].mxu1 }
 0x6af   : > { %v8146_v53 = vpop.f32.mrb[74].mxu0  ;;  %v8148_v12 = vpop.f32.mrb[45].mxu1  ;;  %v2583_v0 = vmax.f32 %v8140_v37, %v8142_v40 }
 0x6b0   : > { %v8152_v6 = vpop.f32.mrb[75].mxu0  ;;  %v8154_v9 = vpop.f32.mrb[46].mxu1  ;;  %v2613_v48 = vmax.f32 %v8144_v28, %v8148_v12 }
 0x6b1   : > { %v8158_v15 = vpop.f32.mrb[47].mxu1  ;;  %v2586_v56 = vmax.f32 %v8146_v53, %v8152_v6 }
 0x6b2   : > { %2614 = vmax.xlane.f32.xlu0 %v2613_v48  ;;  %v2616_v39 = vmax.f32 %v8154_v9, %v8158_v15  ;;  %v6719_v48 = vld [vmem:[#allocation3 + $0x80] sm:$0xff] }
 0x6b4   : > { %2617 = vmax.xlane.f32.xlu1 %v2616_v39  ;;  %v6720_v39 = vld [vmem:[#allocation3 + $0x90] sm:$0xff] }
 0x6b5   : > { %v8164_v55 = vpop.f32.mrb[76].mxu0 }
 0x6b6   : > { %v8166_v18 = vpop.f32.mrb[77].mxu0 }
 0x6b7   : > { %v8168_v63 = vpop.f32.mrb[78].mxu0  ;;  %v2589_v23 = vmax.f32 %v8164_v55, %v8166_v18 }
 0x6b8   : > { %v8172_v42 = vpop.f32.mrb[79].mxu0 }
 0x6b9   : > { %v2592_v58 = vmax.f32 %v8168_v63, %v8172_v42 }
 0x6c5   : > { %2843 = vrot.lane.b32.xlu1 %v6718_v14, %s6961_s5  ;;  %v6726_v14 = vld [vmem:[#allocation3 + $0x30] sm:$0xff] }
 0x6c8   : > { %2859 = vrot.lane.b32.xlu0 %v6719_v48, %s6961_s5  ;;  %v6727_v48 = vld [vmem:[#allocation3 + $0xd0] sm:$0xff] }
 0x6c9   : > { %2861 = vrot.lane.b32.xlu1 %v6720_v39, %s6961_s5  ;;  %v6728_v39 = vld [vmem:[#allocation3 + $0x40] sm:$0xff] }
 0x6cc   : > { %2863 = vrot.lane.b32.xlu0 %v6721_v59, %s6961_s5  ;;  %v6729_v59 = vld [vmem:[#allocation3 + $0x50] sm:$0xff] }
 0x6cd   : > { %2845 = vrot.lane.b32.xlu1 %v6722_v13, %s6961_s5 }
 0x6d0   : > { %2865 = vrot.lane.b32.xlu0 %v6723_v38, %s6961_s5 }
 0x6d1   : > { %2847 = vrot.lane.b32.xlu1 %v6724_v2, %s6961_s5  ;;  %v6731_v2 = vld [vmem:[#allocation3 + $0xe0] sm:$0xff] }
 0x6d4   : > { %2867 = vrot.lane.b32.xlu0 %v6725_v33, %s6961_s5  ;;  %v6730_v33 = vld [vmem:[#allocation3 + $0x60] sm:$0xff] }
 0x6d5   : > { %2849 = vrot.lane.b32.xlu1 %v6726_v14, %s6961_s5 }
 0x6d8   : > { %2869 = vrot.lane.b32.xlu0 %v6727_v48, %s6961_s5 }
 0x6d9   : > { %2851 = vrot.lane.b32.xlu1 %v6728_v39, %s6961_s5 }
 0x6dd   : > { %2853 = vrot.lane.b32.xlu1 %v6729_v59, %s6961_s5 }
 0x6f7   : > { %2572 = vmax.xlane.f32.xlu0 %v2571_v50 }
 0x6fb   : > { %2578 = vmax.xlane.f32.xlu0 %v2577_v54 }
 0x6ff   : > { %2581 = vmax.xlane.f32.xlu0 %v2580_v31 }
 0x701   : > { %2575 = vmax.xlane.f32.xlu1 %v2574_v29 }
 0x703   : > { %2584 = vmax.xlane.f32.xlu0 %v2583_v0 }
 0x705   : > { %2587 = vmax.xlane.f32.xlu1 %v2586_v56 }
 0x707   : > { %2590 = vmax.xlane.f32.xlu0 %v2589_v23 }
 0x709   : > { %2593 = vmax.xlane.f32.xlu1 %v2592_v58 }
 0x71a   : > { %2855 = vrot.lane.b32.xlu1 %v6730_v33, %s6961_s5 }
 0x71d   : > { %2871 = vrot.lane.b32.xlu0 %v6731_v2, %s6961_s5 }
 0x727   : > { %v8196_v38 = vpop.xlane.xlu0 %2596 }
 0x729   : > { %v8198_v13 = vpop.xlane.xlu1 %2599 }
 0x72f   : > { %v8200_v50 = vpop.xlane.xlu0 %2602 }
 0x731   : > { %v8202_v54 = vpop.xlane.xlu1 %2605 }
 0x737   : > { %v8204_v31 = vpop.xlane.xlu0 %2608 }
 0x739   : > { %v8206_v29 = vpop.xlane.xlu1 %2611 }
 0x73f   : > { %v8208_v0 = vpop.xlane.xlu0 %2614 }
 0x741   : > { %v8210_v58 = vpop.xlane.xlu1 %2617 }
 0x743   : > { %v2860_v56 = vpop.permute.xlu0 %2859 }
 0x744   : > { %5601 = vmatprep.subr.bf16.mxu0 %v2860_v56 }
 0x745   : > { %v2844_v23 = vpop.permute.xlu1 %2843 }
 0x746   : > { %5602 = vmatpush3.bf16.msra.mxu0 %v2844_v23 }
 0x747   : > { %v2864_v14 = vpop.permute.xlu0 %2863 }
 0x749   : > { %v2862_v48 = vpop.permute.xlu1 %2861 }
 0x74a   : > { %5603 = vmatprep.subr.bf16.mxu0 %v2862_v48 }
 0x74b   : > { %v2866_v59 = vpop.permute.xlu0 %2865 }
 0x74d   : > { %v2846_v39 = vpop.permute.xlu1 %2845 }
 0x74e   : > { %5604 = vmatpush3.bf16.msra.mxu0 %v2846_v39 }
 0x74f   : > { %5605 = vmatprep.subr.bf16.mxu0 %v2864_v14  ;;  %v2868_v2 = vpop.permute.xlu0 %2867 }
 0x751   : > { %v2848_v33 = vpop.permute.xlu1 %2847 }
 0x752   : > { %5606 = vmatpush3.bf16.msra.mxu0 %v2848_v33 }
 0x753   : > { %5607 = vmatprep.subr.bf16.mxu0 %v2866_v59  ;;  %v2870_v24 = vpop.permute.xlu0 %2869 }
 0x755   : > { %v2850_v41 = vpop.permute.xlu1 %2849 }
 0x756   : > { %5608 = vmatpush3.bf16.msra.mxu0 %v2850_v41 }
 0x757   : > { %5609 = vmatprep.subr.bf16.mxu0 %v2868_v2 }
 0x759   : > { %v2852_v57 = vpop.permute.xlu1 %2851 }
 0x75a   : > { %5610 = vmatpush3.bf16.msra.mxu0 %v2852_v57 }
 0x75b   : > { %5611 = vmatprep.subr.bf16.mxu0 %v2870_v24 }
 0x75d   : > { %v2854_v56 = vpop.permute.xlu1 %2853 }
 0x75e   : > { %5612 = vmatpush3.bf16.msra.mxu0 %v2854_v56 }
 0x784   : > { %v2573_v23 = vpop.xlane.xlu0 %2572 }
 0x785   : > { %v2619_v48 = vsub.f32 %v8092_v8, %v2573_v23  ;;  %v2620_v1 = vsub.f32 %v8094_v17, %v2573_v23 }
 0x787   : > { %v2651_v39 = vmul.f32 1.442695, %v2619_v48  ;;  %v2653_v14 = vmul.f32 1.442695, %v2620_v1 }
 0x788   : > { %v2579_v47 = vpop.xlane.xlu0 %2578 }
 0x789   : > { %6430 = vpow2.f32 %v2651_v39  ;;  %v2623_v59 = vsub.f32 %v8116_v11, %v2579_v47  ;;  %v2624_v41 = vsub.f32 %v8118_v43, %v2579_v47 }
 0x78a   : > { %6432 = vpow2.f32 %v2653_v14 }
 0x78b   : > { %v2659_v33 = vmul.f32 1.442695, %v2623_v59  ;;  %v2661_v2 = vmul.f32 1.442695, %v2624_v41 }
 0x78c   : > { %v2582_v57 = vpop.xlane.xlu0 %2581 }
 0x78d   : > { %6434 = vpow2.f32 %v2659_v33  ;;  %v2625_v24 = vsub.f32 %v8122_v20, %v2582_v57  ;;  %v2626_v56 = vsub.f32 %v8128_v4, %v2582_v57 }
 0x78e   : > { %6436 = vpow2.f32 %v2661_v2  ;;  %v2576_v8 = vpop.xlane.xlu1 %2575 }
 0x78f   : > { %v2663_v17 = vmul.f32 1.442695, %v2625_v24  ;;  %v2665_v23 = vmul.f32 1.442695, %v2626_v56  ;;  %v2621_v1 = vsub.f32 %v8098_v30, %v2576_v8  ;;  %v2622_v48 = vsub.f32 %v8104_v45, %v2576_v8 }
 0x790   : > { %v2585_v11 = vpop.xlane.xlu0 %2584 }
 0x791   : > { %6438 = vpow2.f32 %v2663_v17  ;;  %v2655_v47 = vmul.f32 1.442695, %v2621_v1  ;;  %v2657_v43 = vmul.f32 1.442695, %v2622_v48  ;;  %v2627_v39 = vsub.f32 %v8140_v37, %v2585_v11 }
 0x792   : > { %6440 = vpow2.f32 %v2665_v23  ;;  %v2628_v14 = vsub.f32 %v8142_v40, %v2585_v11  ;;  %v2588_v20 = vpop.xlane.xlu1 %2587 }
 0x793   : > { %v8222_v59 = vpop.eup %6430  ;;  %6442 = vpow2.f32 %v2655_v47  ;;  %v2667_v4 = vmul.f32 1.442695, %v2627_v39  ;;  %v2629_v41 = vsub.f32 %v8146_v53, %v2588_v20  ;;  %v2630_v30 = vsub.f32 %v8152_v6, %v2588_v20 }
 0x794   : > { %v8226_v33 = vpop.eup %6432  ;;  %6444 = vpow2.f32 %v2657_v43  ;;  %v2669_v45 = vmul.f32 1.442695, %v2628_v14  ;;  %v2591_v2 = vpop.xlane.xlu0 %2590 }
 0x795   : > { %6446 = vpow2.f32 %v2667_v4  ;;  %v2671_v57 = vmul.f32 1.442695, %v2629_v41  ;;  %v2673_v37 = vmul.f32 1.442695, %v2630_v30  ;;  %v2715_v40 = vadd.f32 %v8226_v33, %v8222_v59 }
 0x796   : > { %6448 = vpow2.f32 %v2669_v45  ;;  %v2594_v24 = vpop.xlane.xlu1 %2593  ;;  %v6732_v45 = vld [vmem:[#allocation3 + $0xf0] sm:$0xff] }
 0x797   : > { %v8230_v56 = vpop.eup %6434  ;;  %2716 = vadd.xlane.f32.xlu0 %v2715_v40  ;;  %6450 = vpow2.f32 %v2671_v57  ;;  %v6733_v57 = vld [vmem:[#allocation3 + $0x70] sm:$0xff]  ;;  %v2632_v40 = vsub.f32 %v8166_v18, %v2591_v2  ;;  %v2638_v18 = vsub.f32 %v8086_v52, %v8198_v13 }
 0x798   : > { %v8232_v8 = vpop.eup %6436  ;;  %v2872_v53 = vpop.permute.xlu0 %2871  ;;  %6452 = vpow2.f32 %v2673_v37  ;;  %v2631_v37 = vsub.f32 %v8164_v55, %v2591_v2 }
 0x799   : > { %v2721_v6 = vadd.f32 %v8232_v8, %v8230_v56  ;;  %5613 = vmatprep.subr.bf16.mxu0 %v2872_v53  ;;  %v2635_v53 = vsub.f32 %v8074_v61, %v8196_v38  ;;  %v2641_v61 = vsub.f32 %v8106_v60, %v8202_v54 }
 0x79a   : > { %v2856_v17 = vpop.permute.xlu1 %2855 }
 0x79b   : > { %v8236_v23 = vpop.eup %6438  ;;  %5614 = vmatpush3.bf16.msra.mxu0 %v2856_v17  ;;  %2722 = vadd.xlane.f32.xlu0 %v2721_v6  ;;  %v2675_v6 = vmul.f32 1.442695, %v2631_v37  ;;  %v2636_v17 = vsub.f32 %v8078_v49, %v8196_v38  ;;  %v2642_v49 = vsub.f32 %v8110_v62, %v8202_v54  ;;  %v2639_v38 = vsub.f32 %v8096_v5, %v8200_v50 }
 0x79c   : > { %v8238_v1 = vpop.eup %6440  ;;  %v2695_v52 = vmul.f32 1.442695, %v2641_v61  ;;  %v2646_v62 = vsub.f32 %v8134_v25, %v8206_v29  ;;  %v2643_v5 = vsub.f32 %v8120_v44, %v8204_v31  ;;  %v2649_v37 = vsub.f32 %v8154_v9, %v8210_v58 }
 0x79d   : > { %v8240_v48 = vpop.eup %6442  ;;  %v2724_v4 = vadd.f32 %v8238_v1, %v8236_v23  ;;  %6454 = vpow2.f32 %v2675_v6  ;;  %v2685_v55 = vmul.f32 1.442695, %v2636_v17  ;;  %v2697_v60 = vmul.f32 1.442695, %v2642_v49 }
 0x79e   : > { %v8242_v11 = vpop.eup %6444  ;;  %v2691_v54 = vmul.f32 1.442695, %v2639_v38  ;;  %v2705_v25 = vmul.f32 1.442695, %v2646_v62  ;;  %v2699_v44 = vmul.f32 1.442695, %v2643_v5 }
 0x79f   : > { %v8244_v47 = vpop.eup %6446  ;;  %v2718_v43 = vadd.f32 %v8242_v11, %v8240_v48  ;;  %v2711_v9 = vmul.f32 1.442695, %v2649_v37  ;;  %v3366_v37 = vld [vmem:[#allocation2 + $0x88] sm:$0xff] }
 0x7a0   : > { %v8248_v39 = vpop.eup %6448 }
 0x7a1   : > { %2719 = vadd.xlane.f32.xlu1 %v2718_v43  ;;  %v2727_v14 = vadd.f32 %v8248_v39, %v8244_v47  ;;  %v8252_v20 = vpop.eup %6450  ;;  %v2677_v43 = vmul.f32 1.442695, %v2632_v40 }
 0x7a2   : > { %v8256_v41 = vpop.eup %6452 }
 0x7a3   : > { %2728 = vadd.xlane.f32.xlu0 %v2727_v14  ;;  %v2730_v30 = vadd.f32 %v8256_v41, %v8252_v20  ;;  %v2633_v14 = vsub.f32 %v8168_v63, %v2594_v24  ;;  %6456 = vpow2.f32 %v2677_v43 }
 0x7a5   : > { %2725 = vadd.xlane.f32.xlu1 %v2724_v4  ;;  %v2634_v4 = vsub.f32 %v8172_v42, %v2594_v24  ;;  %v2679_v2 = vmul.f32 1.442695, %v2633_v14  ;;  %v2640_v24 = vsub.f32 %v8100_v10, %v8200_v50  ;;  %v2644_v10 = vsub.f32 %v8124_v27, %v8204_v31 }
 0x7a6   : > { %v2648_v31 = vsub.f32 %v8148_v12, %v8208_v0 }
 0x7a7   : > { %v2681_v63 = vmul.f32 1.442695, %v2634_v4  ;;  %v8290_v50 = vpop.eup %6454  ;;  %v2701_v27 = vmul.f32 1.442695, %v2644_v10 }
 0x7a8   : > { %v2709_v12 = vmul.f32 1.442695, %v2648_v31  ;;  %v3360_v31 = vld [vmem:[#allocation2 + $0x28] sm:$0xff] }
 0x7a9   : > { %2731 = vadd.xlane.f32.xlu1 %v2730_v30  ;;  %v2683_v30 = vmul.f32 1.442695, %v2635_v53  ;;  %v2647_v53 = vsub.f32 %v8144_v28, %v8208_v0 }
 0x7ab   : > { %6458 = vpow2.f32 %v2683_v30  ;;  %v2707_v28 = vmul.f32 1.442695, %v2647_v53  ;;  %v3359_v53 = vld [vmem:[#allocation2 + $0x18] sm:$0xff] }
 0x7ac   : > { %6460 = vpow2.f32 %v2685_v55 }
 0x7ad   : > { %6462 = vpow2.f32 %v2679_v2  ;;  %v8294_v40 = vpop.eup %6456 }
 0x7ae   : > { %6464 = vpow2.f32 %v2681_v63  ;;  %v2733_v17 = vadd.f32 %v8294_v40, %v8290_v50 }
 0x7b5   : > { %v8302_v6 = vpop.eup %6458 }
 0x7b6   : > { %v8306_v43 = vpop.eup %6460 }
 0x7b7   : > { %v2739_v4 = vadd.f32 %v8306_v43, %v8302_v6 }
 0x7b9   : > { %2873 = vrot.lane.b32.xlu0 %v6732_v45, %s6961_s5  ;;  %v2637_v45 = vsub.f32 %v8080_v21, %v8198_v13  ;;  %v2689_v21 = vmul.f32 1.442695, %v2638_v18  ;;  %v2645_v13 = vsub.f32 %v8130_v36, %v8206_v29  ;;  %v2650_v29 = vsub.f32 %v8158_v15, %v8210_v58  ;;  %v8308_v58 = vpop.eup %6462 }
 0x7ba   : > { %2857 = vrot.lane.b32.xlu1 %v6733_v57, %s6961_s5  ;;  %v2693_v57 = vmul.f32 1.442695, %v2640_v24  ;;  %v8310_v14 = vpop.eup %6464 }
 0x7bb   : > { %v2687_v42 = vmul.f32 1.442695, %v2637_v45  ;;  %v2703_v36 = vmul.f32 1.442695, %v2645_v13  ;;  %v2713_v15 = vmul.f32 1.442695, %v2650_v29  ;;  %v2736_v55 = vadd.f32 %v8310_v14, %v8308_v58 }
 0x7bc   : > { %v3358_v29 = vld [vmem:[#allocation2 + $0x8] sm:$0xff] }
 0x7bd   : > { %6466 = vpow2.f32 %v2687_v42 }
 0x7be   : > { %6468 = vpow2.f32 %v2689_v21 }
 0x7bf   : > { %6470 = vpow2.f32 %v2695_v52 }
 0x7c0   : > { %6472 = vpow2.f32 %v2697_v60 }
 0x7c1   : > { %6474 = vpow2.f32 %v2691_v54 }
 0x7c2   : > { %6476 = vpow2.f32 %v2693_v57 }
 0x7c3   : > { %6478 = vpow2.f32 %v2703_v36 }
 0x7c4   : > { %6480 = vpow2.f32 %v2705_v25  ;;  %v3367_v25 = vld [vmem:[#allocation2 + $0x98] sm:$0xff] }
 0x7c5   : > { %6482 = vpow2.f32 %v2699_v44  ;;  %v3368_v44 = vld [vmem:[#allocation2 + $0xa8] sm:$0xff] }
 0x7c6   : > { %6484 = vpow2.f32 %v2701_v27  ;;  %v3369_v27 = vld [vmem:[#allocation2 + $0xb8] sm:$0xff] }
 0x7c7   : > { %v8312_v0 = vpop.eup %6466  ;;  %6486 = vpow2.f32 %v2711_v9  ;;  %v3361_v9 = vld [vmem:[#allocation2 + $0x38] sm:$0xff] }
 0x7c8   : > { %v8316_v30 = vpop.eup %6468  ;;  %6488 = vpow2.f32 %v2713_v15 }
 0x7c9   : > { %v8318_v45 = vpop.eup %6470  ;;  %6490 = vpow2.f32 %v2707_v28  ;;  %v2742_v2 = vadd.f32 %v8316_v30, %v8312_v0 }
 0x7ca   : > { %v8322_v18 = vpop.eup %6472  ;;  %6492 = vpow2.f32 %v2709_v12 }
 0x7cb   : > { %v8324_v61 = vpop.eup %6474  ;;  %v2748_v42 = vadd.f32 %v8322_v18, %v8318_v45 }
 0x7cc   : > { %v8328_v49 = vpop.eup %6476 }
 0x7cd   : > { %v8330_v63 = vpop.eup %6478  ;;  %v2745_v24 = vadd.f32 %v8328_v49, %v8324_v61 }
 0x7ce   : > { %v8334_v38 = vpop.eup %6480 }
 0x7cf   : > { %v8336_v21 = vpop.eup %6482  ;;  %v2754_v60 = vadd.f32 %v8334_v38, %v8330_v63 }
 0x7d0   : > { %v8340_v52 = vpop.eup %6484 }
 0x7d1   : > { %v8342_v13 = vpop.eup %6486  ;;  %v2751_v5 = vadd.f32 %v8340_v52, %v8336_v21 }
 0x7d2   : > { %v8346_v62 = vpop.eup %6488 }
 0x7d3   : > { %v8348_v54 = vpop.eup %6490  ;;  %v2760_v10 = vadd.f32 %v8346_v62, %v8342_v13 }
 0x7d4   : > { %v8352_v57 = vpop.eup %6492 }
 0x7d5   : > { %v2757_v36 = vadd.f32 %v8352_v57, %v8348_v54 }
 0x7d8   : > { %2734 = vadd.xlane.f32.xlu0 %v2733_v17 }
 0x7dc   : > { %2740 = vadd.xlane.f32.xlu0 %v2739_v4 }
 0x7de   : > { %2737 = vadd.xlane.f32.xlu1 %v2736_v55 }
 0x7e0   : > { %2743 = vadd.xlane.f32.xlu0 %v2742_v2 }
 0x7e2   : > { %2749 = vadd.xlane.f32.xlu1 %v2748_v42 }
 0x7e4   : > { %2746 = vadd.xlane.f32.xlu0 %v2745_v24 }
 0x7e6   : > { %2755 = vadd.xlane.f32.xlu1 %v2754_v60 }
 0x7e8   : > { %2752 = vadd.xlane.f32.xlu0 %v2751_v5 }
 0x7ea   : > { %2761 = vadd.xlane.f32.xlu1 %v2760_v10 }
 0x7ec   : > { %2758 = vadd.xlane.f32.xlu0 %v2757_v36 }
 0x7fb   : > { %4209 = vrot.lane.b32.xlu1 %v3366_v37, %s6961_s5 }
 0x7ff   : > { %4211 = vrot.lane.b32.xlu1 %v3367_v25, %s6961_s5 }
 0x802   : > { %4193 = vrot.lane.b32.xlu0 %v3358_v29, %s6961_s5 }
 0x803   : > { %4213 = vrot.lane.b32.xlu1 %v3368_v44, %s6961_s5 }
 0x806   : > { %4195 = vrot.lane.b32.xlu0 %v3359_v53, %s6961_s5 }
 0x807   : > { %4215 = vrot.lane.b32.xlu1 %v3369_v27, %s6961_s5 }
 0x80a   : > { %4197 = vrot.lane.b32.xlu0 %v3360_v31, %s6961_s5 }
 0x80e   : > { %4199 = vrot.lane.b32.xlu0 %v3361_v9, %s6961_s5 }
 0x824   : > { %v2717_v17 = vpop.xlane.xlu0 %2716 }
 0x825   : > { %6494 = vrcp.f32 %v2717_v17 }
 0x828   : > { %v2723_v15 = vpop.xlane.xlu0 %2722 }
 0x82e   : > { %v2720_v28 = vpop.xlane.xlu1 %2719 }
 0x82f   : > { %6496 = vrcp.f32 %v2720_v28  ;;  %v6495_v42 = vpop.eup %6494 }
 0x830   : > { %v2729_v12 = vpop.xlane.xlu0 %2728  ;;  %6498 = vrcp.f32 %v2723_v15  ;;  %v2779_v60 = vmul.f32 %v6495_v42, %v8222_v59  ;;  %v2780_v36 = vmul.f32 %v6495_v42, %v8226_v33 }
 0x832   : > { %v2726_v4 = vpop.xlane.xlu1 %2725 }
 0x833   : > { %6500 = vrcp.f32 %v2726_v4 }
 0x834   : > { %v2874_v55 = vpop.permute.xlu0 %2873  ;;  %6502 = vrcp.f32 %v2729_v12 }
 0x835   : > { %5615 = vmatprep.subr.bf16.mxu0 %v2874_v55 }
 0x836   : > { %v2732_v2 = vpop.xlane.xlu1 %2731 }
 0x837   : > { %6504 = vrcp.f32 %v2732_v2 }
 0x839   : > { %v6497_v24 = vpop.eup %6496 }
 0x83a   : > { %v2781_v5 = vmul.f32 %v6497_v24, %v8240_v48  ;;  %v2858_v10 = vpop.permute.xlu1 %2857  ;;  %v2782_v17 = vmul.f32 %v6497_v24, %v8242_v11  ;;  %v6499_v28 = vpop.eup %6498  ;;  %v3415_v11 = vsel %vm1759_vm0, %v3358_v29, 0 }
 0x83b   : > { %5616 = vmatpush3.bf16.msra.mxu0 %v2858_v10  ;;  %v2784_v55 = vmul.f32 %v6499_v28, %v8232_v8  ;;  %v2783_v24 = vmul.f32 %v6499_v28, %v8230_v56  ;;  %v3421_v56 = vsel %vm1759_vm0, %v3360_v31, 0 }
 0x83c   : > { %v2812_v15 = vpack.c.bf16 %v2782_v17, %v2780_v36  ;;  %v2811_v4 = vpack.c.bf16 %v2781_v5, %v2779_v60  ;;  %5993 = vmatprep.subr.msk.bf16.mxu0 %vm1759_vm0, %v3366_v37  ;;  %v8402_v17 = vld [vmem:[#allocation2 + $0xe8] sm:$0xff] }
 0x83d   : > { %v6501_v12 = vpop.eup %6500 }
 0x83e   : > { %2923 = vmatprep.mubr.bf16.mxu0 %v2812_v15  ;;  %v2786_v2 = vmul.f32 %v6501_v12, %v8238_v1  ;;  %v6503_v59 = vpop.eup %6502  ;;  %v2785_v33 = vmul.f32 %v6501_v12, %v8236_v23  ;;  %v3418_v23 = vsel %vm1759_vm0, %v3359_v53, 0 }
 0x83f   : > { %2924 = vmatmul.mubr.bf16.vlgmr.msra.gmra.mrb[80].mxu0 %v2811_v4  ;;  %v2788_v37 = vmul.f32 %v6503_v59, %v8248_v39  ;;  %v2787_v29 = vmul.f32 %v6503_v59, %v8244_v47  ;;  %v3424_v39 = vsel %vm1759_vm0, %v3361_v9, 0  ;;  %v6291_v47 = vld [vmem:[#allocation9 + $0x54] ss:$8 sps:$4 sm:$0xff]   ;;  %v8406_v4 = vld [vmem:[#allocation2 + $0x68] sm:$0xff] }
 0x840   : > { %v2814_v48 = vpack.c.bf16 %v2786_v2, %v2784_v55  ;;  %v2813_v60 = vpack.c.bf16 %v2785_v33, %v2783_v24  ;;  %v8398_v9 = vld [vmem:[#allocation2 + $0x58] sm:$0xff]  ;;  %v3433_v2 = vsel %vm1759_vm0, %v8406_v4, 0 }
 0x841   : > { %v6505_v51 = vpop.eup %6504  ;;  %v3430_v36 = vsel %vm1759_vm0, %v8398_v9, 0  ;;  %v8410_v59 = vld [vmem:[#allocation2 + $0xf8] sm:$0xff] }
 0x842   : > { %2931 = vmatprep.mubr.bf16.mxu0 %v2814_v48  ;;  %v2790_v42 = vmul.f32 %v6505_v51, %v8256_v41  ;;  %v2789_v1 = vmul.f32 %v6505_v51, %v8252_v20  ;;  %v8386_v41 = vld [vmem:[#allocation2 + $0xc8] sm:$0xff] }
 0x843   : > { %v6286_v51 = vld [vmem:[#allocation9 + $0x40] ss:$8 sps:$4 sm:$0xff]   ;;  %v6288_v20 = vld [vmem:[#allocation9 + $0x44] ss:$8 sps:$4 sm:$0xff]  }
 0x844   : > { %5666 = vmatpush3.bf16.xpose.msra.mxu0 %v3415_v11  ;;  %v2816_v8 = vpack.c.bf16 %v2790_v42, %v2788_v37  ;;  %v2815_v5 = vpack.c.bf16 %v2789_v1, %v2787_v29  ;;  %3068 = vmatprep.subr.bf16.mxu1 %v6288_v20  ;;  %v8418_v1 = vld [vmem:[#allocation2 + $0x78] sm:$0xff] }
 0x845   : > { %5994 = vmatprep.subr.msk.bf16.mxu0 %vm1759_vm0, %v3367_v25  ;;  %v8390_v25 = vld [vmem:[#allocation2 + $0x48] sm:$0xff]  ;;  %3069 = vmatpush1.bf16.msra.mxu1 %v6286_v51 }
 0x846   : > { %3070 = vmatprep.subr.bf16.mxu1 %v6291_v47  ;;  %v3427_v53 = vsel %vm1759_vm0, %v8390_v25, 0 }
 0x847   : > { %2932 = vmatmul.mubr.bf16.gmra.mrb[84].mxu0 %v2813_v60 }
 0x848   : > { %2939 = vmatprep.mubr.bf16.mxu0 %v2816_v8 }
 0x84c   : > { %5668 = vmatpush3.bf16.xpose.msra.mxu0 %v3418_v23 }
 0x84d   : > { %5995 = vmatprep.subr.msk.bf16.mxu0 %vm1759_vm0, %v3368_v44  ;;  %v6289_v44 = vld [vmem:[#allocation9 + $0x50] ss:$8 sps:$4 sm:$0xff]  }
 0x84e   : > { %3071 = vmatpush1.bf16.msra.mxu1 %v6289_v44 }
 0x84f   : > { %2940 = vmatmul.mubr.bf16.gmra.mrb[88].mxu0 %v2815_v5 }
 0x854   : > { %5670 = vmatpush3.bf16.xpose.msra.mxu0 %v3421_v56 }
 0x855   : > { %5996 = vmatprep.subr.msk.bf16.mxu0 %vm1759_vm0, %v3369_v27  ;;  %v8394_v27 = vld [vmem:[#allocation2 + $0xd8] sm:$0xff] }
 0x85c   : > { %5672 = vmatpush3.bf16.xpose.msra.mxu0 %v3424_v39 }
 0x85d   : > { %5997 = vmatprep.subr.msk.bf16.mxu0 %vm1759_vm0, %v8386_v41 }
 0x864   : > { %5674 = vmatpush3.bf16.xpose.msra.mxu0 %v3427_v53 }
 0x865   : > { %v2735_v31 = vpop.xlane.xlu0 %2734  ;;  %5998 = vmatprep.subr.msk.bf16.mxu0 %vm1759_vm0, %v8394_v27 }
 0x866   : > { %6506 = vrcp.f32 %v2735_v31 }
 0x869   : > { %v2741_v10 = vpop.xlane.xlu0 %2740 }
 0x86a   : > { %6508 = vrcp.f32 %v2741_v10 }
 0x86b   : > { %v2738_v28 = vpop.xlane.xlu1 %2737 }
 0x86c   : > { %6510 = vrcp.f32 %v2738_v28  ;;  %5676 = vmatpush3.bf16.xpose.msra.mxu0 %v3430_v36 }
 0x86d   : > { %v2744_v15 = vpop.xlane.xlu0 %2743  ;;  %5999 = vmatprep.subr.msk.bf16.mxu0 %vm1759_vm0, %v8402_v17 }
 0x86e   : > { %6512 = vrcp.f32 %v2744_v15 }
 0x86f   : > { %v2750_v12 = vpop.xlane.xlu1 %2749 }
 0x870   : > { %v6507_v48 = vpop.eup %6506 }
 0x871   : > { %v2747_v55 = vpop.xlane.xlu0 %2746  ;;  %v2792_v24 = vmul.f32 %v6507_v48, %v8294_v40  ;;  %v2791_v60 = vmul.f32 %v6507_v48, %v8290_v50  ;;  %v3436_v40 = vsel %vm1759_vm0, %v8418_v1, 0 }
 0x872   : > { %6514 = vrcp.f32 %v2747_v55 }
 0x873   : > { %6516 = vrcp.f32 %v2750_v12  ;;  %v2756_v29 = vpop.xlane.xlu1 %2755 }
 0x874   : > { %5678 = vmatpush3.bf16.xpose.msra.mxu0 %v3433_v2  ;;  %v6509_v33 = vpop.eup %6508 }
 0x875   : > { %6000 = vmatprep.subr.msk.bf16.mxu0 %vm1759_vm0, %v8410_v59  ;;  %v2753_v42 = vpop.xlane.xlu0 %2752  ;;  %v2796_v39 = vmul.f32 %v6509_v33, %v8306_v43  ;;  %v2795_v43 = vmul.f32 %v6509_v33, %v8302_v6 }
 0x876   : > { %v6511_v11 = vpop.eup %6510  ;;  %6518 = vrcp.f32 %v2753_v42  ;;  %v6294_v42 = vld [vmem:[#allocation9 + $0x64] ss:$8 sps:$4 sm:$0xff]  }
 0x877   : > { %v2794_v37 = vmul.f32 %v6511_v11, %v8310_v14  ;;  %v2793_v8 = vmul.f32 %v6511_v11, %v8308_v58  ;;  %6520 = vrcp.f32 %v2756_v29  ;;  %3072 = vmatprep.subr.bf16.mxu1 %v6294_v42  ;;  %v9464_v29 = vld [vmem:[#allocation25_spill] sm:$0xff] }
 0x878   : > { %v6513_v23 = vpop.eup %6512 }
 0x879   : > { %v2818_v5 = vpack.c.bf16 %v2794_v37, %v2792_v24  ;;  %v2817_v56 = vpack.c.bf16 %v2793_v8, %v2791_v60  ;;  %v2798_v51 = vmul.f32 %v6513_v23, %v8316_v30  ;;  %v2797_v58 = vmul.f32 %v6513_v23, %v8312_v0  ;;  %v2759_v47 = vpop.xlane.xlu0 %2758  ;;  %v2762_v30 = vpop.xlane.xlu1 %2761  ;;  %v6292_v24 = vld [vmem:[#allocation9 + $0x60] ss:$8 sps:$4 sm:$0xff]   ;;  %v6295_v60 = vld [vmem:[#allocation9 + $0x70] ss:$8 sps:$4 sm:$0xff]  }
 0x87a   : > { %6522 = vrcp.f32 %v2759_v47  ;;  %3073 = vmatpush1.bf16.msra.mxu1 %v6292_v24  ;;  %v9460_v8 = vld [vmem:[#allocation21_spill] sm:$0xff]  ;;  %v9463_v23 = vld [vmem:[#allocation24_spill] sm:$0xff] }
 0x87b   : > { %2947 = vmatprep.mubr.bf16.mxu0 %v2818_v5  ;;  %v2820_v14 = vpack.c.bf16 %v2798_v51, %v2796_v39  ;;  %v2819_v31 = vpack.c.bf16 %v2797_v58, %v2795_v43  ;;  %6524 = vrcp.f32 %v2762_v30  ;;  %v9465_v5 = vld [vmem:[#allocation26_spill] sm:$0xff]  ;;  %v6300_v39 = vld [vmem:[#allocation9 + $0x4] ss:$8 sps:$4 sm:$0xff]   ;;  %v6298_v47 = vld [vmem:[#allocation9] ss:$8 sps:$4 sm:$0xff]  }
 0x87c   : > { %v6515_v20 = vpop.eup %6514  ;;  %2948 = vmatmul.mubr.bf16.gmra.mrb[92].mxu0 %v2817_v56  ;;  %v9466_v56 = vld [vmem:[#allocation27_spill] sm:$0xff]  ;;  %v6303_v43 = vld [vmem:[#allocation9 + $0x14] ss:$8 sps:$4 sm:$0xff]   ;;  %v8479_v24 = vld [vmem:[#allocation3 + $0x8] sm:$0xff] }
 0x87d   : > { %2955 = vmatprep.mubr.bf16.mxu0 %v2820_v14  ;;  %5680 = vmatpush3.bf16.xpose.msra.mxu0 %v3436_v40  ;;  %v6517_v50 = vpop.eup %6516  ;;  %v2800_v44 = vmul.f32 %v6515_v20, %v8328_v49  ;;  %v2799_v15 = vmul.f32 %v6515_v20, %v8324_v61 }
 0x87e   : > { %v2802_v53 = vmul.f32 %v6517_v50, %v8322_v18  ;;  %v2801_v12 = vmul.f32 %v6517_v50, %v8318_v45 }
 0x880   : > { %v2822_v10 = vpack.c.bf16 %v2802_v53, %v2800_v44  ;;  %v6519_v36 = vpop.eup %6518  ;;  %v2821_v6 = vpack.c.bf16 %v2801_v12, %v2799_v15  ;;  %v6304_v12 = vld [vmem:[#allocation9 + $0x20] ss:$8 sps:$4 sm:$0xff]  }
 0x881   : > { %v6521_v28 = vpop.eup %6520  ;;  %v2804_v0 = vmul.f32 %v6519_v36, %v8340_v52  ;;  %v2803_v48 = vmul.f32 %v6519_v36, %v8336_v21 }
 0x882   : > { %v2806_v49 = vmul.f32 %v6521_v28, %v8334_v38  ;;  %v2805_v11 = vmul.f32 %v6521_v28, %v8330_v63  ;;  %v6297_v38 = vld [vmem:[#allocation9 + $0x74] ss:$8 sps:$4 sm:$0xff]   ;;  %v6306_v28 = vld [vmem:[#allocation9 + $0x24] ss:$8 sps:$4 sm:$0xff]  }
 0x883   : > { %3074 = vmatprep.subr.bf16.mxu1 %v6297_v38  ;;  %v8486_v38 = vld [vmem:[#allocation3 + $0x18] sm:$0xff] }
 0x884   : > { %2956 = vmatmul.mubr.bf16.gmra.mrb[96].mxu0 %v2819_v31  ;;  %v2824_v55 = vpack.c.bf16 %v2806_v49, %v2804_v0  ;;  %v6523_v2 = vpop.eup %6522  ;;  %v2823_v52 = vpack.c.bf16 %v2805_v11, %v2803_v48  ;;  %3075 = vmatpush1.bf16.msra.mxu1 %v6295_v60  ;;  %v6301_v31 = vld [vmem:[#allocation9 + $0x10] ss:$8 sps:$4 sm:$0xff]   ;;  %v8492_v60 = vld [vmem:[#allocation3 + $0x28] sm:$0xff] }
 0x885   : > { %2963 = vmatprep.mubr.bf16.mxu0 %v2822_v10  ;;  %v6525_v18 = vpop.eup %6524  ;;  %v2808_v33 = vmul.f32 %v6523_v2, %v8352_v57  ;;  %v2807_v37 = vmul.f32 %v6523_v2, %v8348_v54  ;;  %v9418_v57 = vmov 0   ;;  %v9461_v54 = vld [vmem:[#allocation22_spill] sm:$0xff]  ;;  %3245 = vmatprep.subr.bf16.mxu1 %v6300_v39  ;;  %v8500_v39 = vld [vmem:[#allocation3 + $0xc8] sm:$0xff] }
 0x886   : > { %v2810_v61 = vmul.f32 %v6525_v18, %v8346_v62  ;;  %v2809_v21 = vmul.f32 %v6525_v18, %v8342_v13  ;;  %3100 = vmatprep.mubr.bf16.mxu1 %v9418_v57  ;;  %v9459_v62 = vld [vmem:[#allocation20_spill] sm:$0xff]  ;;  %v9462_v13 = vld [vmem:[#allocation23_spill] sm:$0xff]  ;;  %v6307_v18 = vld [vmem:[#allocation9 + $0x30] ss:$8 sps:$4 sm:$0xff]   ;;  %9468 = vst [vmem:[#allocation21_spill] sm:$0xff] %v8500_v39 }
 0x888   : > { %v2826_v45 = vpack.c.bf16 %v2810_v61, %v2808_v33  ;;  %v2825_v63 = vpack.c.bf16 %v2809_v21, %v2807_v37  ;;  %v8488_v37 = vld [vmem:[#allocation3 + $0xa8] sm:$0xff]  ;;  %v8494_v21 = vld [vmem:[#allocation3 + $0xb8] sm:$0xff] }
 0x889   : > { %9467 = vst [vmem:[#allocation20_spill] sm:$0xff] %v8494_v21 }
 0x88c   : > { %2964 = vmatmul.mubr.bf16.gmra.mrb[100].mxu0 %v2821_v6  ;;  %v6309_v6 = vld [vmem:[#allocation9 + $0x34] ss:$8 sps:$4 sm:$0xff]  }
 0x88d   : > { %2971 = vmatprep.mubr.bf16.mxu0 %v2824_v55 }
 0x894   : > { %2972 = vmatmul.mubr.bf16.gmra.mrb[104].mxu0 %v2823_v52  ;;  %v8477_v52 = vld [vmem:[#allocation3 + $0x88] sm:$0xff] }
 0x895   : > { %2979 = vmatprep.mubr.bf16.mxu0 %v2826_v45  ;;  %v8481_v45 = vld [vmem:[#allocation3 + $0x98] sm:$0xff]  ;;  %5697 = vmatprep.subr.bf16.mxu0 %v8477_v52 }
 0x89c   : > { %2980 = vmatmul.mubr.bf16.gmra.mrb[108].mxu0 %v2825_v63  ;;  %v8498_v63 = vld [vmem:[#allocation3 + $0x38] sm:$0xff] }
 0x89d   : > { %5681 = vmatprep.mubr.msk.bf16.mxu0 %vm1759_vm0, %v9459_v62 }
 0x8a4   : > { %5682 = vmatmul.mubr.msk.bf16.vlgmr.msra.gmra.mrb[112].mxu0 %vm1759_vm0, %v9459_v62 }
 0x8a5   : > { %5683 = vmatprep.mubr.msk.bf16.mxu0 %vm1759_vm0, %v9460_v8  ;;  %5698 = vmatpush3.bf16.msra.mxu0 %v8479_v24 }
 0x8a6   : > { %5699 = vmatprep.subr.bf16.mxu0 %v8481_v45 }
 0x8a9   : > { %5700 = vmatpush3.bf16.msra.mxu0 %v8486_v38 }
 0x8aa   : > { %5701 = vmatprep.subr.bf16.mxu0 %v8488_v37 }
 0x8ac   : > { %5684 = vmatmul.mubr.msk.bf16.gmra.mrb[116].mxu0 %vm1759_vm0, %v9460_v8 }
 0x8ad   : > { %5685 = vmatprep.mubr.msk.bf16.mxu0 %vm1759_vm0, %v9461_v54  ;;  %5702 = vmatpush3.bf16.msra.mxu0 %v8492_v60 }
 0x8ae   : > { %5703 = vmatprep.subr.bf16.mxu0 %v8494_v21 }
 0x8b1   : > { %5704 = vmatpush3.bf16.msra.mxu0 %v8498_v63 }
 0x8b2   : > { %5705 = vmatprep.subr.bf16.mxu0 %v8500_v39 }
 0x8b4   : > { %5686 = vmatmul.mubr.msk.bf16.gmra.mrb[120].mxu0 %vm1759_vm0, %v9461_v54 }
 0x8b5   : > { %5687 = vmatprep.mubr.msk.bf16.mxu0 %vm1759_vm0, %v9462_v13 }
 0x8bc   : > { %5688 = vmatmul.mubr.msk.bf16.gmra.mrb[124].mxu0 %vm1759_vm0, %v9462_v13 }
 0x8bd   : > { %5689 = vmatprep.mubr.msk.bf16.mxu0 %vm1759_vm0, %v9463_v23 }
 0x8c4   : > { %5690 = vmatmul.mubr.msk.bf16.gmra.mrb[128].mxu0 %vm1759_vm0, %v9463_v23 }
 0x8c5   : > { %5691 = vmatprep.mubr.msk.bf16.mxu0 %vm1759_vm0, %v9464_v29 }
 0x8cc   : > { %5692 = vmatmul.mubr.msk.bf16.gmra.mrb[132].mxu0 %vm1759_vm0, %v9464_v29 }
 0x8cd   : > { %5693 = vmatprep.mubr.msk.bf16.mxu0 %vm1759_vm0, %v9465_v5 }
 0x8d4   : > { %5694 = vmatmul.mubr.msk.bf16.gmra.mrb[136].mxu0 %vm1759_vm0, %v9465_v5 }
 0x8d5   : > { %5695 = vmatprep.mubr.msk.bf16.mxu0 %vm1759_vm0, %v9466_v56 }
 0x8dc   : > { %5696 = vmatmul.mubr.msk.bf16.gmra.mrb[140].mxu0 %vm1759_vm0, %v9466_v56 }
 0x912   : > { %v5617_v51 = vpop.f32.mrb[80].mxu0 }
 0x913   : > { %v5618_v40 = vpop.f32.mrb[81].mxu0 }
 0x914   : > { %v5619_v14 = vadd.f32 %v5618_v40, %v5617_v51  ;;  %v5620_v20 = vpop.f32.mrb[82].mxu0  ;;  %v8504_v51 = vld [vmem:[#allocation3 + $0x48] sm:$0xff]  ;;  %v8506_v40 = vld [vmem:[#allocation3 + $0xd8] sm:$0xff] }
 0x915   : > { %v5621_v50 = vpop.f32.mrb[83].mxu0  ;;  %9469 = vst [vmem:[#allocation22_spill] sm:$0xff] %v8504_v51  ;;  %9470 = vst [vmem:[#allocation23_spill] sm:$0xff] %v8506_v40  ;;  %5706 = vmatpush3.bf16.msra.mxu0 %v8504_v51 }
 0x916   : > { %v5622_v58 = vadd.f32 %v5621_v50, %v5620_v20  ;;  %5707 = vmatprep.subr.bf16.mxu0 %v8506_v40  ;;  %v3388_v20 = vld [vmem:[#allocation3 + $0xe8] sm:$0xff] }
 0x918   : > { %v2988_v44 = vpack.c.bf16 %v5622_v58, %v5619_v14  ;;  %v8510_v14 = vld [vmem:[#allocation3 + $0x58] sm:$0xff] }
 0x919   : > { %9471 = vst [vmem:[#allocation24_spill] sm:$0xff] %v8510_v14  ;;  %5708 = vmatpush3.bf16.msra.mxu0 %v8510_v14 }
 0x91a   : > { %v5623_v30 = vpop.f32.mrb[84].mxu0  ;;  %5391 = vmatmul.mubr.msk.bf16.vlgmr.msra.gmra.mrb[48].mxu1 %vm1759_vm0, %v2988_v44  ;;  %5709 = vmatprep.subr.bf16.mxu0 %v3388_v20 }
 0x91b   : > { %v5624_v53 = vpop.f32.mrb[85].mxu0  ;;  %3110 = vmatprep.mubr.bf16.mxu1 %v9418_v57  ;;  %3246 = vmatpush1.bf16.msra.mxu1 %v6298_v47  ;;  %v3380_v47 = vld [vmem:[#allocation3 + $0x68] sm:$0xff] }
 0x91c   : > { %v5625_v10 = vadd.f32 %v5624_v53, %v5623_v30  ;;  %v5626_v36 = vpop.f32.mrb[86].mxu0  ;;  %3247 = vmatprep.subr.bf16.mxu1 %v6303_v43  ;;  %v3389_v30 = vld [vmem:[#allocation3 + $0xf8] sm:$0xff] }
 0x91d   : > { %v5627_v15 = vpop.f32.mrb[87].mxu0  ;;  %5710 = vmatpush3.bf16.msra.mxu0 %v3380_v47 }
 0x91e   : > { %v5628_v0 = vadd.f32 %v5627_v15, %v5626_v36  ;;  %5711 = vmatprep.subr.bf16.mxu0 %v3389_v30 }
 0x91f   : > { %3248 = vmatpush1.bf16.msra.mxu1 %v6301_v31 }
 0x920   : > { %v2989_v49 = vpack.c.bf16 %v5628_v0, %v5625_v10  ;;  %3249 = vmatprep.subr.bf16.mxu1 %v6306_v28  ;;  %v3381_v10 = vld [vmem:[#allocation3 + $0x78] sm:$0xff]  ;;  %v4210_v28 = vpop.permute.xlu1 %4209 }
 0x921   : > { %5712 = vmatpush3.bf16.msra.mxu0 %v3381_v10 }
 0x922   : > { %v5629_v55 = vpop.f32.mrb[88].mxu0  ;;  %5392 = vmatmul.mubr.msk.bf16.gmra.mrb[52].mxu1 %vm1759_vm0, %v2989_v49  ;;  %6001 = vmatprep.subr.msk.bf16.mxu0 %vm1759_vm0, %v4210_v28 }
 0x923   : > { %v5630_v2 = vpop.f32.mrb[89].mxu0  ;;  %3120 = vmatprep.mubr.bf16.mxu1 %v9418_v57  ;;  %3250 = vmatpush1.bf16.msra.mxu1 %v6304_v12 }
 0x924   : > { %v5631_v48 = vadd.f32 %v5630_v2, %v5629_v55  ;;  %v5632_v33 = vpop.f32.mrb[90].mxu0  ;;  %3251 = vmatprep.subr.bf16.mxu1 %v6309_v6 }
 0x925   : > { %v5633_v11 = vpop.f32.mrb[91].mxu0 }
 0x926   : > { %v5634_v61 = vadd.f32 %v5633_v11, %v5632_v33 }
 0x927   : > { %3252 = vmatpush1.bf16.msra.mxu1 %v6307_v18 }
 0x928   : > { %v2990_v42 = vpack.c.bf16 %v5634_v61, %v5631_v48 }
 0x92a   : > { %5393 = vmatmul.mubr.msk.bf16.gmra.mrb[56].mxu1 %vm1759_vm0, %v2990_v42 }
 0x92b   : > { %3130 = vmatprep.mubr.bf16.mxu1 %v9418_v57 }
 0x94f   : > { %v5635_v50 = vpop.f32.mrb[92].mxu0 }
 0x950   : > { %v5636_v58 = vpop.f32.mrb[93].mxu0 }
 0x951   : > { %v5637_v44 = vadd.f32 %v5636_v58, %v5635_v50  ;;  %v5638_v43 = vpop.f32.mrb[94].mxu0 }
 0x952   : > { %v5639_v53 = vpop.f32.mrb[95].mxu0 }
 0x953   : > { %v5640_v31 = vadd.f32 %v5639_v53, %v5638_v43 }
 0x955   : > { %v2991_v36 = vpack.c.bf16 %v5640_v31, %v5637_v44 }
 0x957   : > { %v5641_v15 = vpop.f32.mrb[96].mxu0  ;;  %5394 = vmatmul.mubr.msk.bf16.gmra.mrb[60].mxu1 %vm1759_vm0, %v2991_v36 }
 0x958   : > { %v5642_v0 = vpop.f32.mrb[97].mxu0  ;;  %3140 = vmatprep.mubr.bf16.mxu1 %v9418_v57 }
 0x959   : > { %v5643_v12 = vadd.f32 %v5642_v0, %v5641_v15  ;;  %v5644_v49 = vpop.f32.mrb[98].mxu0 }
 0x95a   : > { %v5645_v6 = vpop.f32.mrb[99].mxu0 }
 0x95b   : > { %v5646_v55 = vadd.f32 %v5645_v6, %v5644_v49 }
 0x95d   : > { %v2992_v2 = vpack.c.bf16 %v5646_v55, %v5643_v12 }
 0x95f   : > { %v5647_v18 = vpop.f32.mrb[100].mxu0  ;;  %5395 = vmatmul.mubr.msk.bf16.gmra.mrb[64].mxu1 %vm1759_vm0, %v2992_v2 }
 0x960   : > { %v5648_v48 = vpop.f32.mrb[101].mxu0  ;;  %3150 = vmatprep.mubr.bf16.mxu1 %v9418_v57 }
 0x961   : > { %v5649_v33 = vadd.f32 %v5648_v48, %v5647_v18  ;;  %v5650_v11 = vpop.f32.mrb[102].mxu0 }
 0x962   : > { %v5651_v61 = vpop.f32.mrb[103].mxu0 }
 0x963   : > { %v5652_v42 = vadd.f32 %v5651_v61, %v5650_v11 }
 0x965   : > { %v2993_v20 = vpack.c.bf16 %v5652_v42, %v5649_v33  ;;  %v9472_v33 = vpack.c.bf16 %v8034_v32, %v8032_v46  ;;  %v9473_v46 = vpack.c.bf16 %v8040_v22, %v8038_v7  ;;  %v9474_v7 = vpack.c.bf16 %v8046_v16, %v8044_v19 }
 0x966   : > { %v9475_v19 = vpack.c.bf16 %v8052_v34, %v8050_v3  ;;  %v9476_v3 = vpack.c.bf16 %v8058_v26, %v8056_v35  ;;  %v9477_v35 = vld [vmem:[#allocation29_spill] sm:$0xff]  ;;  %v9478_v26 = vld [vmem:[#allocation28_spill] sm:$0xff] }
 0x967   : > { %v5653_v50 = vpop.f32.mrb[104].mxu0  ;;  %5396 = vmatmul.mubr.msk.bf16.gmra.mrb[68].mxu1 %vm1759_vm0, %v2993_v20 }
 0x968   : > { %v5654_v58 = vpop.f32.mrb[105].mxu0  ;;  %3160 = vmatprep.mubr.bf16.mxu1 %v9418_v57 }
 0x969   : > { %v5655_v47 = vadd.f32 %v5654_v58, %v5653_v50  ;;  %v5656_v44 = vpop.f32.mrb[106].mxu0 }
 0x96a   : > { %v5657_v43 = vpop.f32.mrb[107].mxu0 }
 0x96b   : > { %v5658_v30 = vadd.f32 %v5657_v43, %v5656_v44 }
 0x96d   : > { %v2994_v53 = vpack.c.bf16 %v5658_v30, %v5655_v47 }
 0x96f   : > { %v5659_v31 = vpop.f32.mrb[108].mxu0  ;;  %5397 = vmatmul.mubr.msk.bf16.gmra.mrb[72].mxu1 %vm1759_vm0, %v2994_v53 }
 0x970   : > { %v5660_v10 = vpop.f32.mrb[109].mxu0  ;;  %3170 = vmatprep.mubr.bf16.mxu1 %v9418_v57 }
 0x971   : > { %v5661_v36 = vadd.f32 %v5660_v10, %v5659_v31  ;;  %v5662_v28 = vpop.f32.mrb[110].mxu0 }
 0x972   : > { %v5663_v15 = vpop.f32.mrb[111].mxu0 }
 0x973   : > { %v5664_v0 = vadd.f32 %v5663_v15, %v5662_v28 }
 0x975   : > { %v2995_v12 = vpack.c.bf16 %v5664_v0, %v5661_v36 }
 0x977   : > { %5398 = vmatmul.mubr.msk.bf16.gmra.mrb[76].mxu1 %vm1759_vm0, %v2995_v12  ;;  %v8523_v49 = vpop.f32.mrb[112].mxu0 }
 0x978   : > { %v8525_v6 = vpop.f32.mrb[113].mxu0  ;;  %3277 = vmatprep.mubr.bf16.mxu1 %v9418_v57 }
 0x979   : > { %v3575_v55 = vmax.f32 %v8523_v49, %v8525_v6  ;;  %v8530_v2 = vpop.f32.mrb[114].mxu0 }
 0x97a   : > { %v8532_v18 = vpop.f32.mrb[115].mxu0 }
 0x97b   : > { %v3578_v48 = vmax.f32 %v8530_v2, %v8532_v18  ;;  %3576 = vmax.xlane.f32.xlu0 %v3575_v55 }
 0x97d   : > { %3579 = vmax.xlane.f32.xlu1 %v3578_v48 }
 0x97f   : > { %5407 = vmatmul.mubr.msk.bf16.vlgmr.msra.gmra.mrb[48].mxu1 %vm1759_vm0, %v9472_v33  ;;  %v8540_v11 = vpop.f32.mrb[116].mxu0 }
 0x980   : > { %v8542_v61 = vpop.f32.mrb[117].mxu0  ;;  %3287 = vmatprep.mubr.bf16.mxu1 %v9418_v57 }
 0x981   : > { %v3581_v42 = vmax.f32 %v8540_v11, %v8542_v61  ;;  %v8547_v20 = vpop.f32.mrb[118].mxu0 }
 0x982   : > { %v8549_v50 = vpop.f32.mrb[119].mxu0 }
 0x983   : > { %v3584_v58 = vmax.f32 %v8547_v20, %v8549_v50  ;;  %3582 = vmax.xlane.f32.xlu0 %v3581_v42 }
 0x985   : > { %3585 = vmax.xlane.f32.xlu1 %v3584_v58 }
 0x987   : > { %5408 = vmatmul.mubr.msk.bf16.gmra.mrb[52].mxu1 %vm1759_vm0, %v9473_v46  ;;  %v8557_v32 = vpop.f32.mrb[120].mxu0 }
 0x988   : > { %v8559_v47 = vpop.f32.mrb[121].mxu0  ;;  %3297 = vmatprep.mubr.bf16.mxu1 %v9418_v57 }
 0x989   : > { %v3587_v44 = vmax.f32 %v8557_v32, %v8559_v47  ;;  %v8564_v43 = vpop.f32.mrb[122].mxu0 }
 0x98a   : > { %v8566_v30 = vpop.f32.mrb[123].mxu0 }
 0x98b   : > { %v3590_v53 = vmax.f32 %v8564_v43, %v8566_v30  ;;  %3588 = vmax.xlane.f32.xlu0 %v3587_v44 }
 0x98d   : > { %3591 = vmax.xlane.f32.xlu1 %v3590_v53 }
 0x98f   : > { %5409 = vmatmul.mubr.msk.bf16.gmra.mrb[56].mxu1 %vm1759_vm0, %v9474_v7  ;;  %v8574_v22 = vpop.f32.mrb[124].mxu0  ;;  %v9479_v7 = vpack.c.bf16 %v9477_v35, %v9478_v26 }
 0x990   : > { %v8576_v31 = vpop.f32.mrb[125].mxu0  ;;  %3307 = vmatprep.mubr.bf16.mxu1 %v9418_v57 }
 0x991   : > { %v3593_v10 = vmax.f32 %v8574_v22, %v8576_v31  ;;  %v8581_v36 = vpop.f32.mrb[126].mxu0 }
 0x992   : > { %v8583_v28 = vpop.f32.mrb[127].mxu0 }
 0x993   : > { %v3596_v15 = vmax.f32 %v8581_v36, %v8583_v28  ;;  %3594 = vmax.xlane.f32.xlu0 %v3593_v10 }
 0x995   : > { %3597 = vmax.xlane.f32.xlu1 %v3596_v15 }
 0x997   : > { %5410 = vmatmul.mubr.msk.bf16.gmra.mrb[60].mxu1 %vm1759_vm0, %v9475_v19  ;;  %v8591_v16 = vpop.f32.mrb[128].mxu0 }
 0x998   : > { %v8593_v0 = vpop.f32.mrb[129].mxu0  ;;  %3317 = vmatprep.mubr.bf16.mxu1 %v9418_v57 }
 0x999   : > { %v3599_v12 = vmax.f32 %v8591_v16, %v8593_v0  ;;  %v8598_v55 = vpop.f32.mrb[130].mxu0 }
 0x99a   : > { %v8600_v48 = vpop.f32.mrb[131].mxu0 }
 0x99b   : > { %v3602_v33 = vmax.f32 %v8598_v55, %v8600_v48  ;;  %3600 = vmax.xlane.f32.xlu0 %v3599_v12 }
 0x99d   : > { %3603 = vmax.xlane.f32.xlu1 %v3602_v33 }
 0x99f   : > { %5411 = vmatmul.mubr.msk.bf16.gmra.mrb[64].mxu1 %vm1759_vm0, %v9476_v3  ;;  %v8608_v34 = vpop.f32.mrb[132].mxu0 }
 0x9a0   : > { %v8610_v42 = vpop.f32.mrb[133].mxu0  ;;  %3327 = vmatprep.mubr.bf16.mxu1 %v9418_v57 }
 0x9a1   : > { %v3605_v58 = vmax.f32 %v8608_v34, %v8610_v42  ;;  %v8615_v46 = vpop.f32.mrb[134].mxu0 }
 0x9a2   : > { %v8617_v44 = vpop.f32.mrb[135].mxu0 }
 0x9a3   : > { %v3608_v53 = vmax.f32 %v8615_v46, %v8617_v44  ;;  %3606 = vmax.xlane.f32.xlu0 %v3605_v58  ;;  %v9480_v58 = vld [vmem:[#allocation31_spill] sm:$0xff] }
 0x9a5   : > { %3609 = vmax.xlane.f32.xlu1 %v3608_v53  ;;  %v9481_v53 = vld [vmem:[#allocation30_spill] sm:$0xff] }
 0x9a6   : > { %v9482_v35 = vpack.c.bf16 %v9480_v58, %v9481_v53  ;;  %v9484_v58 = vld [vmem:[#allocation32_spill] sm:$0xff] }
 0x9a7   : > { %5412 = vmatmul.mubr.msk.bf16.gmra.mrb[68].mxu1 %vm1759_vm0, %v9479_v7  ;;  %v8625_v10 = vpop.f32.mrb[136].mxu0 }
 0x9a8   : > { %v8627_v15 = vpop.f32.mrb[137].mxu0  ;;  %3337 = vmatprep.mubr.bf16.mxu1 %v9418_v57 }
 0x9a9   : > { %v3611_v19 = vmax.f32 %v8625_v10, %v8627_v15  ;;  %v8632_v12 = vpop.f32.mrb[138].mxu0 }
 0x9aa   : > { %v8634_v33 = vpop.f32.mrb[139].mxu0 }
 0x9ab   : > { %v3614_v3 = vmax.f32 %v8632_v12, %v8634_v33  ;;  %3612 = vmax.xlane.f32.xlu0 %v3611_v19 }
 0x9ad   : > { %3615 = vmax.xlane.f32.xlu1 %v3614_v3  ;;  %v9483_v3 = vld [vmem:[#allocation33_spill] sm:$0xff] }
 0x9ae   : > { %v9485_v53 = vpack.c.bf16 %v9483_v3, %v9484_v58  ;;  %v8672_v3 = vpop.permute.xlu1 %4211 }
 0x9af   : > { %5413 = vmatmul.mubr.msk.bf16.gmra.mrb[72].mxu1 %vm1759_vm0, %v9482_v35  ;;  %v8642_v26 = vpop.f32.mrb[140].mxu0  ;;  %v8666_v35 = vpop.permute.xlu0 %4193  ;;  %9488 = vst [vmem:[#allocation27_spill] sm:$0xff] %v8672_v3 }
 0x9b0   : > { %v8644_v7 = vpop.f32.mrb[141].mxu0  ;;  %3347 = vmatprep.mubr.bf16.mxu1 %v9418_v57  ;;  %9486 = vst [vmem:[#allocation25_spill] sm:$0xff] %v8666_v35 }
 0x9b1   : > { %v3617_v40 = vmax.f32 %v8642_v26, %v8644_v7  ;;  %v8649_v14 = vpop.f32.mrb[142].mxu0 }
 0x9b2   : > { %v8651_v39 = vpop.f32.mrb[143].mxu0 }
 0x9b3   : > { %v3620_v19 = vmax.f32 %v8649_v14, %v8651_v39  ;;  %3618 = vmax.xlane.f32.xlu0 %v3617_v40  ;;  %v8670_v40 = vpop.permute.xlu0 %4195 }
 0x9b4   : > { %9487 = vst [vmem:[#allocation26_spill] sm:$0xff] %v8670_v40 }
 0x9b7   : > { %5414 = vmatmul.mubr.msk.bf16.gmra.mrb[76].mxu1 %vm1759_vm0, %v9485_v53  ;;  %v8674_v58 = vpop.permute.xlu0 %4197  ;;  %v8676_v53 = vpop.permute.xlu1 %4213 }
 0x9b8   : > { %4040 = vmatprep.mubr.bf16.mxu1 %v9418_v57  ;;  %9489 = vst [vmem:[#allocation29_spill] sm:$0xff] %v8674_v58  ;;  %9490 = vst [vmem:[#allocation28_spill] sm:$0xff] %v8676_v53 }
 0x9be   : > { %4217 = vrot.lane.b32.xlu1 %v8386_v41, %s6961_s5  ;;  %v8678_v41 = vpop.permute.xlu0 %4199 }
 0x9bf   : > { %9491 = vst [vmem:[#allocation31_spill] sm:$0xff] %v8678_v41 }
 0x9c2   : > { %4203 = vrot.lane.b32.xlu1 %v8398_v9, %s6961_s5  ;;  %v8680_v9 = vpop.permute.xlu1 %4215 }
 0x9c3   : > { %9492 = vst [vmem:[#allocation30_spill] sm:$0xff] %v8680_v9 }
 0x9c9   : > { %4201 = vrot.lane.b32.xlu0 %v8390_v25, %s6961_s5 }
 0x9e6   : > { %3621 = vmax.xlane.f32.xlu1 %v3620_v19 }
 0x9f7   : > { %4219 = vrot.lane.b32.xlu1 %v8394_v27, %s6961_s5 }
 0xa08   : > { %v3577_v57 = vpop.xlane.xlu0 %3576 }
 0xa09   : > { %v3623_v25 = vsub.f32 %v8523_v49, %v3577_v57  ;;  %v3624_v19 = vsub.f32 %v8525_v6, %v3577_v57 }
 0xa0a   : > { %v3580_v35 = vpop.xlane.xlu1 %3579 }
 0xa0b   : > { %v3655_v51 = vmul.f32 1.442695, %v3623_v25  ;;  %v3657_v27 = vmul.f32 1.442695, %v3624_v19  ;;  %v3625_v40 = vsub.f32 %v8530_v2, %v3580_v35  ;;  %v3626_v3 = vsub.f32 %v8532_v18, %v3580_v35 }
 0xa0d   : > { %6526 = vpow2.f32 %v3655_v51  ;;  %v3659_v58 = vmul.f32 1.442695, %v3625_v40  ;;  %v3661_v21 = vmul.f32 1.442695, %v3626_v3 }
 0xa0e   : > { %6528 = vpow2.f32 %v3657_v27 }
 0xa0f   : > { %6530 = vpow2.f32 %v3659_v58 }
 0xa10   : > { %6532 = vpow2.f32 %v3661_v21  ;;  %v3583_v41 = vpop.xlane.xlu0 %3582 }
 0xa11   : > { %v3627_v9 = vsub.f32 %v8540_v11, %v3583_v41  ;;  %v3628_v49 = vsub.f32 %v8542_v61, %v3583_v41 }
 0xa12   : > { %v3586_v53 = vpop.xlane.xlu1 %3585 }
 0xa13   : > { %v3663_v57 = vmul.f32 1.442695, %v3627_v9  ;;  %v3665_v6 = vmul.f32 1.442695, %v3628_v49  ;;  %v3629_v25 = vsub.f32 %v8547_v20, %v3586_v53  ;;  %v3630_v2 = vsub.f32 %v8549_v50, %v3586_v53 }
 0xa15   : > { %6534 = vpow2.f32 %v3663_v57  ;;  %v3667_v18 = vmul.f32 1.442695, %v3629_v25  ;;  %v3669_v51 = vmul.f32 1.442695, %v3630_v2 }
 0xa16   : > { %6536 = vpow2.f32 %v3665_v6 }
 0xa17   : > { %v8690_v35 = vpop.eup %6526  ;;  %6538 = vpow2.f32 %v3667_v18 }
 0xa18   : > { %v8692_v21 = vpop.eup %6528  ;;  %6540 = vpow2.f32 %v3669_v51  ;;  %v3589_v11 = vpop.xlane.xlu0 %3588 }
 0xa19   : > { %v8694_v40 = vpop.eup %6530  ;;  %v3631_v61 = vsub.f32 %v8557_v32, %v3589_v11  ;;  %v3632_v3 = vsub.f32 %v8559_v47, %v3589_v11  ;;  %v3719_v20 = vadd.f32 %v8692_v21, %v8690_v35 }
 0xa1a   : > { %v8700_v50 = vpop.eup %6532  ;;  %v3592_v58 = vpop.xlane.xlu1 %3591 }
 0xa1b   : > { %v3671_v53 = vmul.f32 1.442695, %v3631_v61  ;;  %v3673_v41 = vmul.f32 1.442695, %v3632_v3  ;;  %3720 = vadd.xlane.f32.xlu0 %v3719_v20  ;;  %v3633_v9 = vsub.f32 %v8564_v43, %v3592_v58  ;;  %v3634_v19 = vsub.f32 %v8566_v30, %v3592_v58 }
 0xa1c   : > { %v3722_v27 = vadd.f32 %v8700_v50, %v8694_v40 }
 0xa1d   : > { %6542 = vpow2.f32 %v3671_v53  ;;  %v3675_v32 = vmul.f32 1.442695, %v3633_v9  ;;  %v3677_v49 = vmul.f32 1.442695, %v3634_v19 }
 0xa1e   : > { %6544 = vpow2.f32 %v3673_v41  ;;  %3723 = vadd.xlane.f32.xlu1 %v3722_v27 }
 0xa1f   : > { %v8706_v47 = vpop.eup %6534  ;;  %6546 = vpow2.f32 %v3675_v32 }
 0xa20   : > { %v8708_v57 = vpop.eup %6536  ;;  %6548 = vpow2.f32 %v3677_v49  ;;  %v3595_v6 = vpop.xlane.xlu0 %3594 }
 0xa21   : > { %v8710_v25 = vpop.eup %6538  ;;  %v3635_v43 = vsub.f32 %v8574_v22, %v3595_v6  ;;  %v3636_v30 = vsub.f32 %v8576_v31, %v3595_v6  ;;  %v3725_v2 = vadd.f32 %v8708_v57, %v8706_v47 }
 0xa22   : > { %v8716_v18 = vpop.eup %6540  ;;  %v3598_v51 = vpop.xlane.xlu1 %3597 }
 0xa23   : > { %v3679_v11 = vmul.f32 1.442695, %v3635_v43  ;;  %v3681_v61 = vmul.f32 1.442695, %v3636_v30  ;;  %3726 = vadd.xlane.f32.xlu0 %v3725_v2  ;;  %v3637_v3 = vsub.f32 %v8581_v36, %v3598_v51  ;;  %v3638_v20 = vsub.f32 %v8583_v28, %v3598_v51 }
 0xa24   : > { %v3728_v58 = vadd.f32 %v8716_v18, %v8710_v25 }
 0xa25   : > { %6550 = vpow2.f32 %v3679_v11  ;;  %v3683_v22 = vmul.f32 1.442695, %v3637_v3  ;;  %v3685_v53 = vmul.f32 1.442695, %v3638_v20 }
 0xa26   : > { %6552 = vpow2.f32 %v3681_v61  ;;  %3729 = vadd.xlane.f32.xlu1 %v3728_v58 }
 0xa27   : > { %v8722_v31 = vpop.eup %6542  ;;  %6554 = vpow2.f32 %v3683_v22 }
 0xa28   : > { %v8724_v41 = vpop.eup %6544  ;;  %6556 = vpow2.f32 %v3685_v53  ;;  %v3601_v9 = vpop.xlane.xlu0 %3600 }
 0xa29   : > { %v8726_v19 = vpop.eup %6546  ;;  %v3639_v36 = vsub.f32 %v8591_v16, %v3601_v9  ;;  %v3640_v28 = vsub.f32 %v8593_v0, %v3601_v9  ;;  %v3731_v27 = vadd.f32 %v8724_v41, %v8722_v31 }
 0xa2a   : > { %v8732_v32 = vpop.eup %6548  ;;  %v3604_v49 = vpop.xlane.xlu1 %3603 }
 0xa2b   : > { %v3687_v6 = vmul.f32 1.442695, %v3639_v36  ;;  %v3689_v43 = vmul.f32 1.442695, %v3640_v28  ;;  %3732 = vadd.xlane.f32.xlu0 %v3731_v27  ;;  %v3641_v30 = vsub.f32 %v8598_v55, %v3604_v49  ;;  %v3642_v2 = vsub.f32 %v8600_v48, %v3604_v49 }
 0xa2c   : > { %v3734_v51 = vadd.f32 %v8732_v32, %v8726_v19 }
 0xa2d   : > { %6558 = vpow2.f32 %v3687_v6  ;;  %v3691_v16 = vmul.f32 1.442695, %v3641_v30  ;;  %v3693_v11 = vmul.f32 1.442695, %v3642_v2 }
 0xa2e   : > { %6560 = vpow2.f32 %v3689_v43  ;;  %3735 = vadd.xlane.f32.xlu1 %v3734_v51 }
 0xa2f   : > { %v8738_v0 = vpop.eup %6550  ;;  %6562 = vpow2.f32 %v3691_v16 }
 0xa30   : > { %v8740_v61 = vpop.eup %6552  ;;  %6564 = vpow2.f32 %v3693_v11  ;;  %v3607_v3 = vpop.xlane.xlu0 %3606 }
 0xa31   : > { %v8742_v20 = vpop.eup %6554  ;;  %v3643_v55 = vsub.f32 %v8608_v34, %v3607_v3  ;;  %v3644_v48 = vsub.f32 %v8610_v42, %v3607_v3  ;;  %v3737_v58 = vadd.f32 %v8740_v61, %v8738_v0 }
 0xa32   : > { %v8748_v22 = vpop.eup %6556  ;;  %v3610_v53 = vpop.xlane.xlu1 %3609 }
 0xa33   : > { %v3695_v9 = vmul.f32 1.442695, %v3643_v55  ;;  %v3697_v36 = vmul.f32 1.442695, %v3644_v48  ;;  %3738 = vadd.xlane.f32.xlu0 %v3737_v58  ;;  %v3645_v28 = vsub.f32 %v8615_v46, %v3610_v53  ;;  %v3646_v27 = vsub.f32 %v8617_v44, %v3610_v53 }
 0xa34   : > { %v3740_v49 = vadd.f32 %v8748_v22, %v8742_v20 }
 0xa35   : > { %6566 = vpow2.f32 %v3695_v9  ;;  %v3699_v34 = vmul.f32 1.442695, %v3645_v28  ;;  %v3701_v6 = vmul.f32 1.442695, %v3646_v27 }
 0xa36   : > { %6568 = vpow2.f32 %v3697_v36  ;;  %3741 = vadd.xlane.f32.xlu1 %v3740_v49 }
 0xa37   : > { %v8754_v42 = vpop.eup %6558  ;;  %6570 = vpow2.f32 %v3699_v34 }
 0xa38   : > { %v8756_v43 = vpop.eup %6560  ;;  %6572 = vpow2.f32 %v3701_v6  ;;  %v3613_v30 = vpop.xlane.xlu0 %3612 }
 0xa39   : > { %v8758_v2 = vpop.eup %6562  ;;  %v3647_v46 = vsub.f32 %v8625_v10, %v3613_v30  ;;  %v3648_v44 = vsub.f32 %v8627_v15, %v3613_v30  ;;  %v3743_v51 = vadd.f32 %v8756_v43, %v8754_v42 }
 0xa3a   : > { %v8764_v16 = vpop.eup %6564  ;;  %v3616_v11 = vpop.xlane.xlu1 %3615 }
 0xa3b   : > { %v3703_v3 = vmul.f32 1.442695, %v3647_v46  ;;  %v3705_v55 = vmul.f32 1.442695, %v3648_v44  ;;  %3744 = vadd.xlane.f32.xlu1 %v3743_v51  ;;  %v3649_v48 = vsub.f32 %v8632_v12, %v3616_v11  ;;  %v3650_v58 = vsub.f32 %v8634_v33, %v3616_v11 }
 0xa3c   : > { %v3746_v53 = vadd.f32 %v8764_v16, %v8758_v2 }
 0xa3d   : > { %6574 = vpow2.f32 %v3703_v3  ;;  %v3707_v10 = vmul.f32 1.442695, %v3649_v48  ;;  %v3709_v9 = vmul.f32 1.442695, %v3650_v58 }
 0xa3e   : > { %6576 = vpow2.f32 %v3705_v55  ;;  %3747 = vadd.xlane.f32.xlu0 %v3746_v53  ;;  %v8799_v3 = vpop.permute.xlu1 %4217 }
 0xa3f   : > { %v8770_v15 = vpop.eup %6566  ;;  %6578 = vpow2.f32 %v3707_v10 }
 0xa40   : > { %v8772_v36 = vpop.eup %6568  ;;  %6580 = vpow2.f32 %v3709_v9  ;;  %v3619_v51 = vpop.xlane.xlu0 %3618 }
 0xa41   : > { %v8774_v28 = vpop.eup %6570  ;;  %v3749_v12 = vadd.f32 %v8772_v36, %v8770_v15  ;;  %v3651_v11 = vsub.f32 %v8642_v26, %v3619_v51  ;;  %v3652_v55 = vsub.f32 %v8644_v7, %v3619_v51 }
 0xa42   : > { %v8778_v33 = vpop.eup %6572  ;;  %v8802_v53 = vpop.permute.xlu1 %4203 }
 0xa43   : > { %3750 = vadd.xlane.f32.xlu1 %v3749_v12  ;;  %v3752_v27 = vadd.f32 %v8778_v33, %v8774_v28  ;;  %v3711_v48 = vmul.f32 1.442695, %v3651_v11  ;;  %v3713_v58 = vmul.f32 1.442695, %v3652_v55  ;;  %v9498_v55 = vld [vmem:[#allocation27_spill] sm:$0xff] }
 0xa45   : > { %3753 = vadd.xlane.f32.xlu0 %v3752_v27  ;;  %6582 = vpow2.f32 %v3711_v48 }
 0xa46   : > { %6584 = vpow2.f32 %v3713_v58 }
 0xa47   : > { %v8782_v49 = vpop.eup %6574 }
 0xa48   : > { %v8784_v34 = vpop.eup %6576 }
 0xa49   : > { %v8786_v6 = vpop.eup %6578  ;;  %v3755_v30 = vadd.f32 %v8784_v34, %v8782_v49 }
 0xa4a   : > { %v8790_v46 = vpop.eup %6580 }
 0xa4b   : > { %3756 = vadd.xlane.f32.xlu1 %v3755_v30  ;;  %v3758_v44 = vadd.f32 %v8790_v46, %v8786_v6 }
 0xa4d   : > { %3759 = vadd.xlane.f32.xlu0 %v3758_v44 }
 0xa4f   : > { %v8806_v26 = vpop.eup %6582 }
 0xa50   : > { %v8808_v27 = vpop.eup %6584 }
 0xa51   : > { %v3761_v7 = vadd.f32 %v8808_v27, %v8806_v26 }
 0xa5c   : > { %4221 = vrot.lane.b32.xlu1 %v8402_v17, %s6961_s5 }
 0xa63   : > { %4205 = vrot.lane.b32.xlu0 %v8406_v4, %s6961_s5 }
 0xa73   : > { %v3622_v10 = vpop.xlane.xlu1 %3621 }
 0xa74   : > { %v3653_v9 = vsub.f32 %v8649_v14, %v3622_v10  ;;  %v3654_v17 = vsub.f32 %v8651_v39, %v3622_v10  ;;  %v8832_v39 = vpop.permute.xlu0 %4201 }
 0xa76   : > { %v3715_v12 = vmul.f32 1.442695, %v3653_v9  ;;  %v3717_v4 = vmul.f32 1.442695, %v3654_v17 }
 0xa78   : > { %6586 = vpow2.f32 %v3715_v12  ;;  %v9499_v12 = vld [vmem:[#allocation23_spill] sm:$0xff] }
 0xa79   : > { %6588 = vpow2.f32 %v3717_v4 }
 0xa80   : > { %3762 = vadd.xlane.f32.xlu1 %v3761_v7 }
 0xa82   : > { %v8812_v30 = vpop.eup %6586 }
 0xa83   : > { %v8814_v44 = vpop.eup %6588 }
 0xa84   : > { %v3764_v14 = vadd.f32 %v8814_v44, %v8812_v30 }
 0xa86   : > { %3765 = vadd.xlane.f32.xlu0 %v3764_v14 }
 0xa91   : > { %4223 = vrot.lane.b32.xlu1 %v8410_v59, %s6961_s5  ;;  %v8838_v59 = vpop.permute.xlu1 %4219 }
 0xa95   : > { %4163 = vrot.lane.b32.xlu1 %v9460_v8, %s6961_s5 }
 0xa99   : > { %4167 = vrot.lane.b32.xlu1 %v9462_v13, %s6961_s5 }
 0xa9c   : > { %4207 = vrot.lane.b32.xlu0 %v8418_v1, %s6961_s5 }
 0xa9d   : > { %4171 = vrot.lane.b32.xlu1 %v9464_v29, %s6961_s5 }
 0xaa0   : > { %4161 = vrot.lane.b32.xlu0 %v9459_v62, %s6961_s5 }
 0xaa1   : > { %4175 = vrot.lane.b32.xlu1 %v9466_v56, %s6961_s5 }
 0xaa4   : > { %4165 = vrot.lane.b32.xlu0 %v9461_v54, %s6961_s5 }
 0xaa5   : > { %4682 = vrot.lane.b32.xlu1 %v8479_v24, %s6961_s5 }
 0xaa8   : > { %v3721_v1 = vpop.xlane.xlu0 %3720  ;;  %4169 = vrot.lane.b32.xlu0 %v9463_v23, %s6961_s5 }
 0xaa9   : > { %4684 = vrot.lane.b32.xlu1 %v8486_v38, %s6961_s5  ;;  %6590 = vrcp.f32 %v3721_v1  ;;  %v9493_v38 = vld [vmem:[#allocation20_spill] sm:$0xff] }
 0xaab   : > { %v3724_v62 = vpop.xlane.xlu1 %3723 }
 0xaac   : > { %6592 = vrcp.f32 %v3724_v62  ;;  %4173 = vrot.lane.b32.xlu0 %v9465_v5, %s6961_s5  ;;  %v9500_v62 = vld [vmem:[#allocation26_spill] sm:$0xff] }
 0xaad   : > { %4702 = vrot.lane.b32.xlu1 %v8488_v37, %s6961_s5 }
 0xab0   : > { %v3727_v8 = vpop.xlane.xlu0 %3726  ;;  %4698 = vrot.lane.b32.xlu0 %v8477_v52, %s6961_s5 }
 0xab1   : > { %4686 = vrot.lane.b32.xlu1 %v8492_v60, %s6961_s5  ;;  %6594 = vrcp.f32 %v3727_v8  ;;  %v4253_v8 = vsel %vm1759_vm0, %v9500_v62, 0 }
 0xab3   : > { %v3730_v54 = vpop.xlane.xlu1 %3729  ;;  %v6591_v13 = vpop.eup %6590 }
 0xab4   : > { %6596 = vrcp.f32 %v3730_v54  ;;  %4700 = vrot.lane.b32.xlu0 %v8481_v45, %s6961_s5  ;;  %v3783_v29 = vmul.f32 %v6591_v13, %v8690_v35  ;;  %v3784_v56 = vmul.f32 %v6591_v13, %v8692_v21  ;;  %v9494_v45 = vld [vmem:[#allocation22_spill] sm:$0xff]  ;;  %v9495_v35 = vld [vmem:[#allocation25_spill] sm:$0xff] }
 0xab5   : > { %4688 = vrot.lane.b32.xlu1 %v8498_v63, %s6961_s5  ;;  %v9496_v21 = vld [vmem:[#allocation21_spill] sm:$0xff] }
 0xab6   : > { %v6593_v23 = vpop.eup %6592 }
 0xab7   : > { %v3785_v5 = vmul.f32 %v6593_v23, %v8694_v40  ;;  %v3786_v52 = vmul.f32 %v6593_v23, %v8700_v50  ;;  %v4250_v40 = vsel %vm1759_vm0, %v9495_v35, 0  ;;  %v9497_v50 = vld [vmem:[#allocation24_spill] sm:$0xff] }
 0xab8   : > { %v3733_v24 = vpop.xlane.xlu0 %3732  ;;  %4704 = vrot.lane.b32.xlu0 %v9493_v38, %s6961_s5 }
 0xab9   : > { %v3816_v37 = vpack.c.bf16 %v3786_v52, %v3784_v56  ;;  %v3815_v60 = vpack.c.bf16 %v3785_v5, %v3783_v29  ;;  %4690 = vrot.lane.b32.xlu1 %v9494_v45, %s6961_s5  ;;  %6598 = vrcp.f32 %v3733_v24  ;;  %v9502_v24 = vld [vmem:[#allocation29_spill] sm:$0xff] }
 0xaba   : > { %v4256_v38 = vsel %vm1759_vm0, %v9502_v24, 0 }
 0xabb   : > { %3863 = vmatprep.mubr.bf16.mxu0 %v3816_v37  ;;  %v3736_v63 = vpop.xlane.xlu1 %3735  ;;  %v6595_v51 = vpop.eup %6594  ;;  %v9503_v37 = vld [vmem:[#allocation30_spill] sm:$0xff] }
 0xabc   : > { %6600 = vrcp.f32 %v3736_v63  ;;  %3864 = vmatmul.mubr.bf16.vlgmr.msra.gmra.mrb[144].mxu0 %v3815_v60  ;;  %4706 = vrot.lane.b32.xlu0 %v9496_v21, %s6961_s5  ;;  %v3788_v48 = vmul.f32 %v6595_v51, %v8708_v57  ;;  %v3787_v10 = vmul.f32 %v6595_v51, %v8706_v47  ;;  %v9501_v47 = vld [vmem:[#allocation28_spill] sm:$0xff]  ;;  %v9504_v21 = vld [vmem:[#allocation31_spill] sm:$0xff] }
 0xabd   : > { %5762 = vmatpush3.bf16.xpose.msra.mxu0 %v4250_v40  ;;  %4692 = vrot.lane.b32.xlu1 %v9497_v50, %s6961_s5  ;;  %v4259_v50 = vsel %vm1759_vm0, %v9504_v21, 0 }
 0xabe   : > { %v6597_v11 = vpop.eup %6596  ;;  %6002 = vmatprep.subr.msk.bf16.mxu0 %vm1759_vm0, %v9498_v55 }
 0xabf   : > { %v3790_v58 = vmul.f32 %v6597_v11, %v8716_v18  ;;  %v3789_v9 = vmul.f32 %v6597_v11, %v8710_v25 }
 0xac0   : > { %v3739_v17 = vpop.xlane.xlu0 %3738  ;;  %4708 = vrot.lane.b32.xlu0 %v9499_v12, %s6961_s5 }
 0xac1   : > { %v3818_v4 = vpack.c.bf16 %v3790_v58, %v3788_v48  ;;  %v3817_v7 = vpack.c.bf16 %v3789_v9, %v3787_v10  ;;  %6602 = vrcp.f32 %v3739_v17  ;;  %v4262_v17 = vsel %vm1759_vm0, %v8832_v39, 0 }
 0xac2   : > { %v4265_v39 = vsel %vm1759_vm0, %v8802_v53, 0  ;;  %v6313_v53 = vld [vmem:[#allocation9 + $0x90] ss:$8 sps:$4 sm:$0xff]  }
 0xac3   : > { %3871 = vmatprep.mubr.bf16.mxu0 %v3818_v4  ;;  %v3742_v14 = vpop.xlane.xlu1 %3741  ;;  %v6599_v1 = vpop.eup %6598 }
 0xac4   : > { %6604 = vrcp.f32 %v3742_v14  ;;  %3872 = vmatmul.mubr.bf16.gmra.mrb[148].mxu0 %v3817_v7  ;;  %v3792_v25 = vmul.f32 %v6599_v1, %v8724_v41  ;;  %v3791_v54 = vmul.f32 %v6599_v1, %v8722_v31  ;;  %v6310_v14 = vld [vmem:[#allocation9 + $0x80] ss:$8 sps:$4 sm:$0xff]   ;;  %v6312_v1 = vld [vmem:[#allocation9 + $0x84] ss:$8 sps:$4 sm:$0xff]  }
 0xac5   : > { %5764 = vmatpush3.bf16.xpose.msra.mxu0 %v4253_v8  ;;  %4008 = vmatprep.subr.bf16.mxu1 %v6312_v1 }
 0xac6   : > { %v6601_v57 = vpop.eup %6600  ;;  %6003 = vmatprep.subr.msk.bf16.mxu0 %vm1759_vm0, %v9501_v47  ;;  %4009 = vmatpush1.bf16.msra.mxu1 %v6310_v14 }
 0xac7   : > { %v3794_v18 = vmul.f32 %v6601_v57, %v8732_v32  ;;  %v3793_v13 = vmul.f32 %v6601_v57, %v8726_v19 }
 0xac8   : > { %v3745_v23 = vpop.xlane.xlu1 %3744 }
 0xac9   : > { %v3820_v29 = vpack.c.bf16 %v3794_v18, %v3792_v25  ;;  %v3819_v5 = vpack.c.bf16 %v3793_v13, %v3791_v54  ;;  %6606 = vrcp.f32 %v3745_v23  ;;  %v6318_v54 = vld [vmem:[#allocation9 + $0xa4] ss:$8 sps:$4 sm:$0xff]   ;;  %v6319_v23 = vld [vmem:[#allocation9 + $0xb0] ss:$8 sps:$4 sm:$0xff]  }
 0xacb   : > { %v3748_v56 = vpop.xlane.xlu0 %3747  ;;  %3879 = vmatprep.mubr.bf16.mxu0 %v3820_v29  ;;  %v6603_v52 = vpop.eup %6602 }
 0xacc   : > { %6608 = vrcp.f32 %v3748_v56  ;;  %3880 = vmatmul.mubr.bf16.gmra.mrb[152].mxu0 %v3819_v5  ;;  %v3796_v31 = vmul.f32 %v6603_v52, %v8740_v61  ;;  %v3795_v32 = vmul.f32 %v6603_v52, %v8738_v0 }
 0xacd   : > { %5766 = vmatpush3.bf16.xpose.msra.mxu0 %v4256_v38 }
 0xace   : > { %v6605_v41 = vpop.eup %6604  ;;  %6004 = vmatprep.subr.msk.bf16.mxu0 %vm1759_vm0, %v9503_v37 }
 0xacf   : > { %v3798_v19 = vmul.f32 %v6605_v41, %v8748_v22  ;;  %v3797_v60 = vmul.f32 %v6605_v41, %v8742_v20 }
 0xad0   : > { %v3751_v45 = vpop.xlane.xlu1 %3750 }
 0xad1   : > { %6610 = vrcp.f32 %v3751_v45  ;;  %v3822_v63 = vpack.c.bf16 %v3798_v19, %v3796_v31  ;;  %v3821_v51 = vpack.c.bf16 %v3797_v60, %v3795_v32 }
 0xad2   : > { %v3754_v35 = vpop.xlane.xlu0 %3753 }
 0xad3   : > { %6612 = vrcp.f32 %v3754_v35  ;;  %3887 = vmatprep.mubr.bf16.mxu0 %v3822_v63  ;;  %v6607_v40 = vpop.eup %6606 }
 0xad4   : > { %3888 = vmatmul.mubr.bf16.gmra.mrb[156].mxu0 %v3821_v51  ;;  %v3800_v0 = vmul.f32 %v6607_v40, %v8756_v43  ;;  %v3799_v22 = vmul.f32 %v6607_v40, %v8754_v42 }
 0xad5   : > { %5768 = vmatpush3.bf16.xpose.msra.mxu0 %v4259_v50 }
 0xad6   : > { %v6609_v61 = vpop.eup %6608  ;;  %6005 = vmatprep.subr.msk.bf16.mxu0 %vm1759_vm0, %v8799_v3 }
 0xad7   : > { %v3802_v20 = vmul.f32 %v6609_v61, %v8764_v16  ;;  %v3801_v11 = vmul.f32 %v6609_v61, %v8758_v2 }
 0xad8   : > { %v3757_v55 = vpop.xlane.xlu1 %3756 }
 0xad9   : > { %6614 = vrcp.f32 %v3757_v55  ;;  %v3824_v48 = vpack.c.bf16 %v3802_v20, %v3800_v0  ;;  %v3823_v58 = vpack.c.bf16 %v3801_v11, %v3799_v22  ;;  %v9505_v11 = vmov 0  }
 0xada   : > { %v3760_v10 = vpop.xlane.xlu0 %3759 }
 0xadb   : > { %v6611_v9 = vpop.eup %6610  ;;  %6616 = vrcp.f32 %v3760_v10  ;;  %3895 = vmatprep.mubr.bf16.mxu0 %v3824_v48 }
 0xadc   : > { %3896 = vmatmul.mubr.bf16.gmra.mrb[160].mxu0 %v3823_v58  ;;  %v3804_v42 = vmul.f32 %v6611_v9, %v8772_v36  ;;  %v3803_v2 = vmul.f32 %v6611_v9, %v8770_v15 }
 0xadd   : > { %v6613_v3 = vpop.eup %6612  ;;  %5770 = vmatpush3.bf16.xpose.msra.mxu0 %v4262_v17 }
 0xade   : > { %6006 = vmatprep.subr.msk.bf16.mxu0 %vm1759_vm0, %v8838_v59  ;;  %v3806_v43 = vmul.f32 %v6613_v3, %v8778_v33  ;;  %v3805_v16 = vmul.f32 %v6613_v3, %v8774_v28  ;;  %v4222_v59 = vpop.permute.xlu1 %4221  ;;  %v6315_v33 = vld [vmem:[#allocation9 + $0x94] ss:$8 sps:$4 sm:$0xff]   ;;  %v4206_v25 = vpop.permute.xlu0 %4205 }
 0xadf   : > { %4010 = vmatprep.subr.bf16.mxu1 %v6315_v33 }
 0xae0   : > { %v3826_v12 = vpack.c.bf16 %v3806_v43, %v3804_v42  ;;  %v3825_v4 = vpack.c.bf16 %v3805_v16, %v3803_v2  ;;  %4011 = vmatpush1.bf16.msra.mxu1 %v6313_v53 }
 0xae1   : > { %4012 = vmatprep.subr.bf16.mxu1 %v6318_v54 }
 0xae2   : > { %3903 = vmatprep.mubr.bf16.mxu0 %v3826_v12 }
 0xae3   : > { %v6615_v7 = vpop.eup %6614 }
 0xae4   : > { %3904 = vmatmul.mubr.bf16.gmra.mrb[164].mxu0 %v3825_v4  ;;  %v3808_v36 = vmul.f32 %v6615_v7, %v8784_v34  ;;  %v3807_v28 = vmul.f32 %v6615_v7, %v8782_v49  ;;  %v4268_v34 = vsel %vm1759_vm0, %v4206_v25, 0 }
 0xae5   : > { %v6617_v62 = vpop.eup %6616  ;;  %5772 = vmatpush3.bf16.xpose.msra.mxu0 %v4265_v39 }
 0xae6   : > { %6007 = vmatprep.subr.msk.bf16.mxu0 %vm1759_vm0, %v4222_v59  ;;  %v3810_v15 = vmul.f32 %v6617_v62, %v8790_v46  ;;  %v3809_v8 = vmul.f32 %v6617_v62, %v8786_v6  ;;  %v6316_v46 = vld [vmem:[#allocation9 + $0xa0] ss:$8 sps:$4 sm:$0xff]   ;;  %v6321_v6 = vld [vmem:[#allocation9 + $0xb4] ss:$8 sps:$4 sm:$0xff]  }
 0xae7   : > { %4013 = vmatpush1.bf16.msra.mxu1 %v6316_v46 }
 0xae8   : > { %v3828_v57 = vpack.c.bf16 %v3810_v15, %v3808_v36  ;;  %v3827_v47 = vpack.c.bf16 %v3809_v8, %v3807_v28  ;;  %4014 = vmatprep.subr.bf16.mxu1 %v6321_v6 }
 0xaea   : > { %3911 = vmatprep.mubr.bf16.mxu0 %v3828_v57 }
 0xaeb   : > { %4015 = vmatpush1.bf16.msra.mxu1 %v6319_v23 }
 0xaec   : > { %3912 = vmatmul.mubr.bf16.gmra.mrb[168].mxu0 %v3827_v47 }
 0xaed   : > { %5774 = vmatpush3.bf16.xpose.msra.mxu0 %v4268_v34 }
 0xb0d   : > { %v3763_v18 = vpop.xlane.xlu1 %3762 }
 0xb0e   : > { %6618 = vrcp.f32 %v3763_v18 }
 0xb11   : > { %v4224_v49 = vpop.permute.xlu1 %4223 }
 0xb12   : > { %6008 = vmatprep.subr.msk.bf16.mxu0 %vm1759_vm0, %v4224_v49 }
 0xb13   : > { %v3766_v13 = vpop.xlane.xlu0 %3765 }
 0xb14   : > { %6620 = vrcp.f32 %v3766_v13 }
 0xb15   : > { %v4164_v60 = vpop.permute.xlu1 %4163 }
 0xb17   : > { %v4208_v29 = vpop.permute.xlu0 %4207 }
 0xb18   : > { %v4271_v5 = vsel %vm1759_vm0, %v4208_v29, 0  ;;  %v6619_v56 = vpop.eup %6618 }
 0xb19   : > { %5776 = vmatpush3.bf16.xpose.msra.mxu0 %v4271_v5  ;;  %v3812_v24 = vmul.f32 %v6619_v56, %v8808_v27  ;;  %v3811_v41 = vmul.f32 %v6619_v56, %v8806_v26  ;;  %v4168_v26 = vpop.permute.xlu1 %4167 }
 0xb1b   : > { %v4162_v32 = vpop.permute.xlu0 %4161 }
 0xb1e   : > { %v6621_v52 = vpop.eup %6620 }
 0xb1f   : > { %v3814_v38 = vmul.f32 %v6621_v52, %v8814_v44  ;;  %v3813_v37 = vmul.f32 %v6621_v52, %v8812_v30  ;;  %v4166_v45 = vpop.permute.xlu0 %4165  ;;  %v4172_v30 = vpop.permute.xlu1 %4171 }
 0xb21   : > { %v3830_v31 = vpack.c.bf16 %v3814_v38, %v3812_v24  ;;  %v3829_v19 = vpack.c.bf16 %v3813_v37, %v3811_v41 }
 0xb23   : > { %3919 = vmatprep.mubr.bf16.mxu0 %v3830_v31  ;;  %v4170_v27 = vpop.permute.xlu0 %4169  ;;  %v4176_v63 = vpop.permute.xlu1 %4175 }
 0xb24   : > { %3920 = vmatmul.mubr.bf16.gmra.mrb[172].mxu0 %v3829_v19 }
 0xb25   : > { %5777 = vmatprep.mubr.msk.bf16.mxu0 %vm1759_vm0, %v4162_v32 }
 0xb27   : > { %v4174_v44 = vpop.permute.xlu0 %4173  ;;  %v4683_v52 = vpop.permute.xlu1 %4682 }
 0xb2b   : > { %v4699_v5 = vpop.permute.xlu0 %4698  ;;  %v4685_v37 = vpop.permute.xlu1 %4684 }
 0xb2c   : > { %5778 = vmatmul.mubr.msk.bf16.vlgmr.msra.gmra.mrb[176].mxu0 %vm1759_vm0, %v4162_v32  ;;  %5793 = vmatprep.subr.bf16.mxu1 %v4699_v5 }
 0xb2d   : > { %5779 = vmatprep.mubr.msk.bf16.mxu0 %vm1759_vm0, %v4164_v60 }
 0xb2f   : > { %v4701_v41 = vpop.permute.xlu0 %4700  ;;  %v4703_v19 = vpop.permute.xlu1 %4702 }
 0xb33   : > { %v4705_v31 = vpop.permute.xlu0 %4704  ;;  %v4687_v32 = vpop.permute.xlu1 %4686 }
 0xb34   : > { %5780 = vmatmul.mubr.msk.bf16.gmra.mrb[180].mxu0 %vm1759_vm0, %v4164_v60 }
 0xb35   : > { %5781 = vmatprep.mubr.msk.bf16.mxu0 %vm1759_vm0, %v4166_v45 }
 0xb37   : > { %v4707_v60 = vpop.permute.xlu0 %4706 }
 0xb3c   : > { %5782 = vmatmul.mubr.msk.bf16.gmra.mrb[184].mxu0 %vm1759_vm0, %v4166_v45  ;;  %v4689_v45 = vpop.permute.xlu1 %4688 }
 0xb3d   : > { %5783 = vmatprep.mubr.msk.bf16.mxu0 %vm1759_vm0, %v4168_v26 }
 0xb44   : > { %5784 = vmatmul.mubr.msk.bf16.gmra.mrb[188].mxu0 %vm1759_vm0, %v4168_v26  ;;  %v4709_v26 = vpop.permute.xlu0 %4708 }
 0xb45   : > { %5785 = vmatprep.mubr.msk.bf16.mxu0 %vm1759_vm0, %v4170_v27 }
 0xb4c   : > { %5786 = vmatmul.mubr.msk.bf16.gmra.mrb[192].mxu0 %vm1759_vm0, %v4170_v27  ;;  %v4691_v27 = vpop.permute.xlu1 %4690 }
 0xb4d   : > { %5787 = vmatprep.mubr.msk.bf16.mxu0 %vm1759_vm0, %v4172_v30 }
 0xb54   : > { %5788 = vmatmul.mubr.msk.bf16.gmra.mrb[196].mxu0 %vm1759_vm0, %v4172_v30  ;;  %v4693_v30 = vpop.permute.xlu1 %4692 }
 0xb55   : > { %5789 = vmatprep.mubr.msk.bf16.mxu0 %vm1759_vm0, %v4174_v44 }
 0xb5c   : > { %5790 = vmatmul.mubr.msk.bf16.gmra.mrb[200].mxu0 %vm1759_vm0, %v4174_v44 }
 0xb5d   : > { %5791 = vmatprep.mubr.msk.bf16.mxu0 %vm1759_vm0, %v4176_v63 }
 0xb64   : > { %5792 = vmatmul.mubr.msk.bf16.gmra.mrb[204].mxu0 %vm1759_vm0, %v4176_v63 }
 0xb8f   : > { %v5713_v51 = vpop.f32.mrb[144].mxu0 }
 0xb90   : > { %v5714_v35 = vpop.f32.mrb[145].mxu0 }
 0xb91   : > { %v5715_v40 = vadd.f32 %v5714_v35, %v5713_v51  ;;  %v5716_v21 = vpop.f32.mrb[146].mxu0 }
 0xb92   : > { %v5717_v50 = vpop.f32.mrb[147].mxu0 }
 0xb93   : > { %v5718_v61 = vadd.f32 %v5717_v50, %v5716_v21 }
 0xb95   : > { %v3928_v0 = vpack.c.bf16 %v5718_v61, %v5715_v40 }
 0xb97   : > { %v5719_v20 = vpop.f32.mrb[148].mxu0  ;;  %5431 = vmatmul.mubr.msk.bf16.vlgmr.msra.gmra.mrb[48].mxu1 %vm1759_vm0, %v3928_v0 }
 0xb98   : > { %v5720_v22 = vpop.f32.mrb[149].mxu0  ;;  %4050 = vmatprep.mubr.bf16.mxu1 %v9505_v11  ;;  %5794 = vmatpush3.bf16.msra.mxu1 %v4683_v52 }
 0xb99   : > { %v5721_v55 = vadd.f32 %v5720_v22, %v5719_v20  ;;  %v5722_v48 = vpop.f32.mrb[150].mxu0  ;;  %5795 = vmatprep.subr.bf16.mxu1 %v4701_v41 }
 0xb9a   : > { %v5723_v58 = vpop.f32.mrb[151].mxu0 }
 0xb9b   : > { %v5724_v10 = vadd.f32 %v5723_v58, %v5722_v48 }
 0xb9c   : > { %5796 = vmatpush3.bf16.msra.mxu1 %v4685_v37 }
 0xb9d   : > { %v3929_v9 = vpack.c.bf16 %v5724_v10, %v5721_v55  ;;  %5797 = vmatprep.subr.bf16.mxu1 %v4703_v19  ;;  %v6735_v19 = vld [vmem:[#allocation3 + $0xe8] sm:$0xff] }
 0xb9f   : > { %v5725_v17 = vpop.f32.mrb[152].mxu0  ;;  %5432 = vmatmul.mubr.msk.bf16.gmra.mrb[52].mxu1 %vm1759_vm0, %v3929_v9 }
 0xba0   : > { %v5726_v3 = vpop.f32.mrb[153].mxu0  ;;  %4060 = vmatprep.mubr.bf16.mxu1 %v9505_v11  ;;  %5798 = vmatpush3.bf16.msra.mxu1 %v4687_v32 }
 0xba1   : > { %v5727_v42 = vadd.f32 %v5726_v3, %v5725_v17  ;;  %v5728_v43 = vpop.f32.mrb[154].mxu0  ;;  %5799 = vmatprep.subr.bf16.mxu1 %v4705_v31  ;;  %v6734_v31 = vld [vmem:[#allocation3 + $0x68] sm:$0xff] }
 0xba2   : > { %v5729_v2 = vpop.f32.mrb[155].mxu0 }
 0xba3   : > { %v5730_v16 = vadd.f32 %v5729_v2, %v5728_v43 }
 0xba4   : > { %5800 = vmatpush3.bf16.msra.mxu1 %v4689_v45 }
 0xba5   : > { %v3930_v12 = vpack.c.bf16 %v5730_v16, %v5727_v42  ;;  %5801 = vmatprep.subr.bf16.mxu1 %v4707_v60 }
 0xba7   : > { %v5731_v4 = vpop.f32.mrb[156].mxu0  ;;  %5433 = vmatmul.mubr.msk.bf16.gmra.mrb[56].mxu1 %vm1759_vm0, %v3930_v12 }
 0xba8   : > { %v5732_v7 = vpop.f32.mrb[157].mxu0  ;;  %4070 = vmatprep.mubr.bf16.mxu1 %v9505_v11  ;;  %5802 = vmatpush3.bf16.msra.mxu1 %v4691_v27 }
 0xba9   : > { %v5733_v39 = vadd.f32 %v5732_v7, %v5731_v4  ;;  %v5734_v14 = vpop.f32.mrb[158].mxu0  ;;  %5803 = vmatprep.subr.bf16.mxu1 %v4709_v26 }
 0xbaa   : > { %v5735_v1 = vpop.f32.mrb[159].mxu0 }
 0xbab   : > { %v5736_v62 = vadd.f32 %v5735_v1, %v5734_v14 }
 0xbac   : > { %5804 = vmatpush3.bf16.msra.mxu1 %v4693_v30 }
 0xbad   : > { %v3931_v59 = vpack.c.bf16 %v5736_v62, %v5733_v39 }
 0xbaf   : > { %v5737_v36 = vpop.f32.mrb[160].mxu0  ;;  %5434 = vmatmul.mubr.msk.bf16.gmra.mrb[60].mxu1 %vm1759_vm0, %v3931_v59 }
 0xbb0   : > { %v5738_v33 = vpop.f32.mrb[161].mxu0  ;;  %4080 = vmatprep.mubr.bf16.mxu1 %v9505_v11 }
 0xbb1   : > { %v5739_v15 = vadd.f32 %v5738_v33, %v5737_v36  ;;  %v5740_v28 = vpop.f32.mrb[162].mxu0 }
 0xbb2   : > { %v5741_v8 = vpop.f32.mrb[163].mxu0 }
 0xbb3   : > { %v5742_v53 = vadd.f32 %v5741_v8, %v5740_v28 }
 0xbb5   : > { %v3932_v57 = vpack.c.bf16 %v5742_v53, %v5739_v15 }
 0xbb7   : > { %v5743_v47 = vpop.f32.mrb[164].mxu0  ;;  %5435 = vmatmul.mubr.msk.bf16.gmra.mrb[64].mxu1 %vm1759_vm0, %v3932_v57 }
 0xbb8   : > { %v5744_v25 = vpop.f32.mrb[165].mxu0  ;;  %4090 = vmatprep.mubr.bf16.mxu1 %v9505_v11 }
 0xbb9   : > { %v5745_v34 = vadd.f32 %v5744_v25, %v5743_v47  ;;  %v5746_v18 = vpop.f32.mrb[166].mxu0 }
 0xbba   : > { %v5747_v54 = vpop.f32.mrb[167].mxu0 }
 0xbbb   : > { %v5748_v46 = vadd.f32 %v5747_v54, %v5746_v18 }
 0xbbd   : > { %v3933_v49 = vpack.c.bf16 %v5748_v46, %v5745_v34 }
 0xbbf   : > { %v5749_v6 = vpop.f32.mrb[168].mxu0  ;;  %5436 = vmatmul.mubr.msk.bf16.gmra.mrb[68].mxu1 %vm1759_vm0, %v3933_v49 }
 0xbc0   : > { %v5750_v13 = vpop.f32.mrb[169].mxu0  ;;  %4100 = vmatprep.mubr.bf16.mxu1 %v9505_v11 }
 0xbc1   : > { %v5751_v23 = vadd.f32 %v5750_v13, %v5749_v6  ;;  %v5752_v29 = vpop.f32.mrb[170].mxu0 }
 0xbc2   : > { %v5753_v56 = vpop.f32.mrb[171].mxu0 }
 0xbc3   : > { %v5754_v24 = vadd.f32 %v5753_v56, %v5752_v29 }
 0xbc5   : > { %v3934_v38 = vpack.c.bf16 %v5754_v24, %v5751_v23 }
 0xbc7   : > { %5437 = vmatmul.mubr.msk.bf16.gmra.mrb[72].mxu1 %vm1759_vm0, %v3934_v38 }
 0xbc8   : > { %4110 = vmatprep.mubr.bf16.mxu1 %v9505_v11 }
 0xbf7   : > { %v5755_v44 = vpop.f32.mrb[172].mxu0 }
 0xbf8   : > { %v5756_v63 = vpop.f32.mrb[173].mxu0 }
 0xbf9   : > { %v5757_v51 = vadd.f32 %v5756_v63, %v5755_v44  ;;  %v5758_v35 = vpop.f32.mrb[174].mxu0 }
 0xbfa   : > { %v5759_v40 = vpop.f32.mrb[175].mxu0 }
 0xbfb   : > { %v5760_v21 = vadd.f32 %v5759_v40, %v5758_v35 }
 0xbfd   : > { %v3935_v50 = vpack.c.bf16 %v5760_v21, %v5757_v51 }
 0xbff   : > { %5438 = vmatmul.mubr.msk.bf16.gmra.mrb[76].mxu1 %vm1759_vm0, %v3935_v50  ;;  %v8955_v61 = vpop.f32.mrb[176].mxu0 }
 0xc00   : > { %v8957_v0 = vpop.f32.mrb[177].mxu0 }
 0xc01   : > { %v4410_v20 = vmax.f32 %v8955_v61, %v8957_v0  ;;  %v8961_v22 = vpop.f32.mrb[178].mxu0 }
 0xc02   : > { %v8963_v55 = vpop.f32.mrb[179].mxu0 }
 0xc03   : > { %v4413_v48 = vmax.f32 %v8961_v22, %v8963_v55  ;;  %4411 = vmax.xlane.f32.xlu0 %v4410_v20 }
 0xc05   : > { %4414 = vmax.xlane.f32.xlu1 %v4413_v48 }
 0xc07   : > { %v8967_v58 = vpop.f32.mrb[180].mxu0 }
 0xc08   : > { %v8969_v10 = vpop.f32.mrb[181].mxu0 }
 0xc09   : > { %v4416_v9 = vmax.f32 %v8967_v58, %v8969_v10  ;;  %v8973_v17 = vpop.f32.mrb[182].mxu0 }
 0xc0a   : > { %v8975_v3 = vpop.f32.mrb[183].mxu0 }
 0xc0b   : > { %v4419_v42 = vmax.f32 %v8973_v17, %v8975_v3  ;;  %4417 = vmax.xlane.f32.xlu0 %v4416_v9 }
 0xc0f   : > { %4420 = vmax.xlane.f32.xlu0 %v4419_v42  ;;  %v8979_v43 = vpop.f32.mrb[184].mxu0 }
 0xc10   : > { %v8981_v2 = vpop.f32.mrb[185].mxu0 }
 0xc11   : > { %v4422_v16 = vmax.f32 %v8979_v43, %v8981_v2  ;;  %v8985_v12 = vpop.f32.mrb[186].mxu0 }
 0xc12   : > { %v8987_v4 = vpop.f32.mrb[187].mxu0 }
 0xc13   : > { %v4425_v7 = vmax.f32 %v8985_v12, %v8987_v4  ;;  %4423 = vmax.xlane.f32.xlu0 %v4422_v16 }
 0xc15   : > { %4426 = vmax.xlane.f32.xlu1 %v4425_v7 }
 0xc17   : > { %v8991_v39 = vpop.f32.mrb[188].mxu0 }
 0xc18   : > { %v8993_v14 = vpop.f32.mrb[189].mxu0 }
 0xc19   : > { %v4428_v1 = vmax.f32 %v8991_v39, %v8993_v14  ;;  %v8997_v62 = vpop.f32.mrb[190].mxu0 }
 0xc1a   : > { %v8999_v59 = vpop.f32.mrb[191].mxu0 }
 0xc1b   : > { %v4431_v36 = vmax.f32 %v8997_v62, %v8999_v59  ;;  %4429 = vmax.xlane.f32.xlu0 %v4428_v1 }
 0xc1d   : > { %4432 = vmax.xlane.f32.xlu1 %v4431_v36 }
 0xc1f   : > { %v9003_v33 = vpop.f32.mrb[192].mxu0 }
 0xc20   : > { %v9005_v15 = vpop.f32.mrb[193].mxu0 }
 0xc21   : > { %v4434_v28 = vmax.f32 %v9003_v33, %v9005_v15  ;;  %v9009_v8 = vpop.f32.mrb[194].mxu0 }
 0xc22   : > { %v9011_v53 = vpop.f32.mrb[195].mxu0 }
 0xc23   : > { %v4437_v57 = vmax.f32 %v9009_v8, %v9011_v53  ;;  %4435 = vmax.xlane.f32.xlu0 %v4434_v28 }
 0xc25   : > { %4438 = vmax.xlane.f32.xlu1 %v4437_v57 }
 0xc27   : > { %v9015_v47 = vpop.f32.mrb[196].mxu0 }
 0xc28   : > { %v9017_v25 = vpop.f32.mrb[197].mxu0 }
 0xc29   : > { %v4440_v34 = vmax.f32 %v9015_v47, %v9017_v25  ;;  %v9021_v18 = vpop.f32.mrb[198].mxu0 }
 0xc2a   : > { %v9023_v54 = vpop.f32.mrb[199].mxu0 }
 0xc2b   : > { %v4443_v46 = vmax.f32 %v9021_v18, %v9023_v54  ;;  %4441 = vmax.xlane.f32.xlu0 %v4440_v34 }
 0xc2d   : > { %4444 = vmax.xlane.f32.xlu1 %v4443_v46 }
 0xc2f   : > { %v9027_v49 = vpop.f32.mrb[200].mxu0 }
 0xc30   : > { %v9029_v6 = vpop.f32.mrb[201].mxu0 }
 0xc31   : > { %v4446_v13 = vmax.f32 %v9027_v49, %v9029_v6  ;;  %v9033_v23 = vpop.f32.mrb[202].mxu0 }
 0xc32   : > { %v9035_v29 = vpop.f32.mrb[203].mxu0 }
 0xc33   : > { %v4449_v5 = vmax.f32 %v9033_v23, %v9035_v29 }
 0xc37   : > { %v9039_v56 = vpop.f32.mrb[204].mxu0 }
 0xc38   : > { %v9041_v52 = vpop.f32.mrb[205].mxu0 }
 0xc39   : > { %v4452_v24 = vmax.f32 %v9039_v56, %v9041_v52  ;;  %v9045_v38 = vpop.f32.mrb[206].mxu0 }
 0xc3a   : > { %v9047_v41 = vpop.f32.mrb[207].mxu0 }
 0xc3b   : > { %v4455_v37 = vmax.f32 %v9045_v38, %v9047_v41 }
 0xc3e   : > { %4694 = vrot.lane.b32.xlu1 %v6734_v31, %s6961_s5 }
 0xc41   : > { %4710 = vrot.lane.b32.xlu0 %v6735_v19, %s6961_s5 }
 0xc60   : > { %4447 = vmax.xlane.f32.xlu0 %v4446_v13 }
 0xc62   : > { %4450 = vmax.xlane.f32.xlu1 %v4449_v5 }
 0xc64   : > { %4453 = vmax.xlane.f32.xlu0 %v4452_v24 }
 0xc66   : > { %4456 = vmax.xlane.f32.xlu1 %v4455_v37 }
 0xc90   : > { %v4412_v32 = vpop.xlane.xlu0 %4411 }
 0xc91   : > { %v4458_v60 = vsub.f32 %v8955_v61, %v4412_v32  ;;  %v4459_v45 = vsub.f32 %v8957_v0, %v4412_v32 }
 0xc92   : > { %v4415_v26 = vpop.xlane.xlu1 %4414 }
 0xc93   : > { %v4490_v27 = vmul.f32 1.442695, %v4458_v60  ;;  %v4492_v30 = vmul.f32 1.442695, %v4459_v45  ;;  %v4460_v44 = vsub.f32 %v8961_v22, %v4415_v26  ;;  %v4461_v63 = vsub.f32 %v8963_v55, %v4415_v26 }
 0xc95   : > { %6622 = vpow2.f32 %v4490_v27  ;;  %v4494_v51 = vmul.f32 1.442695, %v4460_v44  ;;  %v4496_v35 = vmul.f32 1.442695, %v4461_v63 }
 0xc96   : > { %6624 = vpow2.f32 %v4492_v30 }
 0xc97   : > { %6626 = vpow2.f32 %v4494_v51 }
 0xc98   : > { %6628 = vpow2.f32 %v4496_v35  ;;  %v4418_v40 = vpop.xlane.xlu0 %4417 }
 0xc99   : > { %v4462_v21 = vsub.f32 %v8967_v58, %v4418_v40  ;;  %v4463_v50 = vsub.f32 %v8969_v10, %v4418_v40 }
 0xc9b   : > { %v4498_v61 = vmul.f32 1.442695, %v4462_v21  ;;  %v4500_v0 = vmul.f32 1.442695, %v4463_v50 }
 0xc9c   : > { %v4421_v20 = vpop.xlane.xlu0 %4420 }
 0xc9d   : > { %6630 = vpow2.f32 %v4498_v61  ;;  %v4464_v48 = vsub.f32 %v8973_v17, %v4421_v20  ;;  %v4465_v22 = vsub.f32 %v8975_v3, %v4421_v20 }
 0xc9e   : > { %6632 = vpow2.f32 %v4500_v0 }
 0xc9f   : > { %v9061_v55 = vpop.eup %6622  ;;  %v4502_v9 = vmul.f32 1.442695, %v4464_v48  ;;  %v4504_v42 = vmul.f32 1.442695, %v4465_v22 }
 0xca0   : > { %v9063_v16 = vpop.eup %6624  ;;  %v4424_v7 = vpop.xlane.xlu0 %4423 }
 0xca1   : > { %v9065_v1 = vpop.eup %6626  ;;  %6634 = vpow2.f32 %v4502_v9  ;;  %v4466_v58 = vsub.f32 %v8979_v43, %v4424_v7  ;;  %v4467_v10 = vsub.f32 %v8981_v2, %v4424_v7  ;;  %v4554_v17 = vadd.f32 %v9063_v16, %v9061_v55 }
 0xca2   : > { %v9071_v36 = vpop.eup %6628  ;;  %6636 = vpow2.f32 %v4504_v42  ;;  %v4427_v3 = vpop.xlane.xlu1 %4426 }
 0xca3   : > { %v4506_v28 = vmul.f32 1.442695, %v4466_v58  ;;  %v4508_v57 = vmul.f32 1.442695, %v4467_v10  ;;  %4555 = vadd.xlane.f32.xlu1 %v4554_v17  ;;  %v4468_v34 = vsub.f32 %v8985_v12, %v4427_v3  ;;  %v4469_v46 = vsub.f32 %v8987_v4, %v4427_v3  ;;  %v6736_v17 = vld [vmem:[#allocation3 + $0x78] sm:$0xff] }
 0xca4   : > { %v4557_v13 = vadd.f32 %v9071_v36, %v9065_v1  ;;  %v6737_v3 = vld [vmem:[#allocation3 + $0xf8] sm:$0xff] }
 0xca5   : > { %6638 = vpow2.f32 %v4506_v28  ;;  %v4510_v43 = vmul.f32 1.442695, %v4468_v34  ;;  %v4512_v2 = vmul.f32 1.442695, %v4469_v46 }
 0xca6   : > { %6640 = vpow2.f32 %v4508_v57  ;;  %4558 = vadd.xlane.f32.xlu0 %v4557_v13 }
 0xca7   : > { %v9077_v5 = vpop.eup %6630  ;;  %6642 = vpow2.f32 %v4510_v43 }
 0xca8   : > { %v9079_v24 = vpop.eup %6632  ;;  %6644 = vpow2.f32 %v4512_v2  ;;  %v4430_v37 = vpop.xlane.xlu0 %4429 }
 0xca9   : > { %v4470_v31 = vsub.f32 %v8991_v39, %v4430_v37  ;;  %v4471_v12 = vsub.f32 %v8993_v14, %v4430_v37  ;;  %v4560_v4 = vadd.f32 %v9079_v24, %v9077_v5 }
 0xcaa   : > { %v4433_v19 = vpop.xlane.xlu1 %4432 }
 0xcab   : > { %v9085_v32 = vpop.eup %6634  ;;  %v4514_v60 = vmul.f32 1.442695, %v4470_v31  ;;  %v4516_v45 = vmul.f32 1.442695, %v4471_v12  ;;  %4561 = vadd.xlane.f32.xlu0 %v4560_v4  ;;  %v4472_v26 = vsub.f32 %v8997_v62, %v4433_v19  ;;  %v4473_v27 = vsub.f32 %v8999_v59, %v4433_v19 }
 0xcac   : > { %v9089_v30 = vpop.eup %6636 }
 0xcad   : > { %6646 = vpow2.f32 %v4514_v60  ;;  %v4518_v44 = vmul.f32 1.442695, %v4472_v26  ;;  %v4520_v39 = vmul.f32 1.442695, %v4473_v27  ;;  %v4563_v14 = vadd.f32 %v9089_v30, %v9085_v32 }
 0xcae   : > { %6648 = vpow2.f32 %v4516_v45 }
 0xcaf   : > { %v9093_v63 = vpop.eup %6638  ;;  %6650 = vpow2.f32 %v4518_v44  ;;  %4564 = vadd.xlane.f32.xlu1 %v4563_v14 }
 0xcb0   : > { %v9095_v51 = vpop.eup %6640  ;;  %6652 = vpow2.f32 %v4520_v39  ;;  %v4436_v40 = vpop.xlane.xlu0 %4435 }
 0xcb1   : > { %v9097_v35 = vpop.eup %6642  ;;  %v4566_v62 = vadd.f32 %v9095_v51, %v9093_v63  ;;  %v4474_v28 = vsub.f32 %v9003_v33, %v4436_v40  ;;  %v4475_v57 = vsub.f32 %v9005_v15, %v4436_v40 }
 0xcb2   : > { %v9101_v59 = vpop.eup %6644  ;;  %v4439_v50 = vpop.xlane.xlu1 %4438 }
 0xcb3   : > { %4567 = vadd.xlane.f32.xlu0 %v4566_v62  ;;  %v4569_v21 = vadd.f32 %v9101_v59, %v9097_v35  ;;  %v4476_v34 = vsub.f32 %v9009_v8, %v4439_v50  ;;  %v4477_v46 = vsub.f32 %v9011_v53, %v4439_v50  ;;  %v4522_v13 = vmul.f32 1.442695, %v4474_v28 }
 0xcb4   : > { %v4524_v2 = vmul.f32 1.442695, %v4475_v57 }
 0xcb5   : > { %4570 = vadd.xlane.f32.xlu1 %v4569_v21  ;;  %v4526_v31 = vmul.f32 1.442695, %v4476_v34  ;;  %v4528_v12 = vmul.f32 1.442695, %v4477_v46  ;;  %6654 = vpow2.f32 %v4522_v13 }
 0xcb6   : > { %6656 = vpow2.f32 %v4524_v2 }
 0xcb7   : > { %v9105_v61 = vpop.eup %6646  ;;  %6658 = vpow2.f32 %v4526_v31 }
 0xcb8   : > { %v9107_v0 = vpop.eup %6648  ;;  %v4442_v20 = vpop.xlane.xlu0 %4441  ;;  %6660 = vpow2.f32 %v4528_v12 }
 0xcb9   : > { %v9109_v48 = vpop.eup %6650  ;;  %v4572_v22 = vadd.f32 %v9107_v0, %v9105_v61  ;;  %v4478_v43 = vsub.f32 %v9015_v47, %v4442_v20  ;;  %v4479_v37 = vsub.f32 %v9017_v25, %v4442_v20 }
 0xcba   : > { %v9113_v9 = vpop.eup %6652  ;;  %v4445_v42 = vpop.xlane.xlu1 %4444 }
 0xcbb   : > { %4573 = vadd.xlane.f32.xlu0 %v4572_v22  ;;  %v4575_v58 = vadd.f32 %v9113_v9, %v9109_v48  ;;  %v4530_v4 = vmul.f32 1.442695, %v4478_v43  ;;  %v4532_v19 = vmul.f32 1.442695, %v4479_v37  ;;  %v4480_v33 = vsub.f32 %v9021_v18, %v4445_v42 }
 0xcbc   : > { %v4711_v7 = vpop.permute.xlu0 %4710  ;;  %v4481_v15 = vsub.f32 %v9023_v54, %v4445_v42 }
 0xcbd   : > { %5805 = vmatprep.subr.bf16.mxu1 %v4711_v7  ;;  %4576 = vadd.xlane.f32.xlu1 %v4575_v58  ;;  %6662 = vpow2.f32 %v4530_v4  ;;  %v4534_v8 = vmul.f32 1.442695, %v4480_v33 }
 0xcbe   : > { %v4695_v10 = vpop.permute.xlu1 %4694  ;;  %6664 = vpow2.f32 %v4532_v19  ;;  %v4536_v53 = vmul.f32 1.442695, %v4481_v15 }
 0xcbf   : > { %5806 = vmatpush3.bf16.msra.mxu1 %v4695_v10  ;;  %6666 = vpow2.f32 %v4534_v8  ;;  %v9127_v47 = vpop.eup %6654 }
 0xcc0   : > { %6668 = vpow2.f32 %v4536_v53  ;;  %v9129_v25 = vpop.eup %6656 }
 0xcc1   : > { %v9131_v60 = vpop.eup %6658  ;;  %v4578_v39 = vadd.f32 %v9129_v25, %v9127_v47 }
 0xcc2   : > { %v9133_v45 = vpop.eup %6660 }
 0xcc3   : > { %v4581_v22 = vadd.f32 %v9133_v45, %v9131_v60 }
 0xcc7   : > { %v9135_v26 = vpop.eup %6662 }
 0xcc8   : > { %v9137_v27 = vpop.eup %6664 }
 0xcc9   : > { %v9149_v42 = vpop.eup %6666 }
 0xcca   : > { %v9152_v10 = vpop.eup %6668 }
 0xcce   : > { %4696 = vrot.lane.b32.xlu1 %v6736_v17, %s6961_s5 }
 0xcd1   : > { %4712 = vrot.lane.b32.xlu0 %v6737_v3, %s6961_s5  ;;  %s6963_s5 = smov [#allocation10]  }
 0xcd2   : > { %s6828_s18 = sshll.u32 %s6963_s5, 4  ;;  %s6829_s18 = int_to_ptr.vmem [resolvable:$false] %s6828_s18 }
 0xcd3   : > { %s6830_s10 = scalar_lea.vmem %s6829_s18, 8192  ;;  %p6831_p9 = scmp.lt.s32.totalorder %s9310_s6, %s6829_s18 }
 0xcd4   : > { %p6832_p11 = scmp.lt.s32.totalorder %s6830_s10, %s6824_s13 }
 0xcd6   : > { %p6833_p5 = por %p6832_p11, %p6831_p9 }
 0xcd8   : > { %p6834_p8 = pnand %p6833_p5, %p6827_p7 }
 0xced   : > { %v4448_v18 = vpop.xlane.xlu0 %4447 }
 0xcee   : > { %v4482_v54 = vsub.f32 %v9027_v49, %v4448_v18  ;;  %v4483_v44 = vsub.f32 %v9029_v6, %v4448_v18  ;;  %v4584_v49 = vadd.f32 %v9137_v27, %v9135_v26 }
 0xcef   : > { %v4451_v14 = vpop.xlane.xlu1 %4450 }
 0xcf0   : > { %v4538_v62 = vmul.f32 1.442695, %v4482_v54  ;;  %v4540_v40 = vmul.f32 1.442695, %v4483_v44  ;;  %4579 = vadd.xlane.f32.xlu0 %v4578_v39  ;;  %v4484_v21 = vsub.f32 %v9033_v23, %v4451_v14  ;;  %v4485_v50 = vsub.f32 %v9035_v29, %v4451_v14 }
 0xcf1   : > { %v4454_v20 = vpop.xlane.xlu0 %4453 }
 0xcf2   : > { %6670 = vpow2.f32 %v4538_v62  ;;  %v4542_v6 = vmul.f32 1.442695, %v4484_v21  ;;  %v4544_v7 = vmul.f32 1.442695, %v4485_v50  ;;  %v4486_v58 = vsub.f32 %v9039_v56, %v4454_v20  ;;  %4582 = vadd.xlane.f32.xlu1 %v4581_v22 }
 0xcf3   : > { %6672 = vpow2.f32 %v4540_v40  ;;  %v4487_v23 = vsub.f32 %v9041_v52, %v4454_v20  ;;  %v4457_v29 = vpop.xlane.xlu1 %4456  ;;  %v4587_v56 = vadd.f32 %v9152_v10, %v9149_v42 }
 0xcf4   : > { %6674 = vpow2.f32 %v4542_v6  ;;  %v4546_v17 = vmul.f32 1.442695, %v4486_v58  ;;  %4585 = vadd.xlane.f32.xlu0 %v4584_v49  ;;  %v4488_v3 = vsub.f32 %v9045_v38, %v4457_v29  ;;  %v4489_v28 = vsub.f32 %v9047_v41, %v4457_v29 }
 0xcf5   : > { %6676 = vpow2.f32 %v4544_v7  ;;  %v4548_v57 = vmul.f32 1.442695, %v4487_v23 }
 0xcf6   : > { %6678 = vpow2.f32 %v4546_v17  ;;  %v4550_v34 = vmul.f32 1.442695, %v4488_v3  ;;  %v4552_v46 = vmul.f32 1.442695, %v4489_v28  ;;  %v6322_v17 = vld [vmem:[#allocation9 + $0xc0] ss:$8 sps:$4 sm:$0xff]  }
 0xcf7   : > { %6680 = vpow2.f32 %v4548_v57  ;;  %v6327_v28 = vld [vmem:[#allocation9 + $0xd4] ss:$8 sps:$4 sm:$0xff]  }
 0xcf8   : > { %6682 = vpow2.f32 %v4550_v34  ;;  %4588 = vadd.xlane.f32.xlu0 %v4587_v56 }
 0xcf9   : > { %6684 = vpow2.f32 %v4552_v46 }
 0xcfc   : > { %v9159_v52 = vpop.eup %6670 }
 0xcfd   : > { %v9161_v13 = vpop.eup %6672 }
 0xcfe   : > { %v9163_v43 = vpop.eup %6674  ;;  %v4590_v38 = vadd.f32 %v9161_v13, %v9159_v52 }
 0xcff   : > { %v9167_v41 = vpop.eup %6676 }
 0xd00   : > { %v9169_v2 = vpop.eup %6678  ;;  %4591 = vadd.xlane.f32.xlu0 %v4590_v38  ;;  %v4593_v37 = vadd.f32 %v9167_v41, %v9163_v43 }
 0xd01   : > { %v9173_v31 = vpop.eup %6680 }
 0xd02   : > { %v9175_v12 = vpop.eup %6682  ;;  %4594 = vadd.xlane.f32.xlu1 %v4593_v37  ;;  %v4596_v4 = vadd.f32 %v9173_v31, %v9169_v2 }
 0xd03   : > { %v9179_v19 = vpop.eup %6684 }
 0xd04   : > { %4597 = vadd.xlane.f32.xlu0 %v4596_v4  ;;  %v4599_v33 = vadd.f32 %v9179_v19, %v9175_v12 }
 0xd06   : > { %4600 = vadd.xlane.f32.xlu1 %v4599_v33 }
 0xd30   : > { %v4556_v15 = vpop.xlane.xlu1 %4555 }
 0xd31   : > { %6686 = vrcp.f32 %v4556_v15 }
 0xd33   : > { %v4559_v8 = vpop.xlane.xlu0 %4558 }
 0xd34   : > { %6688 = vrcp.f32 %v4559_v8 }
 0xd38   : > { %v4562_v14 = vpop.xlane.xlu0 %4561 }
 0xd3b   : > { %v6687_v53 = vpop.eup %6686 }
 0xd3c   : > { %v4565_v54 = vpop.xlane.xlu1 %4564  ;;  %v4619_v44 = vmul.f32 %v6687_v53, %v9063_v16  ;;  %v6324_v16 = vld [vmem:[#allocation9 + $0xc4] ss:$8 sps:$4 sm:$0xff]   ;;  %v4618_v58 = vmul.f32 %v6687_v53, %v9061_v55 }
 0xd3d   : > { %6690 = vrcp.f32 %v4565_v54 }
 0xd3e   : > { %v6689_v18 = vpop.eup %6688  ;;  %6692 = vrcp.f32 %v4562_v14 }
 0xd3f   : > { %v4621_v39 = vmul.f32 %v6689_v18, %v9071_v36  ;;  %v4620_v7 = vmul.f32 %v6689_v18, %v9065_v1  ;;  %v6325_v1 = vld [vmem:[#allocation9 + $0xd0] ss:$8 sps:$4 sm:$0xff]  }
 0xd40   : > { %v4568_v40 = vpop.xlane.xlu0 %4567 }
 0xd41   : > { %v4651_v62 = vpack.c.bf16 %v4621_v39, %v4619_v44  ;;  %v4650_v3 = vpack.c.bf16 %v4620_v7, %v4618_v58 }
 0xd42   : > { %v4571_v21 = vpop.xlane.xlu1 %4570 }
 0xd43   : > { %4762 = vmatprep.mubr.bf16.mxu1 %v4651_v62  ;;  %6694 = vrcp.f32 %v4571_v21 }
 0xd44   : > { %6696 = vrcp.f32 %v4568_v40 }
 0xd47   : > { %v6691_v20 = vpop.eup %6690 }
 0xd48   : > { %v4574_v50 = vpop.xlane.xlu0 %4573  ;;  %v6693_v6 = vpop.eup %6692  ;;  %v4625_v36 = vmul.f32 %v6691_v20, %v9089_v30  ;;  %v4624_v30 = vmul.f32 %v6691_v20, %v9085_v32 }
 0xd49   : > { %v4623_v29 = vmul.f32 %v6693_v6, %v9079_v24  ;;  %v4622_v24 = vmul.f32 %v6693_v6, %v9077_v5 }
 0xd4a   : > { %v4577_v22 = vpop.xlane.xlu1 %4576 }
 0xd4b   : > { %6698 = vrcp.f32 %v4577_v22  ;;  %v4653_v57 = vpack.c.bf16 %v4625_v36, %v4623_v29  ;;  %v4652_v38 = vpack.c.bf16 %v4624_v30, %v4622_v24  ;;  %v6333_v30 = vld [vmem:[#allocation9 + $0xf4] ss:$8 sps:$4 sm:$0xff]  }
 0xd4c   : > { %v4713_v49 = vpop.permute.xlu0 %4712  ;;  %6700 = vrcp.f32 %v4574_v50 }
 0xd4d   : > { %5807 = vmatprep.subr.bf16.mxu1 %v4713_v49  ;;  %v6695_v34 = vpop.eup %6694 }
 0xd4e   : > { %v4697_v23 = vpop.permute.xlu1 %4696  ;;  %v6697_v46 = vpop.eup %6696  ;;  %v4629_v55 = vmul.f32 %v6695_v34, %v9101_v59  ;;  %v4628_v15 = vmul.f32 %v6695_v34, %v9097_v35 }
 0xd4f   : > { %5808 = vmatpush3.bf16.msra.mxu1 %v4697_v23  ;;  %v4627_v56 = vmul.f32 %v6697_v46, %v9095_v51  ;;  %v4626_v32 = vmul.f32 %v6697_v46, %v9093_v63  ;;  %v6330_v46 = vld [vmem:[#allocation9 + $0xe4] ss:$8 sps:$4 sm:$0xff]  }
 0xd50   : > { %4907 = vmatprep.subr.bf16.mxu1 %v6324_v16 }
 0xd51   : > { %v4655_v37 = vpack.c.bf16 %v4629_v55, %v4627_v56  ;;  %v4654_v59 = vpack.c.bf16 %v4628_v15, %v4626_v32  ;;  %v6331_v55 = vld [vmem:[#allocation9 + $0xf0] ss:$8 sps:$4 sm:$0xff]  }
 0xd52   : > { %4763 = vmatmul.mubr.bf16.vlgmr.msra.gmra.mrb[80].mxu1 %v4650_v3 }
 0xd53   : > { %4770 = vmatprep.mubr.bf16.mxu1 %v4653_v57  ;;  %4908 = vmatpush1.bf16.msra.mxu1 %v6322_v17 }
 0xd54   : > { %4909 = vmatprep.subr.bf16.mxu1 %v6327_v28 }
 0xd55   : > { %v6699_v4 = vpop.eup %6698 }
 0xd56   : > { %v6701_v33 = vpop.eup %6700  ;;  %v4633_v8 = vmul.f32 %v6699_v4, %v9113_v9  ;;  %v4632_v5 = vmul.f32 %v6699_v4, %v9109_v48 }
 0xd57   : > { %4910 = vmatpush1.bf16.msra.mxu1 %v6325_v1  ;;  %v4631_v53 = vmul.f32 %v6701_v33, %v9107_v0  ;;  %v4630_v51 = vmul.f32 %v6701_v33, %v9105_v61 }
 0xd58   : > { %4911 = vmatprep.subr.bf16.mxu1 %v6330_v46  ;;  %v9506_v46 = vld [vmem:[#allocation19_spill] sm:$0xff] }
 0xd59   : > { %v4657_v18 = vpack.c.bf16 %v4633_v8, %v4631_v53  ;;  %v4656_v54 = vpack.c.bf16 %v4632_v5, %v4630_v51 }
 0xd5a   : > { %4771 = vmatmul.mubr.bf16.gmra.mrb[84].mxu1 %v4652_v38 }
 0xd5b   : > { %4778 = vmatprep.mubr.bf16.mxu1 %v4655_v37 }
 0xd62   : > { %4779 = vmatmul.mubr.bf16.gmra.mrb[88].mxu1 %v4654_v59 }
 0xd63   : > { %4786 = vmatprep.mubr.bf16.mxu1 %v4657_v18 }
 0xd6a   : > { %4787 = vmatmul.mubr.bf16.gmra.mrb[92].mxu1 %v4656_v54 }
 0xd7d   : > { %v4580_v44 = vpop.xlane.xlu0 %4579 }
 0xd7e   : > { %6702 = vrcp.f32 %v4580_v44 }
 0xd7f   : > { %v4583_v39 = vpop.xlane.xlu1 %4582 }
 0xd80   : > { %6704 = vrcp.f32 %v4583_v39 }
 0xd81   : > { %v4586_v35 = vpop.xlane.xlu0 %4585 }
 0xd82   : > { %6706 = vrcp.f32 %v4586_v35 }
 0xd85   : > { %v4589_v9 = vpop.xlane.xlu0 %4588 }
 0xd86   : > { %6708 = vrcp.f32 %v4589_v9 }
 0xd88   : > { %v6703_v63 = vpop.eup %6702 }
 0xd89   : > { %v4635_v14 = vmul.f32 %v6703_v63, %v9129_v25  ;;  %v4634_v48 = vmul.f32 %v6703_v63, %v9127_v47 }
 0xd8a   : > { %v6705_v0 = vpop.eup %6704 }
 0xd8b   : > { %v4637_v62 = vmul.f32 %v6705_v0, %v9133_v45  ;;  %v4636_v61 = vmul.f32 %v6705_v0, %v9131_v60 }
 0xd8c   : > { %v6707_v21 = vpop.eup %6706 }
 0xd8d   : > { %v4592_v40 = vpop.xlane.xlu0 %4591  ;;  %v4659_v50 = vpack.c.bf16 %v4637_v62, %v4635_v14  ;;  %v4658_v20 = vpack.c.bf16 %v4636_v61, %v4634_v48  ;;  %v4639_v7 = vmul.f32 %v6707_v21, %v9137_v27  ;;  %v4638_v16 = vmul.f32 %v6707_v21, %v9135_v26 }
 0xd8e   : > { %6710 = vrcp.f32 %v4592_v40 }
 0xd8f   : > { %v4595_v22 = vpop.xlane.xlu1 %4594  ;;  %4794 = vmatprep.mubr.bf16.mxu1 %v4659_v50 }
 0xd90   : > { %v6709_v49 = vpop.eup %6708  ;;  %6712 = vrcp.f32 %v4595_v22  ;;  %4795 = vmatmul.mubr.bf16.gmra.mrb[96].mxu1 %v4658_v20 }
 0xd91   : > { %v4598_v6 = vpop.xlane.xlu0 %4597  ;;  %v4641_v25 = vmul.f32 %v6709_v49, %v9152_v10  ;;  %v4640_v60 = vmul.f32 %v6709_v49, %v9149_v42 }
 0xd92   : > { %6714 = vrcp.f32 %v4598_v6 }
 0xd93   : > { %v4601_v45 = vpop.xlane.xlu1 %4600  ;;  %v4661_v47 = vpack.c.bf16 %v4641_v25, %v4639_v7  ;;  %v4660_v36 = vpack.c.bf16 %v4640_v60, %v4638_v16 }
 0xd94   : > { %6716 = vrcp.f32 %v4601_v45 }
 0xd95   : > { %4802 = vmatprep.mubr.bf16.mxu1 %v4661_v47 }
 0xd98   : > { %v6711_v58 = vpop.eup %6710  ;;  %4803 = vmatmul.mubr.bf16.gmra.mrb[100].mxu1 %v4660_v36 }
 0xd99   : > { %v4643_v29 = vmul.f32 %v6711_v58, %v9161_v13  ;;  %v4642_v27 = vmul.f32 %v6711_v58, %v9159_v52  ;;  %v6328_v52 = vld [vmem:[#allocation9 + $0xe0] ss:$8 sps:$4 sm:$0xff]  }
 0xd9a   : > { %v6713_v23 = vpop.eup %6712  ;;  %4912 = vmatpush1.bf16.msra.mxu1 %v6328_v52 }
 0xd9b   : > { %v4645_v17 = vmul.f32 %v6713_v23, %v9167_v41  ;;  %v4644_v10 = vmul.f32 %v6713_v23, %v9163_v43  ;;  %4913 = vmatprep.subr.bf16.mxu1 %v6333_v30 }
 0xd9c   : > { %v6715_v3 = vpop.eup %6714 }
 0xd9d   : > { %v4663_v28 = vpack.c.bf16 %v4645_v17, %v4643_v29  ;;  %v4662_v57 = vpack.c.bf16 %v4644_v10, %v4642_v27  ;;  %v4647_v34 = vmul.f32 %v6715_v3, %v9173_v31  ;;  %v4646_v41 = vmul.f32 %v6715_v3, %v9169_v2 }
 0xd9e   : > { %v6717_v42 = vpop.eup %6716  ;;  %4914 = vmatpush1.bf16.msra.mxu1 %v6331_v55 }
 0xd9f   : > { %4810 = vmatprep.mubr.bf16.mxu1 %v4663_v28  ;;  %v4649_v26 = vmul.f32 %v6717_v42, %v9179_v19  ;;  %v4648_v13 = vmul.f32 %v6717_v42, %v9175_v12 }
 0xda0   : > { %4811 = vmatmul.mubr.bf16.gmra.mrb[104].mxu1 %v4662_v57 }
 0xda1   : > { %v4665_v1 = vpack.c.bf16 %v4649_v26, %v4647_v34  ;;  %v4664_v43 = vpack.c.bf16 %v4648_v13, %v4646_v41  ;;  %v5052_v13 = vld [vmem:[%s9383_s4] sm:$0x3]  ;;  %v9507_v41 = vsub.s32 0, %v9506_v46 }
 0xda3   : > { %4818 = vmatprep.mubr.bf16.mxu1 %v4665_v1  ;;  %v9236_v52 = vrot.slane %v5052_v13, %v9507_v41 }
 0xda8   : > { %4819 = vmatmul.mubr.bf16.gmra.mrb[108].mxu1 %v4664_v43 }
 0xda9   : > { %4939 = vmatprep.mubr.bf16.mxu1 %v9505_v11 }
 0xe25   : > { %v5809_v31 = vpop.f32.mrb[80].mxu1 }
 0xe26   : > { %v5810_v19 = vpop.f32.mrb[81].mxu1 }
 0xe27   : > { %v5811_v24 = vadd.f32 %v5810_v19, %v5809_v31  ;;  %v5812_v56 = vpop.f32.mrb[82].mxu1 }
 0xe28   : > { %v5813_v38 = vpop.f32.mrb[83].mxu1 }
 0xe29   : > { %v5814_v12 = vadd.f32 %v5813_v38, %v5812_v56 }
 0xe2b   : > { %v4827_v37 = vpack.c.bf16 %v5814_v12, %v5811_v24 }
 0xe2d   : > { %v5815_v4 = vpop.f32.mrb[84].mxu1  ;;  %5455 = vmatmul.mubr.msk.bf16.vlgmr.msra.gmra.mrb[48].mxu1 %vm1759_vm0, %v4827_v37 }
 0xe2e   : > { %v5816_v2 = vpop.f32.mrb[85].mxu1  ;;  %4949 = vmatprep.mubr.bf16.mxu1 %v9505_v11 }
 0xe2f   : > { %v5817_v33 = vadd.f32 %v5816_v2, %v5815_v4  ;;  %v5818_v15 = vpop.f32.mrb[86].mxu1 }
 0xe30   : > { %v5819_v8 = vpop.f32.mrb[87].mxu1 }
 0xe31   : > { %v5820_v32 = vadd.f32 %v5819_v8, %v5818_v15 }
 0xe33   : > { %v4828_v53 = vpack.c.bf16 %v5820_v32, %v5817_v33 }
 0xe35   : > { %v5821_v59 = vpop.f32.mrb[88].mxu1  ;;  %5456 = vmatmul.mubr.msk.bf16.gmra.mrb[52].mxu1 %vm1759_vm0, %v4828_v53 }
 0xe36   : > { %v5822_v18 = vpop.f32.mrb[89].mxu1  ;;  %4959 = vmatprep.mubr.bf16.mxu1 %v9505_v11 }
 0xe37   : > { %v5823_v5 = vadd.f32 %v5822_v18, %v5821_v59  ;;  %v5824_v51 = vpop.f32.mrb[90].mxu1 }
 0xe38   : > { %v5825_v54 = vpop.f32.mrb[91].mxu1 }
 0xe39   : > { %v5826_v44 = vadd.f32 %v5825_v54, %v5824_v51 }
 0xe3b   : > { %v4829_v39 = vpack.c.bf16 %v5826_v44, %v5823_v5 }
 0xe3d   : > { %v5827_v35 = vpop.f32.mrb[92].mxu1  ;;  %5457 = vmatmul.mubr.msk.bf16.gmra.mrb[56].mxu1 %vm1759_vm0, %v4829_v39 }
 0xe3e   : > { %v5828_v9 = vpop.f32.mrb[93].mxu1  ;;  %4969 = vmatprep.mubr.bf16.mxu1 %v9505_v11 }
 0xe3f   : > { %v5829_v63 = vadd.f32 %v5828_v9, %v5827_v35  ;;  %v5830_v0 = vpop.f32.mrb[94].mxu1 }
 0xe40   : > { %v5831_v14 = vpop.f32.mrb[95].mxu1 }
 0xe41   : > { %v5832_v62 = vadd.f32 %v5831_v14, %v5830_v0 }
 0xe43   : > { %v4830_v48 = vpack.c.bf16 %v5832_v62, %v5829_v63 }
 0xe45   : > { %5458 = vmatmul.mubr.msk.bf16.gmra.mrb[60].mxu1 %vm1759_vm0, %v4830_v48 }
 0xe46   : > { %4979 = vmatprep.mubr.bf16.mxu1 %v9505_v11 }
 0xe63   : > { %v5833_v61 = vpop.f32.mrb[96].mxu1 }
 0xe64   : > { %v5834_v40 = vpop.f32.mrb[97].mxu1 }
 0xe65   : > { %v5835_v21 = vadd.f32 %v5834_v40, %v5833_v61  ;;  %v5836_v50 = vpop.f32.mrb[98].mxu1 }
 0xe66   : > { %v5837_v20 = vpop.f32.mrb[99].mxu1 }
 0xe67   : > { %v5838_v22 = vadd.f32 %v5837_v20, %v5836_v50 }
 0xe69   : > { %v4831_v49 = vpack.c.bf16 %v5838_v22, %v5835_v21 }
 0xe6b   : > { %v5839_v6 = vpop.f32.mrb[100].mxu1  ;;  %5459 = vmatmul.mubr.msk.bf16.gmra.mrb[64].mxu1 %vm1759_vm0, %v4831_v49 }
 0xe6c   : > { %v5840_v7 = vpop.f32.mrb[101].mxu1  ;;  %4989 = vmatprep.mubr.bf16.mxu1 %v9505_v11 }
 0xe6d   : > { %v5841_v25 = vadd.f32 %v5840_v7, %v5839_v6  ;;  %v5842_v45 = vpop.f32.mrb[102].mxu1 }
 0xe6e   : > { %v5843_v47 = vpop.f32.mrb[103].mxu1 }
 0xe6f   : > { %v5844_v60 = vadd.f32 %v5843_v47, %v5842_v45 }
 0xe71   : > { %v4832_v16 = vpack.c.bf16 %v5844_v60, %v5841_v25 }
 0xe73   : > { %v5845_v36 = vpop.f32.mrb[104].mxu1  ;;  %5460 = vmatmul.mubr.msk.bf16.gmra.mrb[68].mxu1 %vm1759_vm0, %v4832_v16 }
 0xe74   : > { %v5846_v58 = vpop.f32.mrb[105].mxu1  ;;  %4999 = vmatprep.mubr.bf16.mxu1 %v9505_v11 }
 0xe75   : > { %v5847_v23 = vadd.f32 %v5846_v58, %v5845_v36  ;;  %v5848_v29 = vpop.f32.mrb[106].mxu1 }
 0xe76   : > { %v5849_v17 = vpop.f32.mrb[107].mxu1 }
 0xe77   : > { %v5850_v27 = vadd.f32 %v5849_v17, %v5848_v29 }
 0xe79   : > { %v4833_v10 = vpack.c.bf16 %v5850_v27, %v5847_v23 }
 0xe7b   : > { %v5851_v3 = vpop.f32.mrb[108].mxu1  ;;  %5461 = vmatmul.mubr.msk.bf16.gmra.mrb[72].mxu1 %vm1759_vm0, %v4833_v10 }
 0xe7c   : > { %v5852_v28 = vpop.f32.mrb[109].mxu1  ;;  %5009 = vmatprep.mubr.bf16.mxu1 %v9505_v11  ;;  %v9508_v11 = vsub.s32 1, %v9506_v46 }
 0xe7d   : > { %v5853_v57 = vadd.f32 %v5852_v28, %v5851_v3  ;;  %v5854_v42 = vpop.f32.mrb[110].mxu1 }
 0xe7e   : > { %v5855_v34 = vpop.f32.mrb[111].mxu1  ;;  %v9240_v43 = vrot.slane %v5052_v13, %v9508_v11 }
 0xe7f   : > { %v5856_v26 = vadd.f32 %v5855_v34, %v5854_v42 }
 0xe81   : > { %v4834_v1 = vpack.c.bf16 %v5856_v26, %v5853_v57 }
 0xe83   : > { %5462 = vmatmul.mubr.msk.bf16.gmra.mrb[76].mxu1 %vm1759_vm0, %v4834_v1 }
 0xf00   : > { %v4941_v30 = vpop.f32.mrb[48].mxu1 }
 0xf01   : > { %v5064_v55 = vadd.f32 %v9236_v52, %v4941_v30  ;;  %v4943_v31 = vpop.f32.mrb[49].mxu1 }
 0xf02   : > { %v5065_v19 = vadd.f32 %v9240_v43, %v4943_v31  ;;  %v4945_v24 = vpop.f32.mrb[50].mxu1 }
 0xf03   : > { %5096 = vst [vmem:[%s7227_s9] sm:$0xff] %v5064_v55  ;;  %v5066_v56 = vadd.f32 %v9236_v52, %v4945_v24  ;;  %v4947_v38 = vpop.f32.mrb[51].mxu1 }
 0xf04   : > { %5097 = vst [vmem:[%s7227_s9 + $0x8] sm:$0xff] %v5065_v19  ;;  %v5067_v12 = vadd.f32 %v9240_v43, %v4947_v38 }
 0xf05   : > { %5098 = vst [vmem:[%s7227_s9 + $0x10] sm:$0xff] %v5066_v56 }
 0xf06   : > { %5099 = vst [vmem:[%s7227_s9 + $0x18] sm:$0xff] %v5067_v12 }
 0xf08   : > { %v4951_v37 = vpop.f32.mrb[52].mxu1 }
 0xf09   : > { %v5068_v4 = vadd.f32 %v9236_v52, %v4951_v37  ;;  %v4953_v2 = vpop.f32.mrb[53].mxu1 }
 0xf0a   : > { %v5069_v33 = vadd.f32 %v9240_v43, %v4953_v2  ;;  %v4955_v15 = vpop.f32.mrb[54].mxu1 }
 0xf0b   : > { %5100 = vst [vmem:[%s7227_s9 + $0x20] sm:$0xff] %v5068_v4  ;;  %v5070_v8 = vadd.f32 %v9236_v52, %v4955_v15  ;;  %v4957_v32 = vpop.f32.mrb[55].mxu1 }
 0xf0c   : > { %5101 = vst [vmem:[%s7227_s9 + $0x28] sm:$0xff] %v5069_v33  ;;  %v5071_v53 = vadd.f32 %v9240_v43, %v4957_v32 }
 0xf0d   : > { %5102 = vst [vmem:[%s7227_s9 + $0x30] sm:$0xff] %v5070_v8 }
 0xf0e   : > { %5103 = vst [vmem:[%s7227_s9 + $0x38] sm:$0xff] %v5071_v53 }
 0xf10   : > { %v4961_v59 = vpop.f32.mrb[56].mxu1 }
 0xf11   : > { %v5072_v18 = vadd.f32 %v9236_v52, %v4961_v59  ;;  %v4963_v5 = vpop.f32.mrb[57].mxu1 }
 0xf12   : > { %v5073_v51 = vadd.f32 %v9240_v43, %v4963_v5  ;;  %v4965_v54 = vpop.f32.mrb[58].mxu1 }
 0xf13   : > { %5104 = vst [vmem:[%s7227_s9 + $0x40] sm:$0xff] %v5072_v18  ;;  %v5074_v44 = vadd.f32 %v9236_v52, %v4965_v54  ;;  %v4967_v39 = vpop.f32.mrb[59].mxu1 }
 0xf14   : > { %5105 = vst [vmem:[%s7227_s9 + $0x48] sm:$0xff] %v5073_v51  ;;  %v5075_v35 = vadd.f32 %v9240_v43, %v4967_v39 }
 0xf15   : > { %5106 = vst [vmem:[%s7227_s9 + $0x50] sm:$0xff] %v5074_v44 }
 0xf16   : > { %5107 = vst [vmem:[%s7227_s9 + $0x58] sm:$0xff] %v5075_v35 }
 0xf18   : > { %v4971_v9 = vpop.f32.mrb[60].mxu1 }
 0xf19   : > { %v5076_v63 = vadd.f32 %v9236_v52, %v4971_v9  ;;  %v4973_v0 = vpop.f32.mrb[61].mxu1 }
 0xf1a   : > { %v5077_v14 = vadd.f32 %v9240_v43, %v4973_v0  ;;  %v4975_v62 = vpop.f32.mrb[62].mxu1 }
 0xf1b   : > { %5108 = vst [vmem:[%s7227_s9 + $0x60] sm:$0xff] %v5076_v63  ;;  %v5078_v48 = vadd.f32 %v9236_v52, %v4975_v62  ;;  %v4977_v61 = vpop.f32.mrb[63].mxu1 }
 0xf1c   : > { %5109 = vst [vmem:[%s7227_s9 + $0x68] sm:$0xff] %v5077_v14  ;;  %v5079_v40 = vadd.f32 %v9240_v43, %v4977_v61 }
 0xf1d   : > { %5110 = vst [vmem:[%s7227_s9 + $0x70] sm:$0xff] %v5078_v48 }
 0xf1e   : > { %5111 = vst [vmem:[%s7227_s9 + $0x78] sm:$0xff] %v5079_v40 }
 0xf3e   : > { %v4981_v21 = vpop.f32.mrb[64].mxu1 }
 0xf3f   : > { %v5080_v50 = vadd.f32 %v9236_v52, %v4981_v21  ;;  %v4983_v20 = vpop.f32.mrb[65].mxu1 }
 0xf40   : > { %v5081_v22 = vadd.f32 %v9240_v43, %v4983_v20  ;;  %v4985_v49 = vpop.f32.mrb[66].mxu1 }
 0xf41   : > { %5112 = vst [vmem:[%s7227_s9 + $0x80] sm:$0xff] %v5080_v50  ;;  %v5082_v6 = vadd.f32 %v9236_v52, %v4985_v49  ;;  %v4987_v7 = vpop.f32.mrb[67].mxu1 }
 0xf42   : > { %5113 = vst [vmem:[%s7227_s9 + $0x88] sm:$0xff] %v5081_v22  ;;  %v5083_v25 = vadd.f32 %v9240_v43, %v4987_v7 }
 0xf43   : > { %5114 = vst [vmem:[%s7227_s9 + $0x90] sm:$0xff] %v5082_v6 }
 0xf44   : > { %5115 = vst [vmem:[%s7227_s9 + $0x98] sm:$0xff] %v5083_v25 }
 0xf46   : > { %v4991_v45 = vpop.f32.mrb[68].mxu1 }
 0xf47   : > { %v5084_v47 = vadd.f32 %v9236_v52, %v4991_v45  ;;  %v4993_v60 = vpop.f32.mrb[69].mxu1 }
 0xf48   : > { %v5085_v16 = vadd.f32 %v9240_v43, %v4993_v60  ;;  %v4995_v36 = vpop.f32.mrb[70].mxu1 }
 0xf49   : > { %5116 = vst [vmem:[%s7227_s9 + $0xa0] sm:$0xff] %v5084_v47  ;;  %v5086_v58 = vadd.f32 %v9236_v52, %v4995_v36  ;;  %v4997_v23 = vpop.f32.mrb[71].mxu1 }
 0xf4a   : > { %5117 = vst [vmem:[%s7227_s9 + $0xa8] sm:$0xff] %v5085_v16  ;;  %v5087_v29 = vadd.f32 %v9240_v43, %v4997_v23 }
 0xf4b   : > { %5118 = vst [vmem:[%s7227_s9 + $0xb0] sm:$0xff] %v5086_v58 }
 0xf4c   : > { %5119 = vst [vmem:[%s7227_s9 + $0xb8] sm:$0xff] %v5087_v29 }
 0xf4e   : > { %v5001_v17 = vpop.f32.mrb[72].mxu1 }
 0xf4f   : > { %v5088_v27 = vadd.f32 %v9236_v52, %v5001_v17  ;;  %v5003_v10 = vpop.f32.mrb[73].mxu1 }
 0xf50   : > { %v5089_v3 = vadd.f32 %v9240_v43, %v5003_v10  ;;  %v5005_v28 = vpop.f32.mrb[74].mxu1 }
 0xf51   : > { %5120 = vst [vmem:[%s7227_s9 + $0xc0] sm:$0xff] %v5088_v27  ;;  %v5090_v57 = vadd.f32 %v9236_v52, %v5005_v28  ;;  %v5007_v42 = vpop.f32.mrb[75].mxu1 }
 0xf52   : > { %5121 = vst [vmem:[%s7227_s9 + $0xc8] sm:$0xff] %v5089_v3  ;;  %v5091_v34 = vadd.f32 %v9240_v43, %v5007_v42 }
 0xf53   : > { %5122 = vst [vmem:[%s7227_s9 + $0xd0] sm:$0xff] %v5090_v57 }
 0xf54   : > { %5123 = vst [vmem:[%s7227_s9 + $0xd8] sm:$0xff] %v5091_v34 }
 0xf56   : > { %v5011_v26 = vpop.f32.mrb[76].mxu1 }
 0xf57   : > { %v5092_v1 = vadd.f32 %v9236_v52, %v5011_v26  ;;  %v5013_v13 = vpop.f32.mrb[77].mxu1 }
 0xf58   : > { %v5093_v46 = vadd.f32 %v9240_v43, %v5013_v13  ;;  %v5015_v41 = vpop.f32.mrb[78].mxu1 }
 0xf59   : > { %5124 = vst [vmem:[%s7227_s9 + $0xe0] sm:$0xff] %v5092_v1  ;;  %v5094_v11 = vadd.f32 %v9236_v52, %v5015_v41  ;;  %v5017_v30 = vpop.f32.mrb[79].mxu1 }
 0xf5a   : > { %5125 = vst [vmem:[%s7227_s9 + $0xe8] sm:$0xff] %v5093_v46  ;;  %v5095_v55 = vadd.f32 %v9240_v43, %v5017_v30 }
 0xf5b   : > { %5126 = vst [vmem:[%s7227_s9 + $0xf0] sm:$0xff] %v5094_v11 }
 0xf5c   : > { %5127 = vst [vmem:[%s7227_s9 + $0xf8] sm:$0xff] %v5095_v55 }
 0xf5d   : > { %6837 = shalt.err (!%p6834_p8)
}
 0xf5e   : > { %s6838_s26 = scalar_lea.hbm %s9308_s30, 4096  ;;  %s6842_s21 = scalar_lea.hbm %s9510_s29, 16384 }
 0xf5f   : > { %p6839_p12 = scmp.ne.s32.totalorder %s9308_s30, %s6838_s26  ;;  %p6843_p10 = scmp.lt.u32.totalorder %s9308_s30, %s9510_s29 }
 0xf60   : > { %p6844_p0 = scmp.lt.u32.totalorder %s6842_s21, %s6838_s26  ;;  %p6846_p1 = scmp.lt.u32.totalorder %s6838_s26, %s9308_s30 }
 0xf61   : > { %p6840_p2 = pnand %p6839_p12, %p9511_p3 }
 0xf62   : > { %p6845_p4 = por %p6844_p0, %p6843_p10 }
 0xf63   : > { %p6841_p6 = pneg %p6840_p2 }
 0xf64   : > { %p6847_p13 = por %p6846_p1, %p6845_p4 }
 0xf66   : > { %p6848_p7 = pnand %p6847_p13, %p6841_p6 }
 0xf68   : > { %6851 = shalt.err (!%p6848_p7)
}
 0xf69   : > { %s6964_s15 = smov 256   ;;  %s6965_s11 = smov 16  }
 0xf6a   : > { %6019 = dma.vmem_to_hbm [thread:$0]  (%p9511_p3), %s9310_s6, 4096, %s9308_s30, %s9318_s16, %s6964_s15, %s6964_s15, %s6965_s11  }
 0xf6b PF: > { %s9512_s25 = sld [smem:[#allocation14_spill]]  ;;  %s9513_s8 = sld [smem:[#allocation17_spill]] }
 0xf6c   : > { %p6041_p9 = scmp.ge.s32.totalorder %s6950_s28, 2 }
 0xf71   : > { %s5160_s13 = sand.u32 1, %s9512_s25   ;;  %p9514_p11 = scmp.ne.s32.totalorder %s9513_s8, 0 }
 0xf72   : > { %s5161_s5 = scalar_lea.sflag [#allocation6], %s5160_s13 }
 0xf73   : > { %p6033_p5 = pnand %p6041_p9, %p9514_p11 }
 0xf75   : > { %6905 = dma.done.wait (!%p6033_p5), %s5161_s5, 4096  }
 0xf76   : > { %6907 = vsyncadd (!%p6033_p5), %s5161_s5, 4294963200  ;;  %s22_s28 = sadd.s32 1, %s6950_s28   ;;  %s9515_s24 = sld [smem:[#allocation15_spill]] }
 0xf77   : > { %p19_p8 = scmp.ge.s32.totalorder %s22_s28, 6   ;;  %s9516_s26 = sld [smem:[#allocation18_spill]] }
 0xf78   : > { %s9517_s18 = smov %s6914_s19  ;;  %s9518_s19 = smov %s6918_s20 }
 0xf79   : > { %s9519_s20 = smov %s7171_s3  ;;  %s9520_s21 = smov %s6926_s22 }
 0xf7a   : > { %s9521_s22 = smov %s6930_s23  ;;  %s9522_s23 = smov %s7166_s17 }
 0xf7b   : > { %s9523_s25 = smov %s6946_s27  ;;  %s9524_s27 = smov %s9530_s7 }
 0xf7c   :  { %21 = sbr.rel (!%p19_p8) target bundleno = 14 (0xe), region = 98 }
 0xf83   :  { %5166 = vsyncpa [#allocation5], 1 }
 0xf84   :  { %5168 = vsyncpa [#allocation5 + $0x1], 1 }
 0xf85   :  { %5169 = vsyncpa [#allocation8], 1 }
 0xf86   :  { %5170 = vsyncpa [#allocation6], 1 }
 0xf87   :  { %5172 = vsyncpa [#allocation6 + $0x1], 1 }

</bundles_post_ra>
